<compile_context>
chip_gen: v7x
topology: tpu7x:2x2x1
jax: 0.10.0
libtpu: 0.0.40
codegen_flags: <defaults>
</compile_context>

<pallas_src>
import math
import functools

import jax
import jax.numpy as jnp
from jax import lax
from jax.experimental import pallas as pl
from jax.experimental.pallas import tpu as pltpu

LANE = 128
NEG_INF = -1e30


def _round_up(x, m):
    return ((x + m - 1) // m) * m


# --------------------------------------------------------------------------
# Fused forward kernel (single gridless pallas_call, everything VMEM resident)
# --------------------------------------------------------------------------
def _make_kernel(heads, head_pad):
    qw = heads * head_pad          # lane width of one fused q / k / v block

    def attention(q, k, v, add_mask, row_has, wa, ba, omb, x_dst):
        """HGT-style multi-head attention for one edge type (dense masked)."""
        head_outs = []
        for h in range(heads):                                   # static unroll
            lo, hi = h * head_pad, (h + 1) * head_pad            # 128-aligned slices
            qh, kh, vh = q[:, lo:hi], k[:, lo:hi], v[:, lo:hi]
            # q @ k^T without materializing a transpose (MXU consumes k transposed)
            s = lax.dot_general(qh, kh, (((1,), (1,)), ((), ())),
                                preferred_element_type=jnp.float32)  # (n_dst, n_src)
            if add_mask is not None:
                s = s + add_mask
            s = s - jnp.max(s, axis=-1, keepdims=True)
            p = jnp.exp(s)
            denom = jnp.sum(p, axis=-1, keepdims=True)
            attn = p * pl.reciprocal(denom, approx=False)
            head_outs.append(jnp.dot(attn, vh, preferred_element_type=jnp.float32))
        agg = jnp.concatenate(head_outs, axis=-1)                # (n_dst, heads*128)
        if row_has is not None:
            agg = agg * row_has                                  # zero isolated dst rows
        # TODO(synk): torch F.gelu is erf-based; tanh approximation used here.
        g = jax.nn.gelu(agg, approximate=True)
        out = jnp.dot(g, wa, preferred_element_type=jnp.float32) + ba   # beta folded
        out = out + omb * x_dst                                  # skip: (1-beta)*x_dst
        return jnp.maximum(out, 0.0)                             # gnn_act = relu

    def kernel(x_kw_ref, x_doc_ref, x_fb_ref, adj_d2k_ref, adj_k2d_ref,
               fb1_w_ref, fb1_b_ref, fb2_w_ref, fb2_b_ref,
               hkw_w_ref, hkw_b_ref, hdoc_w_ref, hdoc_b_ref,
               w_kw_l1_ref, w_doc_l1_ref,
               wa_kw_l1_ref, ba_kw_l1_ref, omb_kw_l1_ref,
               wa_doc_l1_ref, ba_doc_l1_ref, omb_doc_l1_ref,
               w_kw_l3_ref, w_doc_l3_ref,
               wa_kw_l3_ref, ba_kw_l3_ref, omb_kw_l3_ref,
               wa_doc_l3_ref, ba_doc_l3_ref, omb_doc_l3_ref,
               w_kw_l4_ref, w_doc_l4_ref,
               wa_doc_l4_ref, ba_doc_l4_ref, omb_doc_l4_ref,
               last_w_ref, last_b_ref,
               out_ref, kw_out_ref):
        # additive masks + "row has any edge" built once from the adjacency
        adj_d2k = adj_d2k_ref[...]                               # (n_kw, n_doc)
        adj_k2d = adj_k2d_ref[...]                               # (n_doc, n_kw)
        m_d2k = jnp.where(adj_d2k > 0, 0.0, NEG_INF)
        rh_d2k = (jnp.sum(adj_d2k, axis=-1, keepdims=True) > 0).astype(jnp.float32)
        m_k2d = jnp.where(adj_k2d > 0, 0.0, NEG_INF)
        rh_k2d = (jnp.sum(adj_k2d, axis=-1, keepdims=True) > 0).astype(jnp.float32)

        # feedback net: Linear -> relu -> Linear (eval mode, dropout = identity)
        fb = jnp.maximum(
            jnp.dot(x_fb_ref[...], fb1_w_ref[...],
                    preferred_element_type=jnp.float32) + fb1_b_ref[...], 0.0)
        fb = jnp.dot(fb, fb2_w_ref[...],
                     preferred_element_type=jnp.float32) + fb2_b_ref[...]

        # gnn layer 0: HeteroDictLinear on {kw, doc} + relu
        kw = jnp.maximum(
            jnp.dot(x_kw_ref[...], hkw_w_ref[...],
                    preferred_element_type=jnp.float32) + hkw_b_ref[...], 0.0)
        doc = jnp.maximum(
            jnp.dot(x_doc_ref[...], hdoc_w_ref[...],
                    preferred_element_type=jnp.float32) + hdoc_b_ref[...], 0.0)

        def hgt_pair(kw_in, doc_in, w_kw_ref, w_doc_ref,
                     wa_kw_ref, ba_kw_ref, omb_kw_ref,
                     wa_doc_ref, ba_doc_ref, omb_doc_ref):
            # one fused (HP, 3*heads*128) projection per node type: [q | k | v]
            pk = jnp.dot(kw_in, w_kw_ref[...], preferred_element_type=jnp.float32)
            pd = jnp.dot(doc_in, w_doc_ref[...], preferred_element_type=jnp.float32)
            q_kw, k_kw, v_kw = pk[:, :qw], pk[:, qw:2 * qw], pk[:, 2 * qw:3 * qw]
            q_doc, k_doc, v_doc = pd[:, :qw], pd[:, qw:2 * qw], pd[:, 2 * qw:3 * qw]
            kw_new = attention(q_kw, k_doc, v_doc, m_d2k, rh_d2k,
                               wa_kw_ref[...], ba_kw_ref[...], omb_kw_ref[...], kw_in)
            doc_new = attention(q_doc, k_kw, v_kw, m_k2d, rh_k2d,
                                wa_doc_ref[...], ba_doc_ref[...], omb_doc_ref[...], doc_in)
            return kw_new, doc_new

        # gnn layer 1: HGTConv over (doc->kw), (kw->doc) + relu
        kw, doc = hgt_pair(kw, doc, w_kw_l1_ref, w_doc_l1_ref,
                           wa_kw_l1_ref, ba_kw_l1_ref, omb_kw_l1_ref,
                           wa_doc_l1_ref, ba_doc_l1_ref, omb_doc_l1_ref)

        # gnn layer 2: Mul merge of feedback into doc
        doc = doc * fb

        # gnn layer 3: HGTConv over (doc->kw), (kw->doc) + relu
        kw, doc = hgt_pair(kw, doc, w_kw_l3_ref, w_doc_l3_ref,
                           wa_kw_l3_ref, ba_kw_l3_ref, omb_kw_l3_ref,
                           wa_doc_l3_ref, ba_doc_l3_ref, omb_doc_l3_ref)

        # gnn layer 4: HGTConv over (kw -to_all-> doc); fully-connected edge
        # type -> additive mask all zeros, row_has all ones, so no mask at all.
        pk = jnp.dot(kw, w_kw_l4_ref[...], preferred_element_type=jnp.float32)    # [k|v]
        qd = jnp.dot(doc, w_doc_l4_ref[...], preferred_element_type=jnp.float32)  # [q]
        doc = attention(qd, pk[:, :qw], pk[:, qw:2 * qw], None, None,
                        wa_doc_l4_ref[...], ba_doc_l4_ref[...], omb_doc_l4_ref[...], doc)

        # last: Linear(hidden -> 3); lane-dense padded outputs (sliced in wrapper)
        out_ref[...] = (jnp.dot(doc, last_w_ref[...],
                                preferred_element_type=jnp.float32) + last_b_ref[...])
        kw_out_ref[...] = kw

    return kernel


# --------------------------------------------------------------------------
# Wrapper: host-side padding + single pallas_call
# --------------------------------------------------------------------------
def _pad_cols(x, cols):
    out = jnp.zeros((x.shape[0], cols), jnp.float32)
    return out.at[:, :x.shape[1]].set(x.astype(jnp.float32))


_WEIGHT_ORDER = [
    "fb1_w", "fb1_b", "fb2_w", "fb2_b",
    "hkw_w", "hkw_b", "hdoc_w", "hdoc_b",
    "w_kw_l1", "w_doc_l1", "wa_kw_l1", "ba_kw_l1", "omb_kw_l1",
    "wa_doc_l1", "ba_doc_l1", "omb_doc_l1",
    "w_kw_l3", "w_doc_l3", "wa_kw_l3", "ba_kw_l3", "omb_kw_l3",
    "wa_doc_l3", "ba_doc_l3", "omb_doc_l3",
    "w_kw_l4", "w_doc_l4", "wa_doc_l4", "ba_doc_l4", "omb_doc_l4",
    "last_w", "last_b",
]


def gnn_agent_forward(prepped, x_kw, x_doc, x_fb, adj_doc2kw, adj_kw2doc,
                      *, hidden, heads, out_channels):
    n_kw, n_doc = x_kw.shape[0], x_doc.shape[0]
    hp = _round_up(hidden, LANE)
    hd = _round_up(hidden // heads, LANE)
    op = _round_up(out_channels, LANE)

    # pad input feature dims to the zero-padded weight row counts -> lane dense
    x_kw_p = _pad_cols(x_kw, prepped["hkw_w"].shape[0])
    x_doc_p = _pad_cols(x_doc, prepped["hdoc_w"].shape[0])
    x_fb_p = _pad_cols(x_fb, prepped["fb1_w"].shape[0])

    inputs = [x_kw_p, x_doc_p, x_fb_p,
              adj_doc2kw.astype(jnp.float32), adj_kw2doc.astype(jnp.float32)]
    inputs += [prepped[name] for name in _WEIGHT_ORDER]

    vmem_spec = pl.BlockSpec(memory_space=pltpu.MemorySpace.VMEM)
    out_pad, kw_pad = pl.pallas_call(
        _make_kernel(heads, hd),
        out_shape=(jax.ShapeDtypeStruct((n_doc, op), jnp.float32),
                   jax.ShapeDtypeStruct((n_kw, hp), jnp.float32)),
        in_specs=[vmem_spec] * len(inputs),
        out_specs=(vmem_spec, vmem_spec),
        compiler_params=pltpu.CompilerParams(vmem_limit_bytes=32 * 1024 * 1024),
    )(*inputs)

    return out_pad[:, :out_channels], kw_pad[:, :hidden]


# --------------------------------------------------------------------------
# Host-side parameter folding / padding (done once, outside jit)
# --------------------------------------------------------------------------
def prepare_params(params, heads):
    hidden = params["hdl_kw_w"].shape[1]
    kw_feat = params["hdl_kw_w"].shape[0]
    doc_feat = params["hdl_doc_w"].shape[0]
    fb_feat = params["fb1_w"].shape[0]
    out_channels = params["last_w"].shape[1]
    dh = hidden // heads
    hp = _round_up(hidden, LANE)
    hd = _round_up(dh, LANE)
    op = _round_up(out_channels, LANE)
    scale = 1.0 / math.sqrt(dh)

    def pad2(w, rows, cols):
        out = jnp.zeros((rows, cols), jnp.float32)
        return out.at[:w.shape[0], :w.shape[1]].set(w.astype(jnp.float32))

    def pad_head_cols(w):                        # (hidden, heads*dh) -> (hp, heads*hd)
        out = jnp.zeros((hp, heads * hd), jnp.float32)
        for h in range(heads):
            out = out.at[:hidden, h * hd:h * hd + dh].set(w[:, h * dh:(h + 1) * dh])
        return out

    def pad_head_rows(w):                        # (heads*dh, hidden) -> (heads*hd, hp)
        out = jnp.zeros((heads * hd, hp), jnp.float32)
        for h in range(heads):
            out = out.at[h * hd:h * hd + dh, :hidden].set(w[h * dh:(h + 1) * dh, :])
        return out

    def fold_rel(w, rel, p_rel=None):            # fold per-head relation (+ p_rel prior)
        blocks = []
        for h in range(heads):
            b = w[:, h * dh:(h + 1) * dh] @ rel[h]
            if p_rel is not None:
                b = b * p_rel[h]
            blocks.append(b)
        return jnp.concatenate(blocks, axis=1)

    def src_kv(conv, ntype, edge):
        e = conv["edges"][edge]
        k = pad_head_cols(fold_rel(conv["wk_" + ntype], e["a_rel"], e["p_rel"]))
        v = pad_head_cols(fold_rel(conv["wv_" + ntype], e["m_rel"]))
        return k, v

    def dst_q(conv, ntype):
        return pad_head_cols(conv["wq_" + ntype] * scale)        # 1/sqrt(dh) folded

    def dst_out(conv, ntype):
        beta = jax.nn.sigmoid(conv["skip_" + ntype])             # sigmoid done host-side
        wa = pad_head_rows(conv["wa_" + ntype]) * beta
        ba = pad2(conv["ba_" + ntype], 1, hp) * beta
        omb = jnp.reshape(1.0 - beta, (1, 1)).astype(jnp.float32)
        return wa, ba, omb

    p = {
        "fb1_w": pad2(params["fb1_w"], _round_up(fb_feat, LANE), hp),
        "fb1_b": pad2(params["fb1_b"], 1, hp),
        "fb2_w": pad2(params["fb2_w"], hp, hp),
        "fb2_b": pad2(params["fb2_b"], 1, hp),
        "hkw_w": pad2(params["hdl_kw_w"], _round_up(kw_feat, LANE), hp),
        "hkw_b": pad2(params["hdl_kw_b"], 1, hp),
        "hdoc_w": pad2(params["hdl_doc_w"], _round_up(doc_feat, LANE), hp),
        "hdoc_b": pad2(params["hdl_doc_b"], 1, hp),
        "last_w": pad2(params["last_w"], hp, op),
        "last_b": pad2(params["last_b"], 1, op),
    }

    for tag, conv in (("l1", params["hgt1"]), ("l3", params["hgt2"])):
        k_kw, v_kw = src_kv(conv, "kw", "k2d")     # kw is src of (kw->doc)
        k_doc, v_doc = src_kv(conv, "doc", "d2k")  # doc is src of (doc->kw)
        p["w_kw_" + tag] = jnp.concatenate([dst_q(conv, "kw"), k_kw, v_kw], axis=1)
        p["w_doc_" + tag] = jnp.concatenate([dst_q(conv, "doc"), k_doc, v_doc], axis=1)
        p["wa_kw_" + tag], p["ba_kw_" + tag], p["omb_kw_" + tag] = dst_out(conv, "kw")
        p["wa_doc_" + tag], p["ba_doc_" + tag], p["omb_doc_" + tag] = dst_out(conv, "doc")

    conv = params["hgt3"]                          # edge (kw -to_all-> doc)
    k_kw, v_kw = src_kv(conv, "kw", "all")
    p["w_kw_l4"] = jnp.concatenate([k_kw, v_kw], axis=1)
    p["w_doc_l4"] = dst_q(conv, "doc")
    p["wa_doc_l4"], p["ba_doc_l4"], p["omb_doc_l4"] = dst_out(conv, "doc")
    return p


# --------------------------------------------------------------------------
# Deterministic raw parameter initialization (PyG-HGTConv style structure)
# --------------------------------------------------------------------------
def glorot(key, shape):
    fan_in, fan_out = shape[-2], shape[-1]
    lim = math.sqrt(6.0 / (fan_in + fan_out))
    return jax.random.uniform(key, shape, jnp.float32, -lim, lim)


def init_params(key, kw_feat, doc_feat, fb_feat, hidden, heads, out_channels):
    # TODO(synk): PyG kqv_lin / a_lin Linear biases are simplified (kqv bias omitted).
    dh = hidden // heads
    keys = iter(jax.random.split(key, 64))

    def nxt():
        return next(keys)

    def hgt_conv(node_types, edge_types, dst_types):
        c = {"edges": {}}
        for t in node_types:                       # per-node-type shared k/q/v
            c["wq_" + t] = glorot(nxt(), (hidden, hidden))
            c["wk_" + t] = glorot(nxt(), (hidden, hidden))
            c["wv_" + t] = glorot(nxt(), (hidden, hidden))
        for e in edge_types:                       # per-edge-type relation params
            c["edges"][e] = {
                "a_rel": glorot(nxt(), (heads, dh, dh)),
                "m_rel": glorot(nxt(), (heads, dh, dh)),
                "p_rel": jnp.ones((heads,), jnp.float32),   # PyG init = ones
            }
        for t in dst_types:                        # per-dst-type output + skip
            c["wa_" + t] = glorot(nxt(), (hidden, hidden))
            c["ba_" + t] = jnp.zeros((1, hidden), jnp.float32)
            c["skip_" + t] = jnp.ones((), jnp.float32)      # PyG skip init = 1
        return c

    return {
        "fb1_w": glorot(nxt(), (fb_feat, hidden)),
        "fb1_b": jnp.zeros((1, hidden), jnp.float32),
        "fb2_w": glorot(nxt(), (hidden, hidden)),
        "fb2_b": jnp.zeros((1, hidden), jnp.float32),
        "hdl_kw_w": glorot(nxt(), (kw_feat, hidden)),
        "hdl_kw_b": jnp.zeros((1, hidden), jnp.float32),
        "hdl_doc_w": glorot(nxt(), (doc_feat, hidden)),
        "hdl_doc_b": jnp.zeros((1, hidden), jnp.float32),
        "hgt1": hgt_conv(["kw", "doc"], ["d2k", "k2d"], ["kw", "doc"]),
        "hgt2": hgt_conv(["kw", "doc"], ["d2k", "k2d"], ["kw", "doc"]),
        "hgt3": hgt_conv(["kw", "doc"], ["all"], ["doc"]),
        "last_w": glorot(nxt(), (hidden, out_channels)),
        "last_b": jnp.zeros((1, out_channels), jnp.float32),
    }


# --------------------------------------------------------------------------
if __name__ == "__main__":
    key = jax.random.PRNGKey(0)
    kw_feat, doc_feat, fb_feat = 32, 16, 8
    hidden = kw_feat           # hidden_dim = 'default' -> kw_features_size
    heads = 2
    n_kw, n_doc = 16, 8
    out_channels = 3           # prediction_type = 'next_feedback'

    k_par, k_kw, k_doc, k_fb, k_e1, k_e2 = jax.random.split(key, 6)
    params = init_params(k_par, kw_feat, doc_feat, fb_feat, hidden, heads, out_channels)
    prepped = prepare_params(params, heads=heads)

    x_kw = jax.random.normal(k_kw, (n_kw, kw_feat), jnp.float32)
    x_doc = jax.random.normal(k_doc, (n_doc, doc_feat), jnp.float32)
    x_fb = jax.random.normal(k_fb, (n_doc, fb_feat), jnp.float32)

    # edge_index_dict represented as dense adjacency (num_dst, num_src)
    src_doc = jax.random.randint(k_e1, (n_kw, 2), 0, n_doc)
    adj_doc2kw = jnp.zeros((n_kw, n_doc), jnp.float32).at[
        jnp.arange(n_kw)[:, None], src_doc].set(1.0)          # ('doc','to','kw')
    src_kw = jax.random.randint(k_e2, (n_doc, 3), 0, n_kw)
    adj_kw2doc = jnp.zeros((n_doc, n_kw), jnp.float32).at[
        jnp.arange(n_doc)[:, None], src_kw].set(1.0)          # ('kw','to2','doc')
    # ('kw','to_all','doc') is fully connected by construction -> maskless in-kernel.

    fwd = jax.jit(functools.partial(gnn_agent_forward, hidden=hidden, heads=heads,
                                    out_channels=out_channels))
    out, kw_emb = fwd(prepped, x_kw, x_doc, x_fb, adj_doc2kw, adj_kw2doc)
    jax.block_until_ready((out, kw_emb))
    assert out.shape == (n_doc, out_channels)
    assert kw_emb.shape == (n_kw, hidden)
    assert bool(jnp.all(jnp.isfinite(out))) and bool(jnp.all(jnp.isfinite(kw_emb)))
    print("KERNEL_OK")
</pallas_src>

<mosaic_0001>
module attributes {stable_mosaic.version = 11 : i64} {
  func.func @kernel(%arg0: memref<16x128xf32, #tpu.memory_space<vmem>>, %arg1: memref<8x128xf32, #tpu.memory_space<vmem>>, %arg2: memref<8x128xf32, #tpu.memory_space<vmem>>, %arg3: memref<16x8xf32, #tpu.memory_space<vmem>>, %arg4: memref<8x16xf32, #tpu.memory_space<vmem>>, %arg5: memref<128x128xf32, #tpu.memory_space<vmem>>, %arg6: memref<1x128xf32, #tpu.memory_space<vmem>>, %arg7: memref<128x128xf32, #tpu.memory_space<vmem>>, %arg8: memref<1x128xf32, #tpu.memory_space<vmem>>, %arg9: memref<128x128xf32, #tpu.memory_space<vmem>>, %arg10: memref<1x128xf32, #tpu.memory_space<vmem>>, %arg11: memref<128x128xf32, #tpu.memory_space<vmem>>, %arg12: memref<1x128xf32, #tpu.memory_space<vmem>>, %arg13: memref<128x768xf32, #tpu.memory_space<vmem>>, %arg14: memref<128x768xf32, #tpu.memory_space<vmem>>, %arg15: memref<256x128xf32, #tpu.memory_space<vmem>>, %arg16: memref<1x128xf32, #tpu.memory_space<vmem>>, %arg17: memref<1x1xf32, #tpu.memory_space<vmem>>, %arg18: memref<256x128xf32, #tpu.memory_space<vmem>>, %arg19: memref<1x128xf32, #tpu.memory_space<vmem>>, %arg20: memref<1x1xf32, #tpu.memory_space<vmem>>, %arg21: memref<128x768xf32, #tpu.memory_space<vmem>>, %arg22: memref<128x768xf32, #tpu.memory_space<vmem>>, %arg23: memref<256x128xf32, #tpu.memory_space<vmem>>, %arg24: memref<1x128xf32, #tpu.memory_space<vmem>>, %arg25: memref<1x1xf32, #tpu.memory_space<vmem>>, %arg26: memref<256x128xf32, #tpu.memory_space<vmem>>, %arg27: memref<1x128xf32, #tpu.memory_space<vmem>>, %arg28: memref<1x1xf32, #tpu.memory_space<vmem>>, %arg29: memref<128x512xf32, #tpu.memory_space<vmem>>, %arg30: memref<128x256xf32, #tpu.memory_space<vmem>>, %arg31: memref<256x128xf32, #tpu.memory_space<vmem>>, %arg32: memref<1x128xf32, #tpu.memory_space<vmem>>, %arg33: memref<1x1xf32, #tpu.memory_space<vmem>>, %arg34: memref<128x128xf32, #tpu.memory_space<vmem>>, %arg35: memref<1x128xf32, #tpu.memory_space<vmem>>, %arg36: memref<8x128xf32, #tpu.memory_space<vmem>>, %arg37: memref<16x128xf32, #tpu.memory_space<vmem>>) attributes {dimension_semantics = [], scalar_prefetch = 0 : i64, scratch_operands = 0 : i64, tpu.core_type = #tpu.core_type<tc>} {
    %c0 = arith.constant 0 : index
    %c0_0 = arith.constant 0 : index
    %0 = vector.load %arg3[%c0, %c0_0] : memref<16x8xf32, #tpu.memory_space<vmem>>, vector<16x8xf32>
    %c0_1 = arith.constant 0 : index
    %c0_2 = arith.constant 0 : index
    %1 = vector.load %arg4[%c0_1, %c0_2] : memref<8x16xf32, #tpu.memory_space<vmem>>, vector<8x16xf32>
    %cst = arith.constant 0.000000e+00 : f32
    %2 = vector.broadcast %cst : f32 to vector<16x8xf32>
    %3 = arith.cmpf ogt, %0, %2 : vector<16x8xf32>
    %cst_3 = arith.constant 0.000000e+00 : f32
    %cst_4 = arith.constant -1.000000e+30 : f32
    %4 = vector.broadcast %cst_3 : f32 to vector<16x8xf32>
    %5 = vector.broadcast %cst_4 : f32 to vector<16x8xf32>
    %6 = arith.select %3, %4, %5 : vector<16x8xi1>, vector<16x8xf32>
    %cst_5 = arith.constant dense<0.000000e+00> : vector<16xf32>
    %7 = vector.multi_reduction <add>, %0, %cst_5 [1] : vector<16x8xf32> to vector<16xf32>
    %8 = vector.shape_cast %7 : vector<16xf32> to vector<16x1xf32>
    %cst_6 = arith.constant 0.000000e+00 : f32
    %9 = vector.broadcast %cst_6 : f32 to vector<16x1xf32>
    %10 = arith.cmpf ogt, %8, %9 : vector<16x1xf32>
    %11 = arith.extui %10 : vector<16x1xi1> to vector<16x1xi32>
    %12 = arith.sitofp %11 : vector<16x1xi32> to vector<16x1xf32>
    %cst_7 = arith.constant 0.000000e+00 : f32
    %13 = vector.broadcast %cst_7 : f32 to vector<8x16xf32>
    %14 = arith.cmpf ogt, %1, %13 : vector<8x16xf32>
    %cst_8 = arith.constant 0.000000e+00 : f32
    %cst_9 = arith.constant -1.000000e+30 : f32
    %15 = vector.broadcast %cst_8 : f32 to vector<8x16xf32>
    %16 = vector.broadcast %cst_9 : f32 to vector<8x16xf32>
    %17 = arith.select %14, %15, %16 : vector<8x16xi1>, vector<8x16xf32>
    %cst_10 = arith.constant dense<0.000000e+00> : vector<8xf32>
    %18 = vector.multi_reduction <add>, %1, %cst_10 [1] : vector<8x16xf32> to vector<8xf32>
    %19 = vector.shape_cast %18 : vector<8xf32> to vector<8x1xf32>
    %cst_11 = arith.constant 0.000000e+00 : f32
    %20 = vector.broadcast %cst_11 : f32 to vector<8x1xf32>
    %21 = arith.cmpf ogt, %19, %20 : vector<8x1xf32>
    %22 = arith.extui %21 : vector<8x1xi1> to vector<8x1xi32>
    %23 = arith.sitofp %22 : vector<8x1xi32> to vector<8x1xf32>
    %c0_12 = arith.constant 0 : index
    %c0_13 = arith.constant 0 : index
    %24 = vector.load %arg2[%c0_12, %c0_13] : memref<8x128xf32, #tpu.memory_space<vmem>>, vector<8x128xf32>
    %c0_14 = arith.constant 0 : index
    %c0_15 = arith.constant 0 : index
    %25 = vector.load %arg5[%c0_14, %c0_15] : memref<128x128xf32, #tpu.memory_space<vmem>>, vector<128x128xf32>
    %cst_16 = arith.constant dense<0.000000e+00> : vector<8x128xf32>
    %26 = tpu.matmul %24, %25, %cst_16 {dimension_numbers = #tpu.dot_dimension_numbers<[1], [0], [0], [1], [0, 0, 1, 1], [], []>} : vector<8x128xf32>, vector<128x128xf32>, vector<8x128xf32> -> vector<8x128xf32>
    %c0_17 = arith.constant 0 : index
    %c0_18 = arith.constant 0 : index
    %27 = vector.load %arg6[%c0_17, %c0_18] : memref<1x128xf32, #tpu.memory_space<vmem>>, vector<1x128xf32>
    %28 = vector.broadcast %27 : vector<1x128xf32> to vector<8x128xf32>
    %29 = arith.addf %26, %28 : vector<8x128xf32>
    %cst_19 = arith.constant 0.000000e+00 : f32
    %30 = vector.broadcast %cst_19 : f32 to vector<8x128xf32>
    %31 = arith.maximumf %29, %30 : vector<8x128xf32>
    %c0_20 = arith.constant 0 : index
    %c0_21 = arith.constant 0 : index
    %32 = vector.load %arg7[%c0_20, %c0_21] : memref<128x128xf32, #tpu.memory_space<vmem>>, vector<128x128xf32>
    %cst_22 = arith.constant dense<0.000000e+00> : vector<8x128xf32>
    %33 = tpu.matmul %31, %32, %cst_22 {dimension_numbers = #tpu.dot_dimension_numbers<[1], [0], [0], [1], [0, 0, 1, 1], [], []>} : vector<8x128xf32>, vector<128x128xf32>, vector<8x128xf32> -> vector<8x128xf32>
    %c0_23 = arith.constant 0 : index
    %c0_24 = arith.constant 0 : index
    %34 = vector.load %arg8[%c0_23, %c0_24] : memref<1x128xf32, #tpu.memory_space<vmem>>, vector<1x128xf32>
    %35 = vector.broadcast %34 : vector<1x128xf32> to vector<8x128xf32>
    %36 = arith.addf %33, %35 : vector<8x128xf32>
    %c0_25 = arith.constant 0 : index
    %c0_26 = arith.constant 0 : index
    %37 = vector.load %arg0[%c0_25, %c0_26] : memref<16x128xf32, #tpu.memory_space<vmem>>, vector<16x128xf32>
    %c0_27 = arith.constant 0 : index
    %c0_28 = arith.constant 0 : index
    %38 = vector.load %arg9[%c0_27, %c0_28] : memref<128x128xf32, #tpu.memory_space<vmem>>, vector<128x128xf32>
    %cst_29 = arith.constant dense<0.000000e+00> : vector<16x128xf32>
    %39 = tpu.matmul %37, %38, %cst_29 {dimension_numbers = #tpu.dot_dimension_numbers<[1], [0], [0], [1], [0, 0, 1, 1], [], []>} : vector<16x128xf32>, vector<128x128xf32>, vector<16x128xf32> -> vector<16x128xf32>
    %c0_30 = arith.constant 0 : index
    %c0_31 = arith.constant 0 : index
    %40 = vector.load %arg10[%c0_30, %c0_31] : memref<1x128xf32, #tpu.memory_space<vmem>>, vector<1x128xf32>
    %41 = vector.broadcast %40 : vector<1x128xf32> to vector<16x128xf32>
    %42 = arith.addf %39, %41 : vector<16x128xf32>
    %cst_32 = arith.constant 0.000000e+00 : f32
    %43 = vector.broadcast %cst_32 : f32 to vector<16x128xf32>
    %44 = arith.maximumf %42, %43 : vector<16x128xf32>
    %c0_33 = arith.constant 0 : index
    %c0_34 = arith.constant 0 : index
    %45 = vector.load %arg1[%c0_33, %c0_34] : memref<8x128xf32, #tpu.memory_space<vmem>>, vector<8x128xf32>
    %c0_35 = arith.constant 0 : index
    %c0_36 = arith.constant 0 : index
    %46 = vector.load %arg11[%c0_35, %c0_36] : memref<128x128xf32, #tpu.memory_space<vmem>>, vector<128x128xf32>
    %cst_37 = arith.constant dense<0.000000e+00> : vector<8x128xf32>
    %47 = tpu.matmul %45, %46, %cst_37 {dimension_numbers = #tpu.dot_dimension_numbers<[1], [0], [0], [1], [0, 0, 1, 1], [], []>} : vector<8x128xf32>, vector<128x128xf32>, vector<8x128xf32> -> vector<8x128xf32>
    %c0_38 = arith.constant 0 : index
    %c0_39 = arith.constant 0 : index
    %48 = vector.load %arg12[%c0_38, %c0_39] : memref<1x128xf32, #tpu.memory_space<vmem>>, vector<1x128xf32>
    %49 = vector.broadcast %48 : vector<1x128xf32> to vector<8x128xf32>
    %50 = arith.addf %47, %49 : vector<8x128xf32>
    %cst_40 = arith.constant 0.000000e+00 : f32
    %51 = vector.broadcast %cst_40 : f32 to vector<8x128xf32>
    %52 = arith.maximumf %50, %51 : vector<8x128xf32>
    %c0_41 = arith.constant 0 : index
    %c0_42 = arith.constant 0 : index
    %53 = vector.load %arg13[%c0_41, %c0_42] : memref<128x768xf32, #tpu.memory_space<vmem>>, vector<128x768xf32>
    %cst_43 = arith.constant dense<0.000000e+00> : vector<16x768xf32>
    %54 = tpu.matmul %44, %53, %cst_43 {dimension_numbers = #tpu.dot_dimension_numbers<[1], [0], [0], [1], [0, 0, 1, 1], [], []>} : vector<16x128xf32>, vector<128x768xf32>, vector<16x768xf32> -> vector<16x768xf32>
    %c0_44 = arith.constant 0 : index
    %c0_45 = arith.constant 0 : index
    %55 = vector.load %arg14[%c0_44, %c0_45] : memref<128x768xf32, #tpu.memory_space<vmem>>, vector<128x768xf32>
    %cst_46 = arith.constant dense<0.000000e+00> : vector<8x768xf32>
    %56 = tpu.matmul %52, %55, %cst_46 {dimension_numbers = #tpu.dot_dimension_numbers<[1], [0], [0], [1], [0, 0, 1, 1], [], []>} : vector<8x128xf32>, vector<128x768xf32>, vector<8x768xf32> -> vector<8x768xf32>
    %57 = vector.extract_strided_slice %54 {offsets = [0, 0], sizes = [16, 256], strides = [1, 1]} : vector<16x768xf32> to vector<16x256xf32>
    %58 = vector.extract_strided_slice %54 {offsets = [0, 256], sizes = [16, 256], strides = [1, 1]} : vector<16x768xf32> to vector<16x256xf32>
    %59 = vector.extract_strided_slice %54 {offsets = [0, 512], sizes = [16, 256], strides = [1, 1]} : vector<16x768xf32> to vector<16x256xf32>
    %60 = vector.extract_strided_slice %56 {offsets = [0, 0], sizes = [8, 256], strides = [1, 1]} : vector<8x768xf32> to vector<8x256xf32>
    %61 = vector.extract_strided_slice %56 {offsets = [0, 256], sizes = [8, 256], strides = [1, 1]} : vector<8x768xf32> to vector<8x256xf32>
    %62 = vector.extract_strided_slice %56 {offsets = [0, 512], sizes = [8, 256], strides = [1, 1]} : vector<8x768xf32> to vector<8x256xf32>
    %c0_47 = arith.constant 0 : index
    %c0_48 = arith.constant 0 : index
    %63 = vector.load %arg15[%c0_47, %c0_48] : memref<256x128xf32, #tpu.memory_space<vmem>>, vector<256x128xf32>
    %c0_49 = arith.constant 0 : index
    %c0_50 = arith.constant 0 : index
    %64 = vector.load %arg16[%c0_49, %c0_50] : memref<1x128xf32, #tpu.memory_space<vmem>>, vector<1x128xf32>
    %c0_51 = arith.constant 0 : index
    %c0_52 = arith.constant 0 : index
    %65 = vector.load %arg17[%c0_51, %c0_52] : memref<1x1xf32, #tpu.memory_space<vmem>>, vector<1x1xf32>
    %66 = vector.extract_strided_slice %57 {offsets = [0, 0], sizes = [16, 128], strides = [1, 1]} : vector<16x256xf32> to vector<16x128xf32>
    %67 = vector.extract_strided_slice %61 {offsets = [0, 0], sizes = [8, 128], strides = [1, 1]} : vector<8x256xf32> to vector<8x128xf32>
    %68 = vector.extract_strided_slice %62 {offsets = [0, 0], sizes = [8, 128], strides = [1, 1]} : vector<8x256xf32> to vector<8x128xf32>
    %cst_53 = arith.constant dense<0.000000e+00> : vector<16x8xf32>
    %69 = tpu.matmul %66, %67, %cst_53 {dimension_numbers = #tpu.dot_dimension_numbers<[1], [1], [0], [0], [0, 0, 1, 0], [], []>} : vector<16x128xf32>, vector<8x128xf32>, vector<16x8xf32> -> vector<16x8xf32>
    %70 = arith.addf %69, %6 : vector<16x8xf32>
    %cst_54 = arith.constant dense<0xFF800000> : vector<16xf32>
    %71 = vector.multi_reduction <maximumf>, %70, %cst_54 [1] : vector<16x8xf32> to vector<16xf32>
    %72 = vector.shape_cast %71 : vector<16xf32> to vector<16x1xf32>
    %73 = vector.broadcast %72 : vector<16x1xf32> to vector<16x8xf32>
    %74 = arith.subf %70, %73 : vector<16x8xf32>
    %75 = math.exp %74 : vector<16x8xf32>
    %cst_55 = arith.constant dense<0.000000e+00> : vector<16xf32>
    %76 = vector.multi_reduction <add>, %75, %cst_55 [1] : vector<16x8xf32> to vector<16xf32>
    %77 = vector.shape_cast %76 : vector<16xf32> to vector<16x1xf32>
    %78 = tpu.reciprocal %77 : vector<16x1xf32> -> vector<16x1xf32>
    %79 = vector.broadcast %78 : vector<16x1xf32> to vector<16x8xf32>
    %80 = arith.mulf %75, %79 : vector<16x8xf32>
    %cst_56 = arith.constant dense<0.000000e+00> : vector<16x128xf32>
    %81 = tpu.matmul %80, %68, %cst_56 {dimension_numbers = #tpu.dot_dimension_numbers<[1], [0], [0], [1], [0, 0, 1, 1], [], []>} : vector<16x8xf32>, vector<8x128xf32>, vector<16x128xf32> -> vector<16x128xf32>
    %82 = vector.extract_strided_slice %57 {offsets = [0, 128], sizes = [16, 128], strides = [1, 1]} : vector<16x256xf32> to vector<16x128xf32>
    %83 = vector.extract_strided_slice %61 {offsets = [0, 128], sizes = [8, 128], strides = [1, 1]} : vector<8x256xf32> to vector<8x128xf32>
    %84 = vector.extract_strided_slice %62 {offsets = [0, 128], sizes = [8, 128], strides = [1, 1]} : vector<8x256xf32> to vector<8x128xf32>
    %cst_57 = arith.constant dense<0.000000e+00> : vector<16x8xf32>
    %85 = tpu.matmul %82, %83, %cst_57 {dimension_numbers = #tpu.dot_dimension_numbers<[1], [1], [0], [0], [0, 0, 1, 0], [], []>} : vector<16x128xf32>, vector<8x128xf32>, vector<16x8xf32> -> vector<16x8xf32>
    %86 = arith.addf %85, %6 : vector<16x8xf32>
    %cst_58 = arith.constant dense<0xFF800000> : vector<16xf32>
    %87 = vector.multi_reduction <maximumf>, %86, %cst_58 [1] : vector<16x8xf32> to vector<16xf32>
    %88 = vector.shape_cast %87 : vector<16xf32> to vector<16x1xf32>
    %89 = vector.broadcast %88 : vector<16x1xf32> to vector<16x8xf32>
    %90 = arith.subf %86, %89 : vector<16x8xf32>
    %91 = math.exp %90 : vector<16x8xf32>
    %cst_59 = arith.constant dense<0.000000e+00> : vector<16xf32>
    %92 = vector.multi_reduction <add>, %91, %cst_59 [1] : vector<16x8xf32> to vector<16xf32>
    %93 = vector.shape_cast %92 : vector<16xf32> to vector<16x1xf32>
    %94 = tpu.reciprocal %93 : vector<16x1xf32> -> vector<16x1xf32>
    %95 = vector.broadcast %94 : vector<16x1xf32> to vector<16x8xf32>
    %96 = arith.mulf %91, %95 : vector<16x8xf32>
    %cst_60 = arith.constant dense<0.000000e+00> : vector<16x128xf32>
    %97 = tpu.matmul %96, %84, %cst_60 {dimension_numbers = #tpu.dot_dimension_numbers<[1], [0], [0], [1], [0, 0, 1, 1], [], []>} : vector<16x8xf32>, vector<8x128xf32>, vector<16x128xf32> -> vector<16x128xf32>
    %98 = tpu.concatenate %81, %97 in 1 : vector<16x128xf32>, vector<16x128xf32> -> vector<16x256xf32>
    %99 = vector.broadcast %12 : vector<16x1xf32> to vector<16x256xf32>
    %100 = arith.mulf %98, %99 : vector<16x256xf32>
    %101 = arith.mulf %100, %100 : vector<16x256xf32>
    %102 = arith.mulf %100, %101 : vector<16x256xf32>
    %cst_61 = arith.constant 4.471500e-02 : f32
    %103 = vector.broadcast %cst_61 : f32 to vector<16x256xf32>
    %104 = arith.mulf %103, %102 : vector<16x256xf32>
    %105 = arith.addf %100, %104 : vector<16x256xf32>
    %cst_62 = arith.constant 0.797884583 : f32
    %106 = vector.broadcast %cst_62 : f32 to vector<16x256xf32>
    %107 = arith.mulf %106, %105 : vector<16x256xf32>
    %108 = math.tanh %107 : vector<16x256xf32>
    %cst_63 = arith.constant 1.000000e+00 : f32
    %109 = vector.broadcast %cst_63 : f32 to vector<16x256xf32>
    %110 = arith.addf %109, %108 : vector<16x256xf32>
    %cst_64 = arith.constant 5.000000e-01 : f32
    %111 = vector.broadcast %cst_64 : f32 to vector<16x256xf32>
    %112 = arith.mulf %111, %110 : vector<16x256xf32>
    %113 = arith.mulf %100, %112 : vector<16x256xf32>
    %cst_65 = arith.constant dense<0.000000e+00> : vector<16x128xf32>
    %114 = tpu.matmul %113, %63, %cst_65 {dimension_numbers = #tpu.dot_dimension_numbers<[1], [0], [0], [1], [0, 0, 1, 1], [], []>} : vector<16x256xf32>, vector<256x128xf32>, vector<16x128xf32> -> vector<16x128xf32>
    %115 = vector.broadcast %64 : vector<1x128xf32> to vector<16x128xf32>
    %116 = arith.addf %114, %115 : vector<16x128xf32>
    %117 = vector.broadcast %65 : vector<1x1xf32> to vector<16x128xf32>
    %118 = arith.mulf %117, %44 : vector<16x128xf32>
    %119 = arith.addf %116, %118 : vector<16x128xf32>
    %cst_66 = arith.constant 0.000000e+00 : f32
    %120 = vector.broadcast %cst_66 : f32 to vector<16x128xf32>
    %121 = arith.maximumf %119, %120 : vector<16x128xf32>
    %c0_67 = arith.constant 0 : index
    %c0_68 = arith.constant 0 : index
    %122 = vector.load %arg18[%c0_67, %c0_68] : memref<256x128xf32, #tpu.memory_space<vmem>>, vector<256x128xf32>
    %c0_69 = arith.constant 0 : index
    %c0_70 = arith.constant 0 : index
    %123 = vector.load %arg19[%c0_69, %c0_70] : memref<1x128xf32, #tpu.memory_space<vmem>>, vector<1x128xf32>
    %c0_71 = arith.constant 0 : index
    %c0_72 = arith.constant 0 : index
    %124 = vector.load %arg20[%c0_71, %c0_72] : memref<1x1xf32, #tpu.memory_space<vmem>>, vector<1x1xf32>
    %125 = vector.extract_strided_slice %60 {offsets = [0, 0], sizes = [8, 128], strides = [1, 1]} : vector<8x256xf32> to vector<8x128xf32>
    %126 = vector.extract_strided_slice %58 {offsets = [0, 0], sizes = [16, 128], strides = [1, 1]} : vector<16x256xf32> to vector<16x128xf32>
    %127 = vector.extract_strided_slice %59 {offsets = [0, 0], sizes = [16, 128], strides = [1, 1]} : vector<16x256xf32> to vector<16x128xf32>
    %cst_73 = arith.constant dense<0.000000e+00> : vector<8x16xf32>
    %128 = tpu.matmul %125, %126, %cst_73 {dimension_numbers = #tpu.dot_dimension_numbers<[1], [1], [0], [0], [0, 0, 1, 0], [], []>} : vector<8x128xf32>, vector<16x128xf32>, vector<8x16xf32> -> vector<8x16xf32>
    %129 = arith.addf %128, %17 : vector<8x16xf32>
    %cst_74 = arith.constant dense<0xFF800000> : vector<8xf32>
    %130 = vector.multi_reduction <maximumf>, %129, %cst_74 [1] : vector<8x16xf32> to vector<8xf32>
    %131 = vector.shape_cast %130 : vector<8xf32> to vector<8x1xf32>
    %132 = vector.broadcast %131 : vector<8x1xf32> to vector<8x16xf32>
    %133 = arith.subf %129, %132 : vector<8x16xf32>
    %134 = math.exp %133 : vector<8x16xf32>
    %cst_75 = arith.constant dense<0.000000e+00> : vector<8xf32>
    %135 = vector.multi_reduction <add>, %134, %cst_75 [1] : vector<8x16xf32> to vector<8xf32>
    %136 = vector.shape_cast %135 : vector<8xf32> to vector<8x1xf32>
    %137 = tpu.reciprocal %136 : vector<8x1xf32> -> vector<8x1xf32>
    %138 = vector.broadcast %137 : vector<8x1xf32> to vector<8x16xf32>
    %139 = arith.mulf %134, %138 : vector<8x16xf32>
    %cst_76 = arith.constant dense<0.000000e+00> : vector<8x128xf32>
    %140 = tpu.matmul %139, %127, %cst_76 {dimension_numbers = #tpu.dot_dimension_numbers<[1], [0], [0], [1], [0, 0, 1, 1], [], []>} : vector<8x16xf32>, vector<16x128xf32>, vector<8x128xf32> -> vector<8x128xf32>
    %141 = vector.extract_strided_slice %60 {offsets = [0, 128], sizes = [8, 128], strides = [1, 1]} : vector<8x256xf32> to vector<8x128xf32>
    %142 = vector.extract_strided_slice %58 {offsets = [0, 128], sizes = [16, 128], strides = [1, 1]} : vector<16x256xf32> to vector<16x128xf32>
    %143 = vector.extract_strided_slice %59 {offsets = [0, 128], sizes = [16, 128], strides = [1, 1]} : vector<16x256xf32> to vector<16x128xf32>
    %cst_77 = arith.constant dense<0.000000e+00> : vector<8x16xf32>
    %144 = tpu.matmul %141, %142, %cst_77 {dimension_numbers = #tpu.dot_dimension_numbers<[1], [1], [0], [0], [0, 0, 1, 0], [], []>} : vector<8x128xf32>, vector<16x128xf32>, vector<8x16xf32> -> vector<8x16xf32>
    %145 = arith.addf %144, %17 : vector<8x16xf32>
    %cst_78 = arith.constant dense<0xFF800000> : vector<8xf32>
    %146 = vector.multi_reduction <maximumf>, %145, %cst_78 [1] : vector<8x16xf32> to vector<8xf32>
    %147 = vector.shape_cast %146 : vector<8xf32> to vector<8x1xf32>
    %148 = vector.broadcast %147 : vector<8x1xf32> to vector<8x16xf32>
    %149 = arith.subf %145, %148 : vector<8x16xf32>
    %150 = math.exp %149 : vector<8x16xf32>
    %cst_79 = arith.constant dense<0.000000e+00> : vector<8xf32>
    %151 = vector.multi_reduction <add>, %150, %cst_79 [1] : vector<8x16xf32> to vector<8xf32>
    %152 = vector.shape_cast %151 : vector<8xf32> to vector<8x1xf32>
    %153 = tpu.reciprocal %152 : vector<8x1xf32> -> vector<8x1xf32>
    %154 = vector.broadcast %153 : vector<8x1xf32> to vector<8x16xf32>
    %155 = arith.mulf %150, %154 : vector<8x16xf32>
    %cst_80 = arith.constant dense<0.000000e+00> : vector<8x128xf32>
    %156 = tpu.matmul %155, %143, %cst_80 {dimension_numbers = #tpu.dot_dimension_numbers<[1], [0], [0], [1], [0, 0, 1, 1], [], []>} : vector<8x16xf32>, vector<16x128xf32>, vector<8x128xf32> -> vector<8x128xf32>
    %157 = tpu.concatenate %140, %156 in 1 : vector<8x128xf32>, vector<8x128xf32> -> vector<8x256xf32>
    %158 = vector.broadcast %23 : vector<8x1xf32> to vector<8x256xf32>
    %159 = arith.mulf %157, %158 : vector<8x256xf32>
    %160 = arith.mulf %159, %159 : vector<8x256xf32>
    %161 = arith.mulf %159, %160 : vector<8x256xf32>
    %cst_81 = arith.constant 4.471500e-02 : f32
    %162 = vector.broadcast %cst_81 : f32 to vector<8x256xf32>
    %163 = arith.mulf %162, %161 : vector<8x256xf32>
    %164 = arith.addf %159, %163 : vector<8x256xf32>
    %cst_82 = arith.constant 0.797884583 : f32
    %165 = vector.broadcast %cst_82 : f32 to vector<8x256xf32>
    %166 = arith.mulf %165, %164 : vector<8x256xf32>
    %167 = math.tanh %166 : vector<8x256xf32>
    %cst_83 = arith.constant 1.000000e+00 : f32
    %168 = vector.broadcast %cst_83 : f32 to vector<8x256xf32>
    %169 = arith.addf %168, %167 : vector<8x256xf32>
    %cst_84 = arith.constant 5.000000e-01 : f32
    %170 = vector.broadcast %cst_84 : f32 to vector<8x256xf32>
    %171 = arith.mulf %170, %169 : vector<8x256xf32>
    %172 = arith.mulf %159, %171 : vector<8x256xf32>
    %cst_85 = arith.constant dense<0.000000e+00> : vector<8x128xf32>
    %173 = tpu.matmul %172, %122, %cst_85 {dimension_numbers = #tpu.dot_dimension_numbers<[1], [0], [0], [1], [0, 0, 1, 1], [], []>} : vector<8x256xf32>, vector<256x128xf32>, vector<8x128xf32> -> vector<8x128xf32>
    %174 = vector.broadcast %123 : vector<1x128xf32> to vector<8x128xf32>
    %175 = arith.addf %173, %174 : vector<8x128xf32>
    %176 = vector.broadcast %124 : vector<1x1xf32> to vector<8x128xf32>
    %177 = arith.mulf %176, %52 : vector<8x128xf32>
    %178 = arith.addf %175, %177 : vector<8x128xf32>
    %cst_86 = arith.constant 0.000000e+00 : f32
    %179 = vector.broadcast %cst_86 : f32 to vector<8x128xf32>
    %180 = arith.maximumf %178, %179 : vector<8x128xf32>
    %181 = arith.mulf %180, %36 : vector<8x128xf32>
    %c0_87 = arith.constant 0 : index
    %c0_88 = arith.constant 0 : index
    %182 = vector.load %arg21[%c0_87, %c0_88] : memref<128x768xf32, #tpu.memory_space<vmem>>, vector<128x768xf32>
    %cst_89 = arith.constant dense<0.000000e+00> : vector<16x768xf32>
    %183 = tpu.matmul %121, %182, %cst_89 {dimension_numbers = #tpu.dot_dimension_numbers<[1], [0], [0], [1], [0, 0, 1, 1], [], []>} : vector<16x128xf32>, vector<128x768xf32>, vector<16x768xf32> -> vector<16x768xf32>
    %c0_90 = arith.constant 0 : index
    %c0_91 = arith.constant 0 : index
    %184 = vector.load %arg22[%c0_90, %c0_91] : memref<128x768xf32, #tpu.memory_space<vmem>>, vector<128x768xf32>
    %cst_92 = arith.constant dense<0.000000e+00> : vector<8x768xf32>
    %185 = tpu.matmul %181, %184, %cst_92 {dimension_numbers = #tpu.dot_dimension_numbers<[1], [0], [0], [1], [0, 0, 1, 1], [], []>} : vector<8x128xf32>, vector<128x768xf32>, vector<8x768xf32> -> vector<8x768xf32>
    %186 = vector.extract_strided_slice %183 {offsets = [0, 0], sizes = [16, 256], strides = [1, 1]} : vector<16x768xf32> to vector<16x256xf32>
    %187 = vector.extract_strided_slice %183 {offsets = [0, 256], sizes = [16, 256], strides = [1, 1]} : vector<16x768xf32> to vector<16x256xf32>
    %188 = vector.extract_strided_slice %183 {offsets = [0, 512], sizes = [16, 256], strides = [1, 1]} : vector<16x768xf32> to vector<16x256xf32>
    %189 = vector.extract_strided_slice %185 {offsets = [0, 0], sizes = [8, 256], strides = [1, 1]} : vector<8x768xf32> to vector<8x256xf32>
    %190 = vector.extract_strided_slice %185 {offsets = [0, 256], sizes = [8, 256], strides = [1, 1]} : vector<8x768xf32> to vector<8x256xf32>
    %191 = vector.extract_strided_slice %185 {offsets = [0, 512], sizes = [8, 256], strides = [1, 1]} : vector<8x768xf32> to vector<8x256xf32>
    %c0_93 = arith.constant 0 : index
    %c0_94 = arith.constant 0 : index
    %192 = vector.load %arg23[%c0_93, %c0_94] : memref<256x128xf32, #tpu.memory_space<vmem>>, vector<256x128xf32>
    %c0_95 = arith.constant 0 : index
    %c0_96 = arith.constant 0 : index
    %193 = vector.load %arg24[%c0_95, %c0_96] : memref<1x128xf32, #tpu.memory_space<vmem>>, vector<1x128xf32>
    %c0_97 = arith.constant 0 : index
    %c0_98 = arith.constant 0 : index
    %194 = vector.load %arg25[%c0_97, %c0_98] : memref<1x1xf32, #tpu.memory_space<vmem>>, vector<1x1xf32>
    %195 = vector.extract_strided_slice %186 {offsets = [0, 0], sizes = [16, 128], strides = [1, 1]} : vector<16x256xf32> to vector<16x128xf32>
    %196 = vector.extract_strided_slice %190 {offsets = [0, 0], sizes = [8, 128], strides = [1, 1]} : vector<8x256xf32> to vector<8x128xf32>
    %197 = vector.extract_strided_slice %191 {offsets = [0, 0], sizes = [8, 128], strides = [1, 1]} : vector<8x256xf32> to vector<8x128xf32>
    %cst_99 = arith.constant dense<0.000000e+00> : vector<16x8xf32>
    %198 = tpu.matmul %195, %196, %cst_99 {dimension_numbers = #tpu.dot_dimension_numbers<[1], [1], [0], [0], [0, 0, 1, 0], [], []>} : vector<16x128xf32>, vector<8x128xf32>, vector<16x8xf32> -> vector<16x8xf32>
    %199 = arith.addf %198, %6 : vector<16x8xf32>
    %cst_100 = arith.constant dense<0xFF800000> : vector<16xf32>
    %200 = vector.multi_reduction <maximumf>, %199, %cst_100 [1] : vector<16x8xf32> to vector<16xf32>
    %201 = vector.shape_cast %200 : vector<16xf32> to vector<16x1xf32>
    %202 = vector.broadcast %201 : vector<16x1xf32> to vector<16x8xf32>
    %203 = arith.subf %199, %202 : vector<16x8xf32>
    %204 = math.exp %203 : vector<16x8xf32>
    %cst_101 = arith.constant dense<0.000000e+00> : vector<16xf32>
    %205 = vector.multi_reduction <add>, %204, %cst_101 [1] : vector<16x8xf32> to vector<16xf32>
    %206 = vector.shape_cast %205 : vector<16xf32> to vector<16x1xf32>
    %207 = tpu.reciprocal %206 : vector<16x1xf32> -> vector<16x1xf32>
    %208 = vector.broadcast %207 : vector<16x1xf32> to vector<16x8xf32>
    %209 = arith.mulf %204, %208 : vector<16x8xf32>
    %cst_102 = arith.constant dense<0.000000e+00> : vector<16x128xf32>
    %210 = tpu.matmul %209, %197, %cst_102 {dimension_numbers = #tpu.dot_dimension_numbers<[1], [0], [0], [1], [0, 0, 1, 1], [], []>} : vector<16x8xf32>, vector<8x128xf32>, vector<16x128xf32> -> vector<16x128xf32>
    %211 = vector.extract_strided_slice %186 {offsets = [0, 128], sizes = [16, 128], strides = [1, 1]} : vector<16x256xf32> to vector<16x128xf32>
    %212 = vector.extract_strided_slice %190 {offsets = [0, 128], sizes = [8, 128], strides = [1, 1]} : vector<8x256xf32> to vector<8x128xf32>
    %213 = vector.extract_strided_slice %191 {offsets = [0, 128], sizes = [8, 128], strides = [1, 1]} : vector<8x256xf32> to vector<8x128xf32>
    %cst_103 = arith.constant dense<0.000000e+00> : vector<16x8xf32>
    %214 = tpu.matmul %211, %212, %cst_103 {dimension_numbers = #tpu.dot_dimension_numbers<[1], [1], [0], [0], [0, 0, 1, 0], [], []>} : vector<16x128xf32>, vector<8x128xf32>, vector<16x8xf32> -> vector<16x8xf32>
    %215 = arith.addf %214, %6 : vector<16x8xf32>
    %cst_104 = arith.constant dense<0xFF800000> : vector<16xf32>
    %216 = vector.multi_reduction <maximumf>, %215, %cst_104 [1] : vector<16x8xf32> to vector<16xf32>
    %217 = vector.shape_cast %216 : vector<16xf32> to vector<16x1xf32>
    %218 = vector.broadcast %217 : vector<16x1xf32> to vector<16x8xf32>
    %219 = arith.subf %215, %218 : vector<16x8xf32>
    %220 = math.exp %219 : vector<16x8xf32>
    %cst_105 = arith.constant dense<0.000000e+00> : vector<16xf32>
    %221 = vector.multi_reduction <add>, %220, %cst_105 [1] : vector<16x8xf32> to vector<16xf32>
    %222 = vector.shape_cast %221 : vector<16xf32> to vector<16x1xf32>
    %223 = tpu.reciprocal %222 : vector<16x1xf32> -> vector<16x1xf32>
    %224 = vector.broadcast %223 : vector<16x1xf32> to vector<16x8xf32>
    %225 = arith.mulf %220, %224 : vector<16x8xf32>
    %cst_106 = arith.constant dense<0.000000e+00> : vector<16x128xf32>
    %226 = tpu.matmul %225, %213, %cst_106 {dimension_numbers = #tpu.dot_dimension_numbers<[1], [0], [0], [1], [0, 0, 1, 1], [], []>} : vector<16x8xf32>, vector<8x128xf32>, vector<16x128xf32> -> vector<16x128xf32>
    %227 = tpu.concatenate %210, %226 in 1 : vector<16x128xf32>, vector<16x128xf32> -> vector<16x256xf32>
    %228 = vector.broadcast %12 : vector<16x1xf32> to vector<16x256xf32>
    %229 = arith.mulf %227, %228 : vector<16x256xf32>
    %230 = arith.mulf %229, %229 : vector<16x256xf32>
    %231 = arith.mulf %229, %230 : vector<16x256xf32>
    %cst_107 = arith.constant 4.471500e-02 : f32
    %232 = vector.broadcast %cst_107 : f32 to vector<16x256xf32>
    %233 = arith.mulf %232, %231 : vector<16x256xf32>
    %234 = arith.addf %229, %233 : vector<16x256xf32>
    %cst_108 = arith.constant 0.797884583 : f32
    %235 = vector.broadcast %cst_108 : f32 to vector<16x256xf32>
    %236 = arith.mulf %235, %234 : vector<16x256xf32>
    %237 = math.tanh %236 : vector<16x256xf32>
    %cst_109 = arith.constant 1.000000e+00 : f32
    %238 = vector.broadcast %cst_109 : f32 to vector<16x256xf32>
    %239 = arith.addf %238, %237 : vector<16x256xf32>
    %cst_110 = arith.constant 5.000000e-01 : f32
    %240 = vector.broadcast %cst_110 : f32 to vector<16x256xf32>
    %241 = arith.mulf %240, %239 : vector<16x256xf32>
    %242 = arith.mulf %229, %241 : vector<16x256xf32>
    %cst_111 = arith.constant dense<0.000000e+00> : vector<16x128xf32>
    %243 = tpu.matmul %242, %192, %cst_111 {dimension_numbers = #tpu.dot_dimension_numbers<[1], [0], [0], [1], [0, 0, 1, 1], [], []>} : vector<16x256xf32>, vector<256x128xf32>, vector<16x128xf32> -> vector<16x128xf32>
    %244 = vector.broadcast %193 : vector<1x128xf32> to vector<16x128xf32>
    %245 = arith.addf %243, %244 : vector<16x128xf32>
    %246 = vector.broadcast %194 : vector<1x1xf32> to vector<16x128xf32>
    %247 = arith.mulf %246, %121 : vector<16x128xf32>
    %248 = arith.addf %245, %247 : vector<16x128xf32>
    %cst_112 = arith.constant 0.000000e+00 : f32
    %249 = vector.broadcast %cst_112 : f32 to vector<16x128xf32>
    %250 = arith.maximumf %248, %249 : vector<16x128xf32>
    %c0_113 = arith.constant 0 : index
    %c0_114 = arith.constant 0 : index
    %251 = vector.load %arg26[%c0_113, %c0_114] : memref<256x128xf32, #tpu.memory_space<vmem>>, vector<256x128xf32>
    %c0_115 = arith.constant 0 : index
    %c0_116 = arith.constant 0 : index
    %252 = vector.load %arg27[%c0_115, %c0_116] : memref<1x128xf32, #tpu.memory_space<vmem>>, vector<1x128xf32>
    %c0_117 = arith.constant 0 : index
    %c0_118 = arith.constant 0 : index
    %253 = vector.load %arg28[%c0_117, %c0_118] : memref<1x1xf32, #tpu.memory_space<vmem>>, vector<1x1xf32>
    %254 = vector.extract_strided_slice %189 {offsets = [0, 0], sizes = [8, 128], strides = [1, 1]} : vector<8x256xf32> to vector<8x128xf32>
    %255 = vector.extract_strided_slice %187 {offsets = [0, 0], sizes = [16, 128], strides = [1, 1]} : vector<16x256xf32> to vector<16x128xf32>
    %256 = vector.extract_strided_slice %188 {offsets = [0, 0], sizes = [16, 128], strides = [1, 1]} : vector<16x256xf32> to vector<16x128xf32>
    %cst_119 = arith.constant dense<0.000000e+00> : vector<8x16xf32>
    %257 = tpu.matmul %254, %255, %cst_119 {dimension_numbers = #tpu.dot_dimension_numbers<[1], [1], [0], [0], [0, 0, 1, 0], [], []>} : vector<8x128xf32>, vector<16x128xf32>, vector<8x16xf32> -> vector<8x16xf32>
    %258 = arith.addf %257, %17 : vector<8x16xf32>
    %cst_120 = arith.constant dense<0xFF800000> : vector<8xf32>
    %259 = vector.multi_reduction <maximumf>, %258, %cst_120 [1] : vector<8x16xf32> to vector<8xf32>
    %260 = vector.shape_cast %259 : vector<8xf32> to vector<8x1xf32>
    %261 = vector.broadcast %260 : vector<8x1xf32> to vector<8x16xf32>
    %262 = arith.subf %258, %261 : vector<8x16xf32>
    %263 = math.exp %262 : vector<8x16xf32>
    %cst_121 = arith.constant dense<0.000000e+00> : vector<8xf32>
    %264 = vector.multi_reduction <add>, %263, %cst_121 [1] : vector<8x16xf32> to vector<8xf32>
    %265 = vector.shape_cast %264 : vector<8xf32> to vector<8x1xf32>
    %266 = tpu.reciprocal %265 : vector<8x1xf32> -> vector<8x1xf32>
    %267 = vector.broadcast %266 : vector<8x1xf32> to vector<8x16xf32>
    %268 = arith.mulf %263, %267 : vector<8x16xf32>
    %cst_122 = arith.constant dense<0.000000e+00> : vector<8x128xf32>
    %269 = tpu.matmul %268, %256, %cst_122 {dimension_numbers = #tpu.dot_dimension_numbers<[1], [0], [0], [1], [0, 0, 1, 1], [], []>} : vector<8x16xf32>, vector<16x128xf32>, vector<8x128xf32> -> vector<8x128xf32>
    %270 = vector.extract_strided_slice %189 {offsets = [0, 128], sizes = [8, 128], strides = [1, 1]} : vector<8x256xf32> to vector<8x128xf32>
    %271 = vector.extract_strided_slice %187 {offsets = [0, 128], sizes = [16, 128], strides = [1, 1]} : vector<16x256xf32> to vector<16x128xf32>
    %272 = vector.extract_strided_slice %188 {offsets = [0, 128], sizes = [16, 128], strides = [1, 1]} : vector<16x256xf32> to vector<16x128xf32>
    %cst_123 = arith.constant dense<0.000000e+00> : vector<8x16xf32>
    %273 = tpu.matmul %270, %271, %cst_123 {dimension_numbers = #tpu.dot_dimension_numbers<[1], [1], [0], [0], [0, 0, 1, 0], [], []>} : vector<8x128xf32>, vector<16x128xf32>, vector<8x16xf32> -> vector<8x16xf32>
    %274 = arith.addf %273, %17 : vector<8x16xf32>
    %cst_124 = arith.constant dense<0xFF800000> : vector<8xf32>
    %275 = vector.multi_reduction <maximumf>, %274, %cst_124 [1] : vector<8x16xf32> to vector<8xf32>
    %276 = vector.shape_cast %275 : vector<8xf32> to vector<8x1xf32>
    %277 = vector.broadcast %276 : vector<8x1xf32> to vector<8x16xf32>
    %278 = arith.subf %274, %277 : vector<8x16xf32>
    %279 = math.exp %278 : vector<8x16xf32>
    %cst_125 = arith.constant dense<0.000000e+00> : vector<8xf32>
    %280 = vector.multi_reduction <add>, %279, %cst_125 [1] : vector<8x16xf32> to vector<8xf32>
    %281 = vector.shape_cast %280 : vector<8xf32> to vector<8x1xf32>
    %282 = tpu.reciprocal %281 : vector<8x1xf32> -> vector<8x1xf32>
    %283 = vector.broadcast %282 : vector<8x1xf32> to vector<8x16xf32>
    %284 = arith.mulf %279, %283 : vector<8x16xf32>
    %cst_126 = arith.constant dense<0.000000e+00> : vector<8x128xf32>
    %285 = tpu.matmul %284, %272, %cst_126 {dimension_numbers = #tpu.dot_dimension_numbers<[1], [0], [0], [1], [0, 0, 1, 1], [], []>} : vector<8x16xf32>, vector<16x128xf32>, vector<8x128xf32> -> vector<8x128xf32>
    %286 = tpu.concatenate %269, %285 in 1 : vector<8x128xf32>, vector<8x128xf32> -> vector<8x256xf32>
    %287 = vector.broadcast %23 : vector<8x1xf32> to vector<8x256xf32>
    %288 = arith.mulf %286, %287 : vector<8x256xf32>
    %289 = arith.mulf %288, %288 : vector<8x256xf32>
    %290 = arith.mulf %288, %289 : vector<8x256xf32>
    %cst_127 = arith.constant 4.471500e-02 : f32
    %291 = vector.broadcast %cst_127 : f32 to vector<8x256xf32>
    %292 = arith.mulf %291, %290 : vector<8x256xf32>
    %293 = arith.addf %288, %292 : vector<8x256xf32>
    %cst_128 = arith.constant 0.797884583 : f32
    %294 = vector.broadcast %cst_128 : f32 to vector<8x256xf32>
    %295 = arith.mulf %294, %293 : vector<8x256xf32>
    %296 = math.tanh %295 : vector<8x256xf32>
    %cst_129 = arith.constant 1.000000e+00 : f32
    %297 = vector.broadcast %cst_129 : f32 to vector<8x256xf32>
    %298 = arith.addf %297, %296 : vector<8x256xf32>
    %cst_130 = arith.constant 5.000000e-01 : f32
    %299 = vector.broadcast %cst_130 : f32 to vector<8x256xf32>
    %300 = arith.mulf %299, %298 : vector<8x256xf32>
    %301 = arith.mulf %288, %300 : vector<8x256xf32>
    %cst_131 = arith.constant dense<0.000000e+00> : vector<8x128xf32>
    %302 = tpu.matmul %301, %251, %cst_131 {dimension_numbers = #tpu.dot_dimension_numbers<[1], [0], [0], [1], [0, 0, 1, 1], [], []>} : vector<8x256xf32>, vector<256x128xf32>, vector<8x128xf32> -> vector<8x128xf32>
    %303 = vector.broadcast %252 : vector<1x128xf32> to vector<8x128xf32>
    %304 = arith.addf %302, %303 : vector<8x128xf32>
    %305 = vector.broadcast %253 : vector<1x1xf32> to vector<8x128xf32>
    %306 = arith.mulf %305, %181 : vector<8x128xf32>
    %307 = arith.addf %304, %306 : vector<8x128xf32>
    %cst_132 = arith.constant 0.000000e+00 : f32
    %308 = vector.broadcast %cst_132 : f32 to vector<8x128xf32>
    %309 = arith.maximumf %307, %308 : vector<8x128xf32>
    %c0_133 = arith.constant 0 : index
    %c0_134 = arith.constant 0 : index
    %310 = vector.load %arg29[%c0_133, %c0_134] : memref<128x512xf32, #tpu.memory_space<vmem>>, vector<128x512xf32>
    %cst_135 = arith.constant dense<0.000000e+00> : vector<16x512xf32>
    %311 = tpu.matmul %250, %310, %cst_135 {dimension_numbers = #tpu.dot_dimension_numbers<[1], [0], [0], [1], [0, 0, 1, 1], [], []>} : vector<16x128xf32>, vector<128x512xf32>, vector<16x512xf32> -> vector<16x512xf32>
    %c0_136 = arith.constant 0 : index
    %c0_137 = arith.constant 0 : index
    %312 = vector.load %arg30[%c0_136, %c0_137] : memref<128x256xf32, #tpu.memory_space<vmem>>, vector<128x256xf32>
    %cst_138 = arith.constant dense<0.000000e+00> : vector<8x256xf32>
    %313 = tpu.matmul %309, %312, %cst_138 {dimension_numbers = #tpu.dot_dimension_numbers<[1], [0], [0], [1], [0, 0, 1, 1], [], []>} : vector<8x128xf32>, vector<128x256xf32>, vector<8x256xf32> -> vector<8x256xf32>
    %314 = vector.extract_strided_slice %311 {offsets = [0, 0], sizes = [16, 256], strides = [1, 1]} : vector<16x512xf32> to vector<16x256xf32>
    %315 = vector.extract_strided_slice %311 {offsets = [0, 256], sizes = [16, 256], strides = [1, 1]} : vector<16x512xf32> to vector<16x256xf32>
    %c0_139 = arith.constant 0 : index
    %c0_140 = arith.constant 0 : index
    %316 = vector.load %arg31[%c0_139, %c0_140] : memref<256x128xf32, #tpu.memory_space<vmem>>, vector<256x128xf32>
    %c0_141 = arith.constant 0 : index
    %c0_142 = arith.constant 0 : index
    %317 = vector.load %arg32[%c0_141, %c0_142] : memref<1x128xf32, #tpu.memory_space<vmem>>, vector<1x128xf32>
    %c0_143 = arith.constant 0 : index
    %c0_144 = arith.constant 0 : index
    %318 = vector.load %arg33[%c0_143, %c0_144] : memref<1x1xf32, #tpu.memory_space<vmem>>, vector<1x1xf32>
    %319 = vector.extract_strided_slice %313 {offsets = [0, 0], sizes = [8, 128], strides = [1, 1]} : vector<8x256xf32> to vector<8x128xf32>
    %320 = vector.extract_strided_slice %314 {offsets = [0, 0], sizes = [16, 128], strides = [1, 1]} : vector<16x256xf32> to vector<16x128xf32>
    %321 = vector.extract_strided_slice %315 {offsets = [0, 0], sizes = [16, 128], strides = [1, 1]} : vector<16x256xf32> to vector<16x128xf32>
    %cst_145 = arith.constant dense<0.000000e+00> : vector<8x16xf32>
    %322 = tpu.matmul %319, %320, %cst_145 {dimension_numbers = #tpu.dot_dimension_numbers<[1], [1], [0], [0], [0, 0, 1, 0], [], []>} : vector<8x128xf32>, vector<16x128xf32>, vector<8x16xf32> -> vector<8x16xf32>
    %cst_146 = arith.constant dense<0xFF800000> : vector<8xf32>
    %323 = vector.multi_reduction <maximumf>, %322, %cst_146 [1] : vector<8x16xf32> to vector<8xf32>
    %324 = vector.shape_cast %323 : vector<8xf32> to vector<8x1xf32>
    %325 = vector.broadcast %324 : vector<8x1xf32> to vector<8x16xf32>
    %326 = arith.subf %322, %325 : vector<8x16xf32>
    %327 = math.exp %326 : vector<8x16xf32>
    %cst_147 = arith.constant dense<0.000000e+00> : vector<8xf32>
    %328 = vector.multi_reduction <add>, %327, %cst_147 [1] : vector<8x16xf32> to vector<8xf32>
    %329 = vector.shape_cast %328 : vector<8xf32> to vector<8x1xf32>
    %330 = tpu.reciprocal %329 : vector<8x1xf32> -> vector<8x1xf32>
    %331 = vector.broadcast %330 : vector<8x1xf32> to vector<8x16xf32>
    %332 = arith.mulf %327, %331 : vector<8x16xf32>
    %cst_148 = arith.constant dense<0.000000e+00> : vector<8x128xf32>
    %333 = tpu.matmul %332, %321, %cst_148 {dimension_numbers = #tpu.dot_dimension_numbers<[1], [0], [0], [1], [0, 0, 1, 1], [], []>} : vector<8x16xf32>, vector<16x128xf32>, vector<8x128xf32> -> vector<8x128xf32>
    %334 = vector.extract_strided_slice %313 {offsets = [0, 128], sizes = [8, 128], strides = [1, 1]} : vector<8x256xf32> to vector<8x128xf32>
    %335 = vector.extract_strided_slice %314 {offsets = [0, 128], sizes = [16, 128], strides = [1, 1]} : vector<16x256xf32> to vector<16x128xf32>
    %336 = vector.extract_strided_slice %315 {offsets = [0, 128], sizes = [16, 128], strides = [1, 1]} : vector<16x256xf32> to vector<16x128xf32>
    %cst_149 = arith.constant dense<0.000000e+00> : vector<8x16xf32>
    %337 = tpu.matmul %334, %335, %cst_149 {dimension_numbers = #tpu.dot_dimension_numbers<[1], [1], [0], [0], [0, 0, 1, 0], [], []>} : vector<8x128xf32>, vector<16x128xf32>, vector<8x16xf32> -> vector<8x16xf32>
    %cst_150 = arith.constant dense<0xFF800000> : vector<8xf32>
    %338 = vector.multi_reduction <maximumf>, %337, %cst_150 [1] : vector<8x16xf32> to vector<8xf32>
    %339 = vector.shape_cast %338 : vector<8xf32> to vector<8x1xf32>
    %340 = vector.broadcast %339 : vector<8x1xf32> to vector<8x16xf32>
    %341 = arith.subf %337, %340 : vector<8x16xf32>
    %342 = math.exp %341 : vector<8x16xf32>
    %cst_151 = arith.constant dense<0.000000e+00> : vector<8xf32>
    %343 = vector.multi_reduction <add>, %342, %cst_151 [1] : vector<8x16xf32> to vector<8xf32>
    %344 = vector.shape_cast %343 : vector<8xf32> to vector<8x1xf32>
    %345 = tpu.reciprocal %344 : vector<8x1xf32> -> vector<8x1xf32>
    %346 = vector.broadcast %345 : vector<8x1xf32> to vector<8x16xf32>
    %347 = arith.mulf %342, %346 : vector<8x16xf32>
    %cst_152 = arith.constant dense<0.000000e+00> : vector<8x128xf32>
    %348 = tpu.matmul %347, %336, %cst_152 {dimension_numbers = #tpu.dot_dimension_numbers<[1], [0], [0], [1], [0, 0, 1, 1], [], []>} : vector<8x16xf32>, vector<16x128xf32>, vector<8x128xf32> -> vector<8x128xf32>
    %349 = tpu.concatenate %333, %348 in 1 : vector<8x128xf32>, vector<8x128xf32> -> vector<8x256xf32>
    %350 = arith.mulf %349, %349 : vector<8x256xf32>
    %351 = arith.mulf %349, %350 : vector<8x256xf32>
    %cst_153 = arith.constant 4.471500e-02 : f32
    %352 = vector.broadcast %cst_153 : f32 to vector<8x256xf32>
    %353 = arith.mulf %352, %351 : vector<8x256xf32>
    %354 = arith.addf %349, %353 : vector<8x256xf32>
    %cst_154 = arith.constant 0.797884583 : f32
    %355 = vector.broadcast %cst_154 : f32 to vector<8x256xf32>
    %356 = arith.mulf %355, %354 : vector<8x256xf32>
    %357 = math.tanh %356 : vector<8x256xf32>
    %cst_155 = arith.constant 1.000000e+00 : f32
    %358 = vector.broadcast %cst_155 : f32 to vector<8x256xf32>
    %359 = arith.addf %358, %357 : vector<8x256xf32>
    %cst_156 = arith.constant 5.000000e-01 : f32
    %360 = vector.broadcast %cst_156 : f32 to vector<8x256xf32>
    %361 = arith.mulf %360, %359 : vector<8x256xf32>
    %362 = arith.mulf %349, %361 : vector<8x256xf32>
    %cst_157 = arith.constant dense<0.000000e+00> : vector<8x128xf32>
    %363 = tpu.matmul %362, %316, %cst_157 {dimension_numbers = #tpu.dot_dimension_numbers<[1], [0], [0], [1], [0, 0, 1, 1], [], []>} : vector<8x256xf32>, vector<256x128xf32>, vector<8x128xf32> -> vector<8x128xf32>
    %364 = vector.broadcast %317 : vector<1x128xf32> to vector<8x128xf32>
    %365 = arith.addf %363, %364 : vector<8x128xf32>
    %366 = vector.broadcast %318 : vector<1x1xf32> to vector<8x128xf32>
    %367 = arith.mulf %366, %309 : vector<8x128xf32>
    %368 = arith.addf %365, %367 : vector<8x128xf32>
    %cst_158 = arith.constant 0.000000e+00 : f32
    %369 = vector.broadcast %cst_158 : f32 to vector<8x128xf32>
    %370 = arith.maximumf %368, %369 : vector<8x128xf32>
    %c0_159 = arith.constant 0 : index
    %c0_160 = arith.constant 0 : index
    %371 = vector.load %arg34[%c0_159, %c0_160] : memref<128x128xf32, #tpu.memory_space<vmem>>, vector<128x128xf32>
    %cst_161 = arith.constant dense<0.000000e+00> : vector<8x128xf32>
    %372 = tpu.matmul %370, %371, %cst_161 {dimension_numbers = #tpu.dot_dimension_numbers<[1], [0], [0], [1], [0, 0, 1, 1], [], []>} : vector<8x128xf32>, vector<128x128xf32>, vector<8x128xf32> -> vector<8x128xf32>
    %c0_162 = arith.constant 0 : index
    %c0_163 = arith.constant 0 : index
    %373 = vector.load %arg35[%c0_162, %c0_163] : memref<1x128xf32, #tpu.memory_space<vmem>>, vector<1x128xf32>
    %374 = vector.broadcast %373 : vector<1x128xf32> to vector<8x128xf32>
    %375 = arith.addf %372, %374 : vector<8x128xf32>
    %c0_164 = arith.constant 0 : index
    %c0_165 = arith.constant 0 : index
    %376 = vector.load %arg36[%c0_164, %c0_165] : memref<8x128xf32, #tpu.memory_space<vmem>>, vector<8x128xf32>
    tpu.vector_store %arg36[%c0_164, %c0_165], %375 {strides = array<i32>} : memref<8x128xf32, #tpu.memory_space<vmem>>, vector<8x128xf32>,
    %c0_166 = arith.constant 0 : index
    %c0_167 = arith.constant 0 : index
    %377 = vector.load %arg37[%c0_166, %c0_167] : memref<16x128xf32, #tpu.memory_space<vmem>>, vector<16x128xf32>
    tpu.vector_store %arg37[%c0_166, %c0_167], %250 {strides = array<i32>} : memref<16x128xf32, #tpu.memory_space<vmem>>, vector<16x128xf32>,
    return
  }
}

</mosaic_0001>

<bundles_post_ra>
// kernel: gnn_agent_forward.1
= control target key start
LH: loop header
LB: loop body
LE: loop exit
PB: predicated region body
PF: predicated region fallthrough
CT: control target
= control target key end

     0   :  { %s7208_s6 = smov 1   ;;  %s7209_s10 = smov 2   ;;  %s8060_s0 = inlined_call_operand.smem [shape: u32[38], index: -1, kind: input, shape index: {}] }
   0x1   :  { %s7290_s5 = sld [smem:[%s8060_s0]]   ;;  %s7210_s14 = smov 3  }
   0x2   :  { %s7295_s9 = sld [smem:[%s8060_s0 + %s7208_s6]]   ;;  %s7211_s18 = smov 4  }
   0x3   :  { %s7300_s13 = sld [smem:[%s8060_s0 + %s7209_s10]]   ;;  %s7212_s22 = smov 5  }
   0x4   :  { %s7305_s17 = sld [smem:[%s8060_s0 + %s7210_s14]]   ;;  %s7213_s26 = smov 6  }
   0x5   :  { %s7310_s21 = sld [smem:[%s8060_s0 + %s7211_s18]]   ;;  %s7214_s30 = smov 7  }
   0x6   :  { %s7315_s25 = sld [smem:[%s8060_s0 + %s7212_s22]]   ;;  %s7215_s4 = smov 8  }
   0x7   :  { %8075 = sst [smem:[#allocation57_spill]] %s7290_s5  ;;  %s7216_s10 = smov 9  }
   0x8   :  { %8076 = sst [smem:[#allocation58_spill]] %s7295_s9  ;;  %s7217_s15 = smov 10  }
   0x9   :  { %8077 = sst [smem:[#allocation59_spill]] %s7300_s13  ;;  %s7218_s20 = smov 11  }
   0xa   :  { %8078 = sst [smem:[#allocation60_spill]] %s7305_s17  ;;  %s7220_s1 = smov 13  }
   0xb   :  { %8079 = sst [smem:[#allocation61_spill]] %s7310_s21  ;;  %s7221_s7 = smov 14  }
   0xc   :  { %s7320_s29 = sld [smem:[%s8060_s0 + %s7213_s26]]   ;;  %s7219_s26 = smov 12  }
   0xd   :  { %s7325_s3 = sld [smem:[%s8060_s0 + %s7214_s30]]   ;;  %s7223_s22 = smov 16  }
   0xe   :  { %s7330_s8 = sld [smem:[%s8060_s0 + %s7215_s4]]   ;;  %s7224_s28 = smov 17  }
   0xf   :  { %s7335_s14 = sld [smem:[%s8060_s0 + %s7216_s10]]   ;;  %s7225_s10 = smov 18  }
  0x10   :  { %s7340_s19 = sld [smem:[%s8060_s0 + %s7217_s15]]   ;;  %s7222_s15 = smov 15  }
  0x11   :  { %s7345_s24 = sld [smem:[%s8060_s0 + %s7218_s20]]   ;;  %s7226_s16 = smov 19  }
  0x12   :  { %8080 = sst [smem:[#allocation62_spill]] %s7320_s29  ;;  %s7227_s23 = smov 21  }
  0x13   :  { %s7350_s30 = sld [smem:[%s8060_s0 + %s7219_s26]]   ;;  %s7236_s5 = smov 32  }
  0x14   :  { %8081 = sst [smem:[#allocation63_spill]] %s7330_s8  ;;  %s7237_s13 = smov 34  }
  0x15   :  { %8082 = sst [smem:[#allocation64_spill]] %s7335_s14 }
  0x16   :  { %s7355_s6 = sld [smem:[%s8060_s0 + %s7220_s1]]   ;;  %s7228_s1 = smov 22  }
  0x17   :  { %8083 = sst [smem:[#allocation65_spill]] %s7345_s24  ;;  %s7243_s24 = smov 28  }
  0x18   :  { %s7360_s12 = sld [smem:[%s8060_s0 + %s7221_s7]]   ;;  %s7233_s7 = smov 29  }
  0x19   :  { %s7365_s20 = sld [smem:[%s8060_s0 + %s7222_s15]]   ;;  %s7242_s15 = smov 25  }
  0x1a   :  { %s7370_s27 = sld [smem:[%s8060_s0 + %s7223_s22]]  }
  0x1b   :  { %s5011_s4 = sld [smem:[%s8060_s0 + %s7224_s28]]  }
  0x1c   :  { %8084 = sst [smem:[#allocation66_spill]] %s7355_s6 }
  0x1d   :  { %s7378_s8 = sld [smem:[%s8060_s0 + %s7225_s10]]   ;;  %s7229_s10 = smov 23  }
  0x1e   :  { %s7388_s21 = sld [smem:[%s8060_s0 + %s7227_s23]]   ;;  %s7231_s23 = smov 26  }
  0x1f   :  { %8085 = sst [smem:[#allocation67_spill]] %s7365_s20 }
  0x20   :  { %8086 = sst [smem:[#allocation68_spill]] %s7370_s27 }
  0x21   :  { %s7383_s20 = sld [smem:[%s8060_s0 + %s7226_s16]]   ;;  %s7230_s16 = smov 24   ;;  %v81_v0 = vstv %s5011_s4 }
  0x22   :  { %s7393_s17 = sld [smem:[%s8060_s0 + %s7228_s1]]   ;;  %82 = vst [vmem:[#allocation2] sm:$0x1] %v81_v0  ;;  %s7232_s1 = smov 27  }
  0x23   :  { %s7398_s9 = sld [smem:[%s8060_s0 + %s7229_s10]]   ;;  %s7234_s4 = smov 30  }
  0x24   :  { %s7403_s29 = sld [smem:[%s8060_s0 + %s7230_s16]]  }
  0x25   :  { %s7408_s28 = sld [smem:[%s8060_s0 + %s7231_s23]]   ;;  %s7235_s23 = smov 31  }
  0x26   :  { %s7413_s10 = sld [smem:[%s8060_s0 + %s7232_s1]]  }
  0x27   :  { %8087 = sst [smem:[#allocation69_spill]] %s7383_s20 }
  0x28   :  { %8088 = sst [smem:[#allocation70_spill]] %s7393_s17 }
  0x29   :  { %s7418_s16 = sld [smem:[%s8060_s0 + %s7233_s7]]  }
  0x2a   :  { %8089 = sst [smem:[#allocation71_spill]] %s7403_s29  ;;  %s7239_s29 = smov 36  }
  0x2b   :  { %s7423_s22 = sld [smem:[%s8060_s0 + %s7234_s4]]   ;;  %s7238_s4 = smov 35  }
  0x2c   :  { %8090 = sst [smem:[#allocation72_spill]] %s7413_s10 }
  0x2d   :  { %s7428_s17 = sld [smem:[%s8060_s0 + %s7235_s23]]  }
  0x2e   :  { %s7433_s10 = sld [smem:[%s8060_s0 + %s7236_s5]]   ;;  %s7240_s5 = smov 37  }
  0x2f   :  { %s7438_s20 = sld [smem:[%s8060_s0 + %s7237_s13]]   ;;  %s7241_s13 = smov 20  }
  0x30   :  { %s7448_s27 = sld [smem:[%s8060_s0 + %s7239_s29]]  }
  0x31   :  { %8091 = sst [smem:[#allocation73_spill]] %s7423_s22 }
  0x32   :  { %s7443_s22 = sld [smem:[%s8060_s0 + %s7238_s4]]  }
  0x33   :  { %s5014_s6 = sld [smem:[%s8060_s0 + %s7241_s13]]  }
  0x34   :  { %8092 = sst [smem:[#allocation74_spill]] %s7433_s10 }
  0x35   :  { %s7453_s10 = sld [smem:[%s8060_s0 + %s7240_s5]]  }
  0x36   :  { %8094 = sst [smem:[#allocation76_spill]] %s7448_s27  ;;  %s7244_s27 = smov 33  }
  0x37   :  { %s5022_s26 = sld [smem:[%s8060_s0 + %s7243_s24]]  }
  0x38   :  { %8093 = sst [smem:[#allocation75_spill]] %s7443_s22 }
  0x39   :  { %s5019_s22 = sld [smem:[%s8060_s0 + %s7242_s15]]   ;;  %v83_v1 = vstv %s5014_s6 }
  0x3a   :  { %s5027_s5 = sld [smem:[%s8060_s0 + %s7244_s27]]   ;;  %84 = vst [vmem:[#allocation3] sm:$0x1] %v83_v1 }
  0x3d   :  { %v87_v3 = vstv %s5022_s26 }
  0x3e   :  { %88 = vst [vmem:[#allocation5] sm:$0x1] %v87_v3 }
  0x3f   :  { %v85_v2 = vstv %s5019_s22 }
  0x40   :  { %86 = vst [vmem:[#allocation4] sm:$0x1] %v85_v2  ;;  %v89_v4 = vstv %s5027_s5 }
  0x41   :  { %90 = vst [vmem:[#allocation6] sm:$0x1] %v89_v4 }
  0x42   :  { %91 = vsyncpa [#allocation8], 0 }
  0x43   :  { %92 = vsyncpa [#allocation11], 0 }
  0x44   :  { %93 = vsyncpa [#allocation14], 0 }
  0x45   :  { %94 = vsyncpa [#allocation17], 0 }
  0x46   :  { %95 = vsyncpa [#allocation20], 0 }
  0x47   :  { %96 = vsyncpa [#allocation23], 0 }
  0x48   :  { %97 = vsyncpa [#allocation26], 0 }
  0x49   :  { %98 = vsyncpa [#allocation29], 0 }
  0x4a   :  { %99 = vsyncpa [#allocation32], 0 }
  0x4b   :  { %100 = vsyncpa [#allocation35], 0 }
  0x4c   :  { %101 = vsyncpa [#allocation38], 0 }
  0x4d   :  { %102 = vsyncpa [#allocation41], 0 }
  0x4e   :  { %103 = vsyncpa [#allocation9], 0  ;;  %s7245_s0 = smov [#allocation10]   ;;  %s7246_s24 = smov [#allocation13]  }
  0x4f   :  { %s133_s14 = sshll.u32 %s7245_s0, 4  ;;  %s160_s6 = sshll.u32 %s7246_s24, 4  ;;  %s134_s14 = int_to_ptr.vmem [resolvable:$true] %s133_s14  ;;  %s7467_s6 = int_to_ptr.vmem [resolvable:$true] %s160_s6 }
  0x50   :  { %s6654_s27 = scalar_lea.hbm %s7325_s3, 2048 }
  0x51   :  { %p6655_p0 = scmp.ne.s32.totalorder %s7325_s3, %s6654_s27  ;;  %p6658_p1 = scmp.lt.u32.totalorder %s6654_s27, %s7325_s3 }
  0x53   :  { %p6660_p2 = pnand %p6658_p1, %p6655_p0 }
  0x55   :  { %6663 = shalt.err (!%p6660_p2)
}
  0x56   :  { %s6664_s22 = scalar_lea.vmem %s134_s14, 2048  ;;  %p6669_p4 = scmp.lt.s32.totalorder %s134_s14, %s134_s14 }
  0x57   :  { %p6665_p3 = scmp.ne.s32.totalorder %s134_s14, %s6664_s22  ;;  %p6670_p5 = scmp.lt.s32.totalorder %s6664_s22, %s6664_s22 }
  0x59   :  { %p6671_p6 = por %p6670_p5, %p6669_p4 }
  0x5b   :  { %p6672_p7 = pnand %p6671_p6, %p6665_p3 }
  0x5d   :  { %6675 = shalt.err (!%p6672_p7)
}
  0x5e   :  { %s7247_s2 = smov 128   ;;  %s7248_s13 = smov 8  }
  0x5f   :  { %139 = dma.hbm_to_vmem [thread:$0]  %s7325_s3, 2048, %s134_s14, [#allocation11], %s7247_s2, %s7247_s2, %s7248_s13  }
  0x60   :  { %s6676_s7 = scalar_lea.hbm %s7340_s19, 16 }
  0x61   :  { %p6677_p8 = scmp.ne.s32.totalorder %s7340_s19, %s6676_s7  ;;  %p6680_p9 = scmp.lt.u32.totalorder %s6676_s7, %s7340_s19 }
  0x63   :  { %p6682_p10 = pnand %p6680_p9, %p6677_p8 }
  0x65   :  { %6685 = shalt.err (!%p6682_p10)
}
  0x66   :  { %s6686_s11 = scalar_lea.vmem %s7467_s6, 16  ;;  %s6690_s15 = scalar_lea.vmem %s7467_s6, 32 }
  0x67   :  { %p6687_p11 = scmp.ne.s32.totalorder %s7467_s6, %s6686_s11  ;;  %p6691_p12 = scmp.lt.s32.totalorder %s7467_s6, %s7467_s6 }
  0x68   :  { %p6692_p13 = scmp.lt.s32.totalorder %s6690_s15, %s6686_s11 }
  0x6a   :  { %p6693_p0 = por %p6692_p13, %p6691_p12 }
  0x6c   :  { %p6694_p1 = pnand %p6693_p0, %p6687_p11 }
  0x6e   :  { %6697 = shalt.err (!%p6694_p1)
}
  0x6f   :  { %163 = dma.hbm_to_vmem [thread:$0]  %s7340_s19, 16, %s7467_s6, [#allocation14]  }
  0x70   :  { %s7249_s3 = smov [#allocation16]   ;;  %s6698_s18 = scalar_lea.hbm %s7350_s30, 16 }
  0x71   :  { %s182_s4 = sshll.u32 %s7249_s3, 4  ;;  %p6699_p2 = scmp.ne.s32.totalorder %s7350_s30, %s6698_s18  ;;  %s183_s4 = int_to_ptr.vmem [resolvable:$true] %s182_s4 }
  0x72   :  { %p6702_p3 = scmp.lt.u32.totalorder %s6698_s18, %s7350_s30 }
  0x74   :  { %p6704_p4 = pnand %p6702_p3, %p6699_p2 }
  0x76   :  { %6707 = shalt.err (!%p6704_p4)
}
  0x77   :  { %s6708_s23 = scalar_lea.vmem %s183_s4, 16  ;;  %s6712_s29 = scalar_lea.vmem %s183_s4, 32 }
  0x78   :  { %p6709_p5 = scmp.ne.s32.totalorder %s183_s4, %s6708_s23  ;;  %p6713_p6 = scmp.lt.s32.totalorder %s183_s4, %s183_s4 }
  0x79   :  { %p6714_p7 = scmp.lt.s32.totalorder %s6712_s29, %s6708_s23 }
  0x7b   :  { %p6715_p8 = por %p6714_p7, %p6713_p6 }
  0x7d   :  { %p6716_p9 = pnand %p6715_p8, %p6709_p5 }
  0x7f   :  { %6719 = shalt.err (!%p6716_p9)
}
  0x80   :  { %185 = dma.hbm_to_vmem [thread:$0]  %s7350_s30, 16, %s183_s4, [#allocation17]  }
  0x81   :  { %s7250_s19 = smov [#allocation19]   ;;  %s7251_s1 = smov [#allocation22]  }
  0x82   :  { %s203_s26 = sshll.u32 %s7250_s19, 4  ;;  %s229_s5 = sshll.u32 %s7251_s1, 4  ;;  %s204_s26 = int_to_ptr.vmem [resolvable:$true] %s203_s26  ;;  %s230_s5 = int_to_ptr.vmem [resolvable:$true] %s229_s5 }
  0x83   :  { %s6720_s0 = scalar_lea.hbm %s7360_s12, 12288 }
  0x84   :  { %p6721_p10 = scmp.ne.s32.totalorder %s7360_s12, %s6720_s0  ;;  %p6724_p11 = scmp.lt.u32.totalorder %s6720_s0, %s7360_s12 }
  0x86   :  { %p6726_p12 = pnand %p6724_p11, %p6721_p10 }
  0x88   :  { %6729 = shalt.err (!%p6726_p12)
}
  0x89   :  { %s6730_s14 = scalar_lea.vmem %s204_s26, 12288  ;;  %p6735_p0 = scmp.lt.s32.totalorder %s204_s26, %s204_s26 }
  0x8a   :  { %p6731_p13 = scmp.ne.s32.totalorder %s204_s26, %s6730_s14  ;;  %p6736_p1 = scmp.lt.s32.totalorder %s6730_s14, %s6730_s14 }
  0x8c   :  { %p6737_p2 = por %p6736_p1, %p6735_p0 }
  0x8e   :  { %p6738_p3 = pnand %p6737_p2, %p6731_p13 }
  0x90   :  { %6741 = shalt.err (!%p6738_p3)
}
  0x91   :  { %s7252_s24 = smov 768   ;;  %s7253_s30 = smov 48  }
  0x92   :  { %209 = dma.hbm_to_vmem [thread:$0]  %s7360_s12, 12288, %s204_s26, [#allocation20], %s7252_s24, %s7252_s24, %s7253_s30  }
  0x93   :  { %s6742_s6 = scalar_lea.hbm %s7378_s8, 4096 }
  0x94   :  { %p6743_p4 = scmp.ne.s32.totalorder %s7378_s8, %s6742_s6  ;;  %p6746_p5 = scmp.lt.u32.totalorder %s6742_s6, %s7378_s8 }
  0x96   :  { %p6748_p6 = pnand %p6746_p5, %p6743_p4 }
  0x98   :  { %6751 = shalt.err (!%p6748_p6)
}
  0x99   :  { %s6752_s27 = scalar_lea.vmem %s230_s5, 4096  ;;  %p6757_p8 = scmp.lt.s32.totalorder %s230_s5, %s230_s5 }
  0x9a   :  { %p6753_p7 = scmp.ne.s32.totalorder %s230_s5, %s6752_s27  ;;  %p6758_p9 = scmp.lt.s32.totalorder %s6752_s27, %s6752_s27 }
  0x9c   :  { %p6759_p10 = por %p6758_p9, %p6757_p8 }
  0x9e   :  { %p6760_p11 = pnand %p6759_p10, %p6753_p7 }
  0xa0   :  { %6763 = shalt.err (!%p6760_p11)
}
  0xa1   :  { %235 = dma.hbm_to_vmem [thread:$0]  %s7378_s8, 4096, %s230_s5, [#allocation23], %s7247_s2, %s7247_s2, %s7248_s13  }
  0xa2   :  { %s7254_s12 = smov [#allocation25]   ;;  %s7255_s7 = smov [#allocation28]  }
  0xa3   :  { %s253_s22 = sshll.u32 %s7254_s12, 4  ;;  %s277_s11 = sshll.u32 %s7255_s7, 4  ;;  %s254_s22 = int_to_ptr.vmem [resolvable:$true] %s253_s22  ;;  %s278_s11 = int_to_ptr.vmem [resolvable:$true] %s277_s11 }
  0xa4   :  { %s6764_s15 = scalar_lea.hbm %s7388_s21, 12288 }
  0xa5   :  { %p6765_p12 = scmp.ne.s32.totalorder %s7388_s21, %s6764_s15  ;;  %p6768_p13 = scmp.lt.u32.totalorder %s6764_s15, %s7388_s21 }
  0xa7   :  { %p6770_p0 = pnand %p6768_p13, %p6765_p12 }
  0xa9   :  { %6773 = shalt.err (!%p6770_p0)
}
  0xaa   :  { %s6774_s3 = scalar_lea.vmem %s254_s22, 12288  ;;  %p6779_p2 = scmp.lt.s32.totalorder %s254_s22, %s254_s22 }
  0xab   :  { %p6775_p1 = scmp.ne.s32.totalorder %s254_s22, %s6774_s3  ;;  %p6780_p3 = scmp.lt.s32.totalorder %s6774_s3, %s6774_s3 }
  0xad   :  { %p6781_p4 = por %p6780_p3, %p6779_p2 }
  0xaf   :  { %p6782_p5 = pnand %p6781_p4, %p6775_p1 }
  0xb1   :  { %6785 = shalt.err (!%p6782_p5)
}
  0xb2   :  { %259 = dma.hbm_to_vmem [thread:$0]  %s7388_s21, 12288, %s254_s22, [#allocation26], %s7252_s24, %s7252_s24, %s7253_s30  }
  0xb3   :  { %s6786_s8 = scalar_lea.hbm %s7398_s9, 4096 }
  0xb4   :  { %p6787_p6 = scmp.ne.s32.totalorder %s7398_s9, %s6786_s8  ;;  %p6790_p7 = scmp.lt.u32.totalorder %s6786_s8, %s7398_s9 }
  0xb6   :  { %p6792_p8 = pnand %p6790_p7, %p6787_p6 }
  0xb8   :  { %6795 = shalt.err (!%p6792_p8)
}
  0xb9   :  { %s6796_s4 = scalar_lea.vmem %s278_s11, 4096  ;;  %p6801_p10 = scmp.lt.s32.totalorder %s278_s11, %s278_s11 }
  0xba   :  { %p6797_p9 = scmp.ne.s32.totalorder %s278_s11, %s6796_s4  ;;  %p6802_p11 = scmp.lt.s32.totalorder %s6796_s4, %s6796_s4 }
  0xbc   :  { %p6803_p12 = por %p6802_p11, %p6801_p10 }
  0xbe   :  { %p6804_p13 = pnand %p6803_p12, %p6797_p9 }
  0xc0   :  { %6807 = shalt.err (!%p6804_p13)
}
  0xc1   :  { %283 = dma.hbm_to_vmem [thread:$0]  %s7398_s9, 4096, %s278_s11, [#allocation29], %s7247_s2, %s7247_s2, %s7248_s13  }
  0xc2   :  { %s7256_s21 = smov [#allocation31]   ;;  %s7257_s23 = smov [#allocation34]  }
  0xc3   :  { %s301_s18 = sshll.u32 %s7256_s21, 4  ;;  %s325_s29 = sshll.u32 %s7257_s23, 4  ;;  %s302_s18 = int_to_ptr.vmem [resolvable:$true] %s301_s18  ;;  %s326_s29 = int_to_ptr.vmem [resolvable:$true] %s325_s29 }
  0xc4   :  { %s6808_s19 = scalar_lea.hbm %s7408_s28, 4096 }
  0xc5   :  { %p6809_p0 = scmp.ne.s32.totalorder %s7408_s28, %s6808_s19  ;;  %p6812_p1 = scmp.lt.u32.totalorder %s6808_s19, %s7408_s28 }
  0xc7   :  { %p6814_p2 = pnand %p6812_p1, %p6809_p0 }
  0xc9   :  { %6817 = shalt.err (!%p6814_p2)
}
  0xca   :  { %s6818_s26 = scalar_lea.vmem %s302_s18, 4096  ;;  %p6823_p4 = scmp.lt.s32.totalorder %s302_s18, %s302_s18 }
  0xcb   :  { %p6819_p3 = scmp.ne.s32.totalorder %s302_s18, %s6818_s26  ;;  %p6824_p5 = scmp.lt.s32.totalorder %s6818_s26, %s6818_s26 }
  0xcd   :  { %p6825_p6 = por %p6824_p5, %p6823_p4 }
  0xcf   :  { %p6826_p7 = pnand %p6825_p6, %p6819_p3 }
  0xd1   :  { %6829 = shalt.err (!%p6826_p7)
}
  0xd2   :  { %307 = dma.hbm_to_vmem [thread:$0]  %s7408_s28, 4096, %s302_s18, [#allocation32], %s7247_s2, %s7247_s2, %s7248_s13  }
  0xd3   :  { %s6830_s9 = scalar_lea.hbm %s7418_s16, 8192 }
  0xd4   :  { %p6831_p8 = scmp.ne.s32.totalorder %s7418_s16, %s6830_s9  ;;  %p6834_p9 = scmp.lt.u32.totalorder %s6830_s9, %s7418_s16 }
  0xd6   :  { %p6836_p10 = pnand %p6834_p9, %p6831_p8 }
  0xd8   :  { %6839 = shalt.err (!%p6836_p10)
}
  0xd9   :  { %s6840_s1 = scalar_lea.vmem %s326_s29, 8192  ;;  %p6845_p12 = scmp.lt.s32.totalorder %s326_s29, %s326_s29 }
  0xda   :  { %p6841_p11 = scmp.ne.s32.totalorder %s326_s29, %s6840_s1  ;;  %p6846_p13 = scmp.lt.s32.totalorder %s6840_s1, %s6840_s1 }
  0xdc   :  { %p6847_p0 = por %p6846_p13, %p6845_p12 }
  0xde   :  { %p6848_p1 = pnand %p6847_p0, %p6841_p11 }
  0xe0   :  { %6851 = shalt.err (!%p6848_p1)
}
  0xe1   :  { %s7258_s5 = smov 512   ;;  %s7259_s0 = smov 32  }
  0xe2   :  { %331 = dma.hbm_to_vmem [thread:$0]  %s7418_s16, 8192, %s326_s29, [#allocation35], %s7258_s5, %s7258_s5, %s7259_s0  }
  0xe3   :  { %s7260_s28 = smov [#allocation37]   ;;  %s7261_s6 = smov [#allocation40]  }
  0xe4   :  { %s349_s14 = sshll.u32 %s7260_s28, 4  ;;  %s373_s27 = sshll.u32 %s7261_s6, 4  ;;  %s350_s14 = int_to_ptr.vmem [resolvable:$true] %s349_s14  ;;  %s374_s27 = int_to_ptr.vmem [resolvable:$true] %s373_s27 }
  0xe5   :  { %s6852_s12 = scalar_lea.hbm %s7428_s17, 4096 }
  0xe6   :  { %p6853_p2 = scmp.ne.s32.totalorder %s7428_s17, %s6852_s12  ;;  %p6856_p3 = scmp.lt.u32.totalorder %s6852_s12, %s7428_s17 }
  0xe8   :  { %p6858_p4 = pnand %p6856_p3, %p6853_p2 }
  0xea   :  { %6861 = shalt.err (!%p6858_p4)
}
  0xeb   :  { %s6862_s22 = scalar_lea.vmem %s350_s14, 4096  ;;  %p6867_p6 = scmp.lt.s32.totalorder %s350_s14, %s350_s14 }
  0xec   :  { %p6863_p5 = scmp.ne.s32.totalorder %s350_s14, %s6862_s22  ;;  %p6868_p7 = scmp.lt.s32.totalorder %s6862_s22, %s6862_s22 }
  0xee   :  { %p6869_p8 = por %p6868_p7, %p6867_p6 }
  0xf0   :  { %p6870_p9 = pnand %p6869_p8, %p6863_p5 }
  0xf2   :  { %6873 = shalt.err (!%p6870_p9)
}
  0xf3   :  { %355 = dma.hbm_to_vmem [thread:$0]  %s7428_s17, 4096, %s350_s14, [#allocation38], %s7247_s2, %s7247_s2, %s7248_s13  }
  0xf4   :  { %s6874_s16 = scalar_lea.hbm %s7438_s20, 2048 }
  0xf5   :  { %p6875_p10 = scmp.ne.s32.totalorder %s7438_s20, %s6874_s16  ;;  %p6878_p11 = scmp.lt.u32.totalorder %s6874_s16, %s7438_s20 }
  0xf7   :  { %p6880_p12 = pnand %p6878_p11, %p6875_p10 }
  0xf9   :  { %6883 = shalt.err (!%p6880_p12)
}
  0xfa   :  { %s6884_s7 = scalar_lea.vmem %s374_s27, 2048  ;;  %p6889_p0 = scmp.lt.s32.totalorder %s374_s27, %s374_s27 }
  0xfb   :  { %p6885_p13 = scmp.ne.s32.totalorder %s374_s27, %s6884_s7  ;;  %p6890_p1 = scmp.lt.s32.totalorder %s6884_s7, %s6884_s7 }
  0xfd   :  { %p6891_p2 = por %p6890_p1, %p6889_p0 }
  0xff   :  { %p6892_p3 = pnand %p6891_p2, %p6885_p13 }
 0x101   :  { %6895 = shalt.err (!%p6892_p3)
}
 0x102   :  { %379 = dma.hbm_to_vmem [thread:$0]  %s7438_s20, 2048, %s374_s27, [#allocation41], %s7247_s2, %s7247_s2, %s7248_s13  }
 0x103   :  { %s7262_s17 = smov [#allocation7]   ;;  %s7263_s15 = smov [#allocation12]  }
 0x104   :  { %s119_s11 = sshll.u32 %s7262_s17, 4  ;;  %s147_s3 = sshll.u32 %s7263_s15, 4  ;;  %s120_s11 = int_to_ptr.vmem [resolvable:$true] %s119_s11  ;;  %s148_s3 = int_to_ptr.vmem [resolvable:$true] %s147_s3 }
 0x105   :  { %s6896_s8 = scalar_lea.hbm %s7315_s25, 2048 }
 0x106   :  { %p6897_p4 = scmp.ne.s32.totalorder %s7315_s25, %s6896_s8  ;;  %p6900_p5 = scmp.lt.u32.totalorder %s6896_s8, %s7315_s25 }
 0x108   :  { %p6902_p6 = pnand %p6900_p5, %p6897_p4 }
 0x10a   :  { %6905 = shalt.err (!%p6902_p6)
}
 0x10b   :  { %s6906_s4 = scalar_lea.vmem %s120_s11, 2048  ;;  %p6911_p8 = scmp.lt.s32.totalorder %s120_s11, %s120_s11 }
 0x10c   :  { %p6907_p7 = scmp.ne.s32.totalorder %s120_s11, %s6906_s4  ;;  %p6912_p9 = scmp.lt.s32.totalorder %s6906_s4, %s6906_s4 }
 0x10e   :  { %p6913_p10 = por %p6912_p9, %p6911_p8 }
 0x110   :  { %p6914_p11 = pnand %p6913_p10, %p6907_p7 }
 0x112   :  { %6917 = shalt.err (!%p6914_p11)
}
 0x113   :  { %s8095_s20 = sld [smem:[#allocation64_spill]] }
 0x114   :  { %125 = dma.hbm_to_vmem [thread:$0]  %s7315_s25, 2048, %s120_s11, [#allocation8], %s7247_s2, %s7247_s2, %s7248_s13  }
 0x119   :  { %s6918_s21 = scalar_lea.hbm %s8095_s20, 2048 }
 0x11a   :  { %p6919_p12 = scmp.ne.s32.totalorder %s8095_s20, %s6918_s21  ;;  %p6922_p13 = scmp.lt.u32.totalorder %s6918_s21, %s8095_s20 }
 0x11c   :  { %p6924_p0 = pnand %p6922_p13, %p6919_p12 }
 0x11e   :  { %6927 = shalt.err (!%p6924_p0)
}
 0x11f   :  { %s6928_s18 = scalar_lea.vmem %s148_s3, 2048  ;;  %p6933_p2 = scmp.lt.s32.totalorder %s148_s3, %s148_s3 }
 0x120   :  { %p6929_p1 = scmp.ne.s32.totalorder %s148_s3, %s6928_s18  ;;  %p6934_p3 = scmp.lt.s32.totalorder %s6928_s18, %s6928_s18 }
 0x122   :  { %p6935_p4 = por %p6934_p3, %p6933_p2 }
 0x124   :  { %p6936_p5 = pnand %p6935_p4, %p6929_p1 }
 0x126   :  { %6939 = shalt.err (!%p6936_p5)
}
 0x127   :  { %s8096_s23 = sld [smem:[#allocation65_spill]]  ;;  %s7264_s25 = smov [#allocation15]  }
 0x128   :  { %153 = dma.hbm_to_vmem [thread:$0]  %s8095_s20, 2048, %s148_s3, [#allocation11], %s7247_s2, %s7247_s2, %s7248_s13  }
 0x129   :  { %s169_s29 = sshll.u32 %s7264_s25, 4  ;;  %s7265_s19 = smov [#allocation18]   ;;  %s170_s29 = int_to_ptr.vmem [resolvable:$true] %s169_s29 }
 0x12a   :  { %s191_s26 = sshll.u32 %s7265_s19, 4  ;;  %s192_s26 = int_to_ptr.vmem [resolvable:$true] %s191_s26 }
 0x12d   :  { %s6940_s9 = scalar_lea.hbm %s8096_s23, 2048 }
 0x12e   :  { %p6941_p6 = scmp.ne.s32.totalorder %s8096_s23, %s6940_s9  ;;  %p6944_p7 = scmp.lt.u32.totalorder %s6940_s9, %s8096_s23 }
 0x130   :  { %p6946_p8 = pnand %p6944_p7, %p6941_p6 }
 0x132   :  { %6949 = shalt.err (!%p6946_p8)
}
 0x133   :  { %s6950_s1 = scalar_lea.vmem %s170_s29, 2048  ;;  %p6955_p10 = scmp.lt.s32.totalorder %s170_s29, %s170_s29 }
 0x134   :  { %p6951_p9 = scmp.ne.s32.totalorder %s170_s29, %s6950_s1  ;;  %p6956_p11 = scmp.lt.s32.totalorder %s6950_s1, %s6950_s1 }
 0x136   :  { %p6957_p12 = por %p6956_p11, %p6955_p10 }
 0x138   :  { %p6958_p13 = pnand %p6957_p12, %p6951_p9 }
 0x13a   :  { %6961 = shalt.err (!%p6958_p13)
}
 0x13b   :  { %s8097_s5 = sld [smem:[#allocation66_spill]] }
 0x13c   :  { %175 = dma.hbm_to_vmem [thread:$0]  %s8096_s23, 2048, %s170_s29, [#allocation14], %s7247_s2, %s7247_s2, %s7248_s13  }
 0x141   :  { %s6962_s0 = scalar_lea.hbm %s8097_s5, 12288 }
 0x142   :  { %p6963_p0 = scmp.ne.s32.totalorder %s8097_s5, %s6962_s0  ;;  %p6966_p1 = scmp.lt.u32.totalorder %s6962_s0, %s8097_s5 }
 0x144   :  { %p6968_p2 = pnand %p6966_p1, %p6963_p0 }
 0x146   :  { %6971 = shalt.err (!%p6968_p2)
}
 0x147   :  { %s6972_s28 = scalar_lea.vmem %s192_s26, 12288  ;;  %p6977_p4 = scmp.lt.s32.totalorder %s192_s26, %s192_s26 }
 0x148   :  { %p6973_p3 = scmp.ne.s32.totalorder %s192_s26, %s6972_s28  ;;  %p6978_p5 = scmp.lt.s32.totalorder %s6972_s28, %s6972_s28 }
 0x14a   :  { %p6979_p6 = por %p6978_p5, %p6977_p4 }
 0x14c   :  { %p6980_p7 = pnand %p6979_p6, %p6973_p3 }
 0x14e   :  { %6983 = shalt.err (!%p6980_p7)
}
 0x14f   :  { %s8098_s14 = sld [smem:[#allocation68_spill]]  ;;  %s7266_s6 = smov [#allocation21]  }
 0x150   :  { %197 = dma.hbm_to_vmem [thread:$0]  %s8097_s5, 12288, %s192_s26, [#allocation17], %s7252_s24, %s7252_s24, %s7253_s30  }
 0x151   :  { %s218_s27 = sshll.u32 %s7266_s6, 4  ;;  %s7267_s12 = smov [#allocation24]   ;;  %s219_s27 = int_to_ptr.vmem [resolvable:$true] %s218_s27 }
 0x152   :  { %s242_s22 = sshll.u32 %s7267_s12, 4  ;;  %s243_s22 = int_to_ptr.vmem [resolvable:$true] %s242_s22 }
 0x155   :  { %s6984_s16 = scalar_lea.hbm %s8098_s14, 16 }
 0x156   :  { %p6985_p8 = scmp.ne.s32.totalorder %s8098_s14, %s6984_s16  ;;  %p6988_p9 = scmp.lt.u32.totalorder %s6984_s16, %s8098_s14 }
 0x158   :  { %p6990_p10 = pnand %p6988_p9, %p6985_p8 }
 0x15a   :  { %6993 = shalt.err (!%p6990_p10)
}
 0x15b   :  { %s6994_s7 = scalar_lea.vmem %s219_s27, 16  ;;  %s6998_s17 = scalar_lea.vmem %s219_s27, 32 }
 0x15c   :  { %p6995_p11 = scmp.ne.s32.totalorder %s219_s27, %s6994_s7  ;;  %p6999_p12 = scmp.lt.s32.totalorder %s219_s27, %s219_s27 }
 0x15d   :  { %p7000_p13 = scmp.lt.s32.totalorder %s6998_s17, %s6994_s7 }
 0x15f   :  { %p7001_p0 = por %p7000_p13, %p6999_p12 }
 0x161   :  { %p7002_p1 = pnand %p7001_p0, %p6995_p11 }
 0x163   :  { %7005 = shalt.err (!%p7002_p1)
}
 0x164   :  { %s8099_s11 = sld [smem:[#allocation69_spill]] }
 0x165   :  { %221 = dma.hbm_to_vmem [thread:$0]  %s8098_s14, 16, %s219_s27, [#allocation20]  }
 0x16a   :  { %s7006_s15 = scalar_lea.hbm %s8099_s11, 16 }
 0x16b   :  { %p7007_p2 = scmp.ne.s32.totalorder %s8099_s11, %s7006_s15  ;;  %p7010_p3 = scmp.lt.u32.totalorder %s7006_s15, %s8099_s11 }
 0x16d   :  { %p7012_p4 = pnand %p7010_p3, %p7007_p2 }
 0x16f   :  { %7015 = shalt.err (!%p7012_p4)
}
 0x170   :  { %s7016_s3 = scalar_lea.vmem %s243_s22, 16  ;;  %s7020_s8 = scalar_lea.vmem %s243_s22, 32 }
 0x171   :  { %p7017_p5 = scmp.ne.s32.totalorder %s243_s22, %s7016_s3  ;;  %p7021_p6 = scmp.lt.s32.totalorder %s243_s22, %s243_s22 }
 0x172   :  { %p7022_p7 = scmp.lt.s32.totalorder %s7020_s8, %s7016_s3 }
 0x174   :  { %p7023_p8 = por %p7022_p7, %p7021_p6 }
 0x176   :  { %p7024_p9 = pnand %p7023_p8, %p7017_p5 }
 0x178   :  { %7027 = shalt.err (!%p7024_p9)
}
 0x179   :  { %s8100_s4 = sld [smem:[#allocation70_spill]]  ;;  %s7268_s20 = smov [#allocation27]  }
 0x17a   :  { %245 = dma.hbm_to_vmem [thread:$0]  %s8099_s11, 16, %s243_s22, [#allocation23]  }
 0x17b   :  { %s265_s21 = sshll.u32 %s7268_s20, 4  ;;  %s7269_s18 = smov [#allocation30]   ;;  %s266_s21 = int_to_ptr.vmem [resolvable:$true] %s265_s21 }
 0x17c   :  { %s290_s23 = sshll.u32 %s7269_s18, 4  ;;  %s291_s23 = int_to_ptr.vmem [resolvable:$true] %s290_s23 }
 0x17f   :  { %s7028_s25 = scalar_lea.hbm %s8100_s4, 12288 }
 0x180   :  { %p7029_p10 = scmp.ne.s32.totalorder %s8100_s4, %s7028_s25  ;;  %p7032_p11 = scmp.lt.u32.totalorder %s7028_s25, %s8100_s4 }
 0x182   :  { %p7034_p12 = pnand %p7032_p11, %p7029_p10 }
 0x184   :  { %7037 = shalt.err (!%p7034_p12)
}
 0x185   :  { %s7038_s29 = scalar_lea.vmem %s266_s21, 12288  ;;  %p7043_p0 = scmp.lt.s32.totalorder %s266_s21, %s266_s21 }
 0x186   :  { %p7039_p13 = scmp.ne.s32.totalorder %s266_s21, %s7038_s29  ;;  %p7044_p1 = scmp.lt.s32.totalorder %s7038_s29, %s7038_s29 }
 0x188   :  { %p7045_p2 = por %p7044_p1, %p7043_p0 }
 0x18a   :  { %p7046_p3 = pnand %p7045_p2, %p7039_p13 }
 0x18c   :  { %7049 = shalt.err (!%p7046_p3)
}
 0x18d   :  { %s8101_s19 = sld [smem:[#allocation71_spill]] }
 0x18e   :  { %271 = dma.hbm_to_vmem [thread:$0]  %s8100_s4, 12288, %s266_s21, [#allocation26], %s7252_s24, %s7252_s24, %s7253_s30  }
 0x193   :  { %s7050_s26 = scalar_lea.hbm %s8101_s19, 16 }
 0x194   :  { %p7051_p4 = scmp.ne.s32.totalorder %s8101_s19, %s7050_s26  ;;  %p7054_p5 = scmp.lt.u32.totalorder %s7050_s26, %s8101_s19 }
 0x196   :  { %p7056_p6 = pnand %p7054_p5, %p7051_p4 }
 0x198   :  { %7059 = shalt.err (!%p7056_p6)
}
 0x199   :  { %s7060_s9 = scalar_lea.vmem %s291_s23, 16  ;;  %s7064_s1 = scalar_lea.vmem %s291_s23, 32 }
 0x19a   :  { %p7061_p7 = scmp.ne.s32.totalorder %s291_s23, %s7060_s9  ;;  %p7065_p8 = scmp.lt.s32.totalorder %s291_s23, %s291_s23 }
 0x19b   :  { %p7066_p9 = scmp.lt.s32.totalorder %s7064_s1, %s7060_s9 }
 0x19d   :  { %p7067_p10 = por %p7066_p9, %p7065_p8 }
 0x19f   :  { %p7068_p11 = pnand %p7067_p10, %p7061_p7 }
 0x1a1   :  { %7071 = shalt.err (!%p7068_p11)
}
 0x1a2   :  { %s8102_s5 = sld [smem:[#allocation72_spill]]  ;;  %s7270_s24 = smov [#allocation33]  }
 0x1a3   :  { %293 = dma.hbm_to_vmem [thread:$0]  %s8101_s19, 16, %s291_s23, [#allocation29]  }
 0x1a4   :  { %s314_s30 = sshll.u32 %s7270_s24, 4  ;;  %s7271_s0 = smov [#allocation36]   ;;  %s315_s30 = int_to_ptr.vmem [resolvable:$true] %s314_s30 }
 0x1a5   :  { %s337_s28 = sshll.u32 %s7271_s0, 4  ;;  %s338_s28 = int_to_ptr.vmem [resolvable:$true] %s337_s28 }
 0x1a8   :  { %s7072_s14 = scalar_lea.hbm %s8102_s5, 16 }
 0x1a9   :  { %p7073_p12 = scmp.ne.s32.totalorder %s8102_s5, %s7072_s14  ;;  %p7076_p13 = scmp.lt.u32.totalorder %s7072_s14, %s8102_s5 }
 0x1ab   :  { %p7078_p0 = pnand %p7076_p13, %p7073_p12 }
 0x1ad   :  { %7081 = shalt.err (!%p7078_p0)
}
 0x1ae   :  { %s7082_s6 = scalar_lea.vmem %s315_s30, 16  ;;  %s7086_s27 = scalar_lea.vmem %s315_s30, 32 }
 0x1af   :  { %p7083_p1 = scmp.ne.s32.totalorder %s315_s30, %s7082_s6  ;;  %p7087_p2 = scmp.lt.s32.totalorder %s315_s30, %s315_s30 }
 0x1b0   :  { %p7088_p3 = scmp.lt.s32.totalorder %s7086_s27, %s7082_s6 }
 0x1b2   :  { %p7089_p4 = por %p7088_p3, %p7087_p2 }
 0x1b4   :  { %p7090_p5 = pnand %p7089_p4, %p7083_p1 }
 0x1b6   :  { %7093 = shalt.err (!%p7090_p5)
}
 0x1b7   :  { %s8103_s12 = sld [smem:[#allocation73_spill]] }
 0x1b8   :  { %317 = dma.hbm_to_vmem [thread:$0]  %s8102_s5, 16, %s315_s30, [#allocation32]  }
 0x1bd   :  { %s7094_s22 = scalar_lea.hbm %s8103_s12, 4096 }
 0x1be   :  { %p7095_p6 = scmp.ne.s32.totalorder %s8103_s12, %s7094_s22  ;;  %p7098_p7 = scmp.lt.u32.totalorder %s7094_s22, %s8103_s12 }
 0x1c0   :  { %p7100_p8 = pnand %p7098_p7, %p7095_p6 }
 0x1c2   :  { %7103 = shalt.err (!%p7100_p8)
}
 0x1c3   :  { %s7104_s16 = scalar_lea.vmem %s338_s28, 4096  ;;  %p7109_p10 = scmp.lt.s32.totalorder %s338_s28, %s338_s28 }
 0x1c4   :  { %p7105_p9 = scmp.ne.s32.totalorder %s338_s28, %s7104_s16  ;;  %p7110_p11 = scmp.lt.s32.totalorder %s7104_s16, %s7104_s16 }
 0x1c6   :  { %p7111_p12 = por %p7110_p11, %p7109_p10 }
 0x1c8   :  { %p7112_p13 = pnand %p7111_p12, %p7105_p9 }
 0x1ca   :  { %7115 = shalt.err (!%p7112_p13)
}
 0x1cb   :  { %s7272_s7 = smov 256   ;;  %s8104_s17 = sld [smem:[#allocation74_spill]] }
 0x1cc   :  { %s7273_s11 = smov 16   ;;  %s7274_s15 = smov [#allocation39]  }
 0x1cd   :  { %343 = dma.hbm_to_vmem [thread:$0]  %s8103_s12, 4096, %s338_s28, [#allocation35], %s7272_s7, %s7272_s7, %s7273_s11  }
 0x1ce   :  { %s362_s3 = sshll.u32 %s7274_s15, 4  ;;  %s7275_s8 = smov [#allocation42]   ;;  %s363_s3 = int_to_ptr.vmem [resolvable:$true] %s362_s3 }
 0x1cf   :  { %s386_s4 = sshll.u32 %s7275_s8, 4  ;;  %s387_s4 = int_to_ptr.vmem [resolvable:$true] %s386_s4 }
 0x1d1   :  { %s7116_s20 = scalar_lea.hbm %s8104_s17, 16 }
 0x1d2   :  { %p7117_p0 = scmp.ne.s32.totalorder %s8104_s17, %s7116_s20  ;;  %p7120_p1 = scmp.lt.u32.totalorder %s7116_s20, %s8104_s17 }
 0x1d4   :  { %p7122_p2 = pnand %p7120_p1, %p7117_p0 }
 0x1d6   :  { %7125 = shalt.err (!%p7122_p2)
}
 0x1d7   :  { %s7126_s21 = scalar_lea.vmem %s363_s3, 16  ;;  %s7130_s18 = scalar_lea.vmem %s363_s3, 32 }
 0x1d8   :  { %p7127_p3 = scmp.ne.s32.totalorder %s363_s3, %s7126_s21  ;;  %p7131_p4 = scmp.lt.s32.totalorder %s363_s3, %s363_s3 }
 0x1d9   :  { %p7132_p5 = scmp.lt.s32.totalorder %s7130_s18, %s7126_s21 }
 0x1db   :  { %p7133_p6 = por %p7132_p5, %p7131_p4 }
 0x1dd   :  { %p7134_p7 = pnand %p7133_p6, %p7127_p3 }
 0x1df   :  { %7137 = shalt.err (!%p7134_p7)
}
 0x1e0   :  { %s8105_s23 = sld [smem:[#allocation75_spill]] }
 0x1e1   :  { %365 = dma.hbm_to_vmem [thread:$0]  %s8104_s17, 16, %s363_s3, [#allocation38]  }
 0x1e6   :  { %s7138_s25 = scalar_lea.hbm %s8105_s23, 16 }
 0x1e7   :  { %p7139_p8 = scmp.ne.s32.totalorder %s8105_s23, %s7138_s25  ;;  %p7142_p9 = scmp.lt.u32.totalorder %s7138_s25, %s8105_s23 }
 0x1e9   :  { %p7144_p10 = pnand %p7142_p9, %p7139_p8 }
 0x1eb   :  { %7147 = shalt.err (!%p7144_p10)
}
 0x1ec   :  { %s7148_s29 = scalar_lea.vmem %s387_s4, 16  ;;  %s7152_s19 = scalar_lea.vmem %s387_s4, 32 }
 0x1ed   :  { %p7149_p11 = scmp.ne.s32.totalorder %s387_s4, %s7148_s29  ;;  %p7153_p12 = scmp.lt.s32.totalorder %s387_s4, %s387_s4 }
 0x1ee   :  { %p7154_p13 = scmp.lt.s32.totalorder %s7152_s19, %s7148_s29 }
 0x1f0   :  { %p7155_p0 = por %p7154_p13, %p7153_p12 }
 0x1f2   :  { %p7156_p1 = pnand %p7155_p0, %p7149_p11 }
 0x1f4   :  { %7159 = shalt.err (!%p7156_p1)
}
 0x1f5   :  { %389 = dma.hbm_to_vmem [thread:$0]  %s8105_s23, 16, %s387_s4, [#allocation41]  }
 0x1f6   :  { %7182 = dma.done.wait [#allocation8], 2048  }
 0x1f7   :  { %7183 = vsyncadd [#allocation8], 4294965248 }
 0x1f8   :  { %7184 = dma.done.wait [#allocation11], 4096  }
 0x1f9   :  { %7185 = vsyncadd [#allocation11], 4294963200 }
 0x1fa   :  { %7186 = dma.done.wait [#allocation14], 2064  }
 0x1fb   :  { %7187 = vsyncadd [#allocation14], 4294965232 }
 0x1fc   :  { %7188 = dma.done.wait [#allocation17], 12304  }
 0x1fd   :  { %7189 = vsyncadd [#allocation17], 4294954992 }
 0x1fe   :  { %7190 = dma.done.wait [#allocation20], 12304  }
 0x1ff   :  { %7191 = vsyncadd [#allocation20], 4294954992 }
 0x200   :  { %7192 = dma.done.wait [#allocation23], 4112  }
 0x201   :  { %7193 = vsyncadd [#allocation23], 4294963184 }
 0x202   :  { %7194 = dma.done.wait [#allocation26], 24576  }
 0x203   :  { %7195 = vsyncadd [#allocation26], 4294942720 }
 0x204   :  { %7196 = dma.done.wait [#allocation29], 4112  }
 0x205   :  { %7197 = vsyncadd [#allocation29], 4294963184 }
 0x206   :  { %7198 = dma.done.wait [#allocation32], 4112  }
 0x207   :  { %7199 = vsyncadd [#allocation32], 4294963184 }
 0x208   :  { %7200 = dma.done.wait [#allocation35], 12288  }
 0x209   :  { %7201 = vsyncadd [#allocation35], 4294955008 }
 0x20a   :  { %7202 = dma.done.wait [#allocation38], 4112  }
 0x20b   :  { %7203 = vsyncadd [#allocation38], 4294963184 }
 0x20c   :  { %7204 = dma.done.wait [#allocation41], 2064  }
 0x20d   :  { %7205 = vsyncadd [#allocation41], 4294965232  ;;  %v7276_v5 = vmov 0.0|0.0   ;;  %vm7277_vm0 = vmmov 0   ;;  %v7278_v6 = vmov 0.0   ;;  %v489_v7 = vld [vmem:[#allocation7] sm:$0xff] }
 0x20e   :  { %5690 = vmatprep.subr.bf16.mxu0 %v7276_v5  ;;  %5423 = vmatprep.mubr.msk.f32.mxu0 %vm7277_vm0, %v7278_v6  ;;  %v490_v8 = vld [vmem:[#allocation7 + $0x8] sm:$0xff]  ;;  %v491_v9 = vld [vmem:[#allocation7 + $0x10] sm:$0xff]  ;;  %v492_v11 = vld [vmem:[#allocation7 + $0x18] sm:$0xff]  ;;  %s8106_s26 = sld [smem:[#allocation59_spill]]  ;;  %s8107_s9 = sld [smem:[#allocation57_spill]]  ;;  %vm466_vm3 = vcmask 64512  }
 0x20f   :  { %5714 = vmatprep.subr.bf16.mxu1 %v7276_v5  ;;  %5458 = vmatprep.mubr.msk.f32.mxu1 %vm7277_vm0, %v7278_v6  ;;  %v5691_v10 = vpack.c.bf16 %v490_v8, %v489_v7  ;;  %v5694_v12 = vpack.c.bf16 %v492_v11, %v491_v9  ;;  %v493_v13 = vld [vmem:[#allocation7 + $0x20] sm:$0xff]  ;;  %v494_v14 = vld [vmem:[#allocation7 + $0x28] sm:$0xff]  ;;  %v495_v16 = vld [vmem:[#allocation7 + $0x30] sm:$0xff]  ;;  %s8108_s1 = sld [smem:[#allocation62_spill]]  ;;  %s8109_s5 = sld [smem:[#allocation58_spill]]  ;;  %vm481_vm5 = vcmask 130048  }
 0x210   :  { %v5697_v15 = vpack.c.bf16 %v494_v14, %v493_v13  ;;  %v496_v17 = vld [vmem:[#allocation7 + $0x38] sm:$0xff]  ;;  %v497_v19 = vld [vmem:[#allocation7 + $0x40] sm:$0xff]  ;;  %v498_v20 = vld [vmem:[#allocation7 + $0x48] sm:$0xff]  ;;  %s8110_s24 = sld [smem:[#allocation60_spill]]  ;;  %s8111_s30 = sld [smem:[#allocation61_spill]] }
 0x211   :  { %5692 = vmatpush3.bf16.msra.mxu0 %v5691_v10  ;;  %v5700_v18 = vpack.c.bf16 %v496_v17, %v495_v16  ;;  %v583_v21 = vld [vmem:[#allocation10] sm:$0xff]  ;;  %v584_v22 = vld [vmem:[#allocation10 + $0x8] sm:$0xff]  ;;  %v585_v23 = vld [vmem:[#allocation10 + $0x10] sm:$0xff]  ;;  %v5703_v26 = vpack.c.bf16 %v498_v20, %v497_v19  ;;  %s8112_s0 = sld [smem:[#allocation67_spill]]  ;;  %s8113_s28 = sld [smem:[#allocation63_spill]] }
 0x212   :  { %5693 = vmatprep.subr.bf16.mxu0 %v7276_v5  ;;  %v586_v24 = vld [vmem:[#allocation10 + $0x18] sm:$0xff]  ;;  %v5715_v25 = vpack.c.bf16 %v584_v22, %v583_v21  ;;  %v499_v27 = vld [vmem:[#allocation7 + $0x50] sm:$0xff]  ;;  %v587_v30 = vld [vmem:[#allocation10 + $0x20] sm:$0xff]  ;;  %s7281_s14 = smov [#allocation43]  }
 0x213   :  { %v5718_v28 = vpack.c.bf16 %v586_v24, %v585_v23  ;;  %v500_v29 = vld [vmem:[#allocation7 + $0x58] sm:$0xff]  ;;  %v588_v31 = vld [vmem:[#allocation10 + $0x28] sm:$0xff]  ;;  %v501_v33 = vld [vmem:[#allocation7 + $0x60] sm:$0xff]  ;;  %s4970_s6 = sshll.u32 %s7281_s14, 4  ;;  %s4971_s6 = int_to_ptr.vmem [resolvable:$true] %s4970_s6 }
 0x214   :  { %5716 = vmatpush3.bf16.msra.mxu1 %v5715_v25  ;;  %v5706_v32 = vpack.c.bf16 %v500_v29, %v499_v27  ;;  %v5721_v34 = vpack.c.bf16 %v588_v31, %v587_v30  ;;  %v502_v35 = vld [vmem:[#allocation7 + $0x68] sm:$0xff]  ;;  %v589_v36 = vld [vmem:[#allocation10 + $0x30] sm:$0xff]  ;;  %v590_v37 = vld [vmem:[#allocation10 + $0x38] sm:$0xff]  ;;  %s7160_s27 = scalar_lea.vmem %s4971_s6, 256  ;;  %p7165_p3 = scmp.lt.s32.totalorder %s4971_s6, %s4971_s6 }
 0x215   :  { %5695 = vmatpush3.bf16.msra.mxu0 %v5694_v12  ;;  %5717 = vmatprep.subr.bf16.mxu1 %v7276_v5  ;;  %v5709_v38 = vpack.c.bf16 %v502_v35, %v501_v33  ;;  %v503_v39 = vld [vmem:[#allocation7 + $0x70] sm:$0xff]  ;;  %v5724_v40 = vpack.c.bf16 %v590_v37, %v589_v36  ;;  %v504_v41 = vld [vmem:[#allocation7 + $0x78] sm:$0xff]  ;;  %v591_v42 = vld [vmem:[#allocation10 + $0x40] sm:$0xff]  ;;  %p7161_p2 = scmp.ne.s32.totalorder %s4971_s6, %s7160_s27  ;;  %p7166_p4 = scmp.lt.s32.totalorder %s7160_s27, %s7160_s27 }
 0x216   :  { %5696 = vmatprep.subr.bf16.mxu0 %v7276_v5  ;;  %v592_v43 = vld [vmem:[#allocation10 + $0x48] sm:$0xff]  ;;  %v678_v44 = vld [vmem:[#allocation12] sm:$0xff]  ;;  %v5712_v46 = vpack.c.bf16 %v504_v41, %v503_v39  ;;  %v680_v49 = vld [vmem:[#allocation12 + $0x10] sm:$0xff] }
 0x217   :  { %v679_v45 = vld [vmem:[#allocation12 + $0x8] sm:$0xff]  ;;  %v5727_v47 = vpack.c.bf16 %v592_v43, %v591_v42  ;;  %v681_v50 = vld [vmem:[#allocation12 + $0x18] sm:$0xff]  ;;  %v593_v51 = vld [vmem:[#allocation10 + $0x50] sm:$0xff]  ;;  %p7167_p5 = por %p7166_p4, %p7165_p3 }
 0x218   :  { %5719 = vmatpush3.bf16.msra.mxu1 %v5718_v28  ;;  %v5738_v48 = vpack.c.bf16 %v679_v45, %v678_v44  ;;  %v594_v52 = vld [vmem:[#allocation10 + $0x58] sm:$0xff]  ;;  %v5742_v54 = vpack.c.bf16 %v681_v50, %v680_v49  ;;  %v682_v55 = vld [vmem:[#allocation12 + $0x20] sm:$0xff]  ;;  %v683_v58 = vld [vmem:[#allocation12 + $0x28] sm:$0xff] }
 0x219   :  { %5698 = vmatpush3.bf16.msra.mxu0 %v5697_v15  ;;  %5720 = vmatprep.subr.bf16.mxu1 %v7276_v5  ;;  %v488_v53 = vld [vmem:[%s8106_s26] sm:$0xff]  ;;  %v5730_v57 = vpack.c.bf16 %v594_v52, %v593_v51  ;;  %v596_v60 = vld [vmem:[#allocation10 + $0x68] sm:$0xff]  ;;  %v5746_v61 = vpack.c.bf16 %v683_v58, %v682_v55  ;;  %v684_v63 = vld [vmem:[#allocation12 + $0x30] sm:$0xff]  ;;  %p7168_p6 = pnand %p7167_p5, %p7161_p2 }
 0x21a   :  { %5699 = vmatprep.subr.bf16.mxu0 %v7276_v5  ;;  %v676_v56 = vld [vmem:[%s8107_s9] sm:$0xff]  ;;  %v687_v3 = vld [vmem:[#allocation12 + $0x48] sm:$0xff]  ;;  %v688_v7 = vld [vmem:[#allocation12 + $0x50] sm:$0xff] }
 0x21b   :  { %v595_v59 = vld [vmem:[#allocation10 + $0x60] sm:$0xff]  ;;  %v685_v0 = vld [vmem:[#allocation12 + $0x38] sm:$0xff]  ;;  %v691_v11 = vld [vmem:[#allocation12 + $0x68] sm:$0xff] }
 0x21c   :  { %5722 = vmatpush3.bf16.msra.mxu1 %v5721_v34  ;;  %v5733_v62 = vpack.c.bf16 %v596_v60, %v595_v59  ;;  %v5750_v1 = vpack.c.bf16 %v685_v0, %v684_v63  ;;  %v686_v2 = vld [vmem:[#allocation12 + $0x40] sm:$0xff]  ;;  %v689_v8 = vld [vmem:[#allocation12 + $0x58] sm:$0xff]  ;;  %v692_v13 = vld [vmem:[#allocation12 + $0x70] sm:$0xff] }
 0x21d   :  { %5701 = vmatpush3.bf16.msra.mxu0 %v5700_v18  ;;  %5723 = vmatprep.subr.bf16.mxu1 %v7276_v5  ;;  %v5754_v4 = vpack.c.bf16 %v687_v3, %v686_v2  ;;  %v5758_v9 = vpack.c.bf16 %v689_v8, %v688_v7  ;;  %v690_v10 = vld [vmem:[#allocation12 + $0x60] sm:$0xff]  ;;  %v693_v14 = vld [vmem:[#allocation12 + $0x78] sm:$0xff]  ;;  %v597_v17 = vld [vmem:[#allocation10 + $0x70] sm:$0xff] }
 0x21e   :  { %5702 = vmatprep.subr.bf16.mxu0 %v7276_v5  ;;  %v5762_v12 = vpack.c.bf16 %v691_v11, %v690_v10  ;;  %v5766_v15 = vpack.c.bf16 %v693_v14, %v692_v13  ;;  %v677_v16 = vld [vmem:[%s8107_s9 + $0x8] sm:$0xff]  ;;  %v598_v18 = vld [vmem:[#allocation10 + $0x78] sm:$0xff]  ;;  %v874_v20 = vld [vmem:[#allocation18 + $0x8] sm:$0xff] }
 0x21f   :  { %v5736_v19 = vpack.c.bf16 %v598_v18, %v597_v17  ;;  %v880_v21 = vld [vmem:[#allocation18 + $0x38] sm:$0xff]  ;;  %v873_v22 = vld [vmem:[#allocation18] sm:$0xff]  ;;  %v879_v24 = vld [vmem:[#allocation18 + $0x30] sm:$0xff] }
 0x220   :  { %5725 = vmatpush3.bf16.msra.mxu1 %v5724_v40  ;;  %v5794_v23 = vpack.c.bf16 %v880_v21, %v874_v20  ;;  %v886_v25 = vld [vmem:[#allocation18 + $0x68] sm:$0xff]  ;;  %v5796_v27 = vpack.c.bf16 %v879_v24, %v873_v22  ;;  %v885_v29 = vld [vmem:[#allocation18 + $0x60] sm:$0xff]  ;;  %v891_v30 = vld [vmem:[#allocation18 + $0x90] sm:$0xff] }
 0x221   :  { %5704 = vmatpush3.bf16.msra.mxu0 %v5703_v26  ;;  %5726 = vmatprep.subr.bf16.mxu1 %v7276_v5  ;;  %v892_v26 = vld [vmem:[#allocation18 + $0x98] sm:$0xff]  ;;  %v898_v31 = vld [vmem:[#allocation18 + $0xc8] sm:$0xff]  ;;  %v5800_v33 = vpack.c.bf16 %v891_v30, %v885_v29  ;;  %v897_v35 = vld [vmem:[#allocation18 + $0xc0] sm:$0xff] }
 0x222   :  { %5705 = vmatprep.subr.bf16.mxu0 %v7276_v5  ;;  %v5798_v28 = vpack.c.bf16 %v892_v26, %v886_v25  ;;  %v903_v36 = vld [vmem:[#allocation18 + $0xf0] sm:$0xff]  ;;  %v910_v37 = vld [vmem:[#allocation18 + $0x128] sm:$0xff]  ;;  %v909_v41 = vld [vmem:[#allocation18 + $0x120] sm:$0xff] }
 0x223   :  { %v5804_v39 = vpack.c.bf16 %v903_v36, %v897_v35  ;;  %v915_v42 = vld [vmem:[#allocation18 + $0x150] sm:$0xff]  ;;  %v922_v43 = vld [vmem:[#allocation18 + $0x188] sm:$0xff]  ;;  %v928_v44 = vld [vmem:[#allocation18 + $0x1b8] sm:$0xff] }
 0x224   :  { %5728 = vmatpush3.bf16.msra.mxu1 %v5727_v47  ;;  %v5808_v45 = vpack.c.bf16 %v915_v42, %v909_v41  ;;  %v921_v47 = vld [vmem:[#allocation18 + $0x180] sm:$0xff]  ;;  %v934_v49 = vld [vmem:[#allocation18 + $0x1e8] sm:$0xff]  ;;  %v940_v50 = vld [vmem:[#allocation18 + $0x218] sm:$0xff] }
 0x225   :  { %5707 = vmatpush3.bf16.msra.mxu0 %v5706_v32  ;;  %5729 = vmatprep.subr.bf16.mxu1 %v7276_v5  ;;  %v904_v32 = vld [vmem:[#allocation18 + $0xf8] sm:$0xff]  ;;  %v5814_v52 = vpack.c.bf16 %v940_v50, %v934_v49  ;;  %v946_v55 = vld [vmem:[#allocation18 + $0x248] sm:$0xff]  ;;  %v945_v59 = vld [vmem:[#allocation18 + $0x240] sm:$0xff] }
 0x226   :  { %5708 = vmatprep.subr.bf16.mxu0 %v7276_v5  ;;  %v5802_v34 = vpack.c.bf16 %v904_v32, %v898_v31  ;;  %v951_v60 = vld [vmem:[#allocation18 + $0x270] sm:$0xff]  ;;  %v878_v3 = vld [vmem:[#allocation18 + $0x28] sm:$0xff]  ;;  %v779_v10 = vld [vmem:[#allocation15] sm:$0xff] }
 0x227   :  { %v5820_v63 = vpack.c.bf16 %v951_v60, %v945_v59  ;;  %v963_v2 = vld [vmem:[#allocation18 + $0x2d0] sm:$0xff]  ;;  %v780_v11 = vld [vmem:[#allocation15 + $0x8] sm:$0xff]  ;;  %v783_v20 = vld [vmem:[#allocation15 + $0x20] sm:$0xff] }
 0x228   :  { %5731 = vmatpush3.bf16.msra.mxu1 %v5730_v57  ;;  %v781_v17 = vld [vmem:[#allocation15 + $0x10] sm:$0xff]  ;;  %v782_v18 = vld [vmem:[#allocation15 + $0x18] sm:$0xff]  ;;  %v784_v21 = vld [vmem:[#allocation15 + $0x28] sm:$0xff] }
 0x229   :  { %5710 = vmatpush3.bf16.msra.mxu0 %v5709_v38  ;;  %5732 = vmatprep.subr.bf16.mxu1 %v7276_v5  ;;  %v916_v38 = vld [vmem:[#allocation18 + $0x158] sm:$0xff]  ;;  %v5777_v22 = vpack.c.bf16 %v784_v21, %v783_v20  ;;  %v789_v29 = vld [vmem:[#allocation15 + $0x50] sm:$0xff]  ;;  %v893_v59 = vld [vmem:[#allocation18 + $0xa0] sm:$0xff] }
 0x22a   :  { %5711 = vmatprep.subr.bf16.mxu0 %v7276_v5  ;;  %v5806_v40 = vpack.c.bf16 %v916_v38, %v910_v37  ;;  %v786_v24 = vld [vmem:[#allocation15 + $0x38] sm:$0xff]  ;;  %v787_v26 = vld [vmem:[#allocation15 + $0x40] sm:$0xff]  ;;  %v793_v35 = vld [vmem:[#allocation15 + $0x70] sm:$0xff] }
 0x22b   :  { %v790_v30 = vld [vmem:[#allocation15 + $0x58] sm:$0xff]  ;;  %v791_v32 = vld [vmem:[#allocation15 + $0x60] sm:$0xff]  ;;  %v882_v38 = vld [vmem:[#allocation18 + $0x48] sm:$0xff] }
 0x22c   :  { %5734 = vmatpush3.bf16.msra.mxu1 %v5733_v62  ;;  %v964_v62 = vld [vmem:[#allocation18 + $0x2d8] sm:$0xff]  ;;  %v5786_v31 = vpack.c.bf16 %v790_v30, %v789_v29  ;;  %v875_v42 = vld [vmem:[#allocation18 + $0x10] sm:$0xff]  ;;  %v890_v50 = vld [vmem:[#allocation18 + $0x88] sm:$0xff] }
 0x22d   :  { %5713 = vmatpush3.bf16.msra.mxu0 %v5712_v46  ;;  %5735 = vmatprep.subr.bf16.mxu1 %v7276_v5  ;;  %v5810_v46 = vpack.c.bf16 %v928_v44, %v922_v43  ;;  %v794_v36 = vld [vmem:[#allocation15 + $0x78] sm:$0xff]  ;;  %v881_v43 = vld [vmem:[#allocation18 + $0x40] sm:$0xff]  ;;  %v926_v29 = vld [vmem:[#allocation18 + $0x1a8] sm:$0xff] }
 0x22e   :  { %5739 = vmatprep.subr.bf16.mxu0 %v5738_v48  ;;  %v876_v37 = vld [vmem:[#allocation18 + $0x18] sm:$0xff]  ;;  %v877_v44 = vld [vmem:[#allocation18 + $0x20] sm:$0xff] }
 0x22f   :  { %v5826_v41 = vpack.c.bf16 %v882_v38, %v876_v37  ;;  %v889_v60 = vld [vmem:[#allocation18 + $0x80] sm:$0xff]  ;;  %v932_v30 = vld [vmem:[#allocation18 + $0x1d8] sm:$0xff]  ;;  %v931_v38 = vld [vmem:[#allocation18 + $0x1d0] sm:$0xff] }
 0x230   :  { %5424 = vmatmul.mubr.f32.vlgmr.msra.gmra.mrb[0].mxu0 %v488_v53  ;;  %5737 = vmatpush3.bf16.msra.mxu1 %v5736_v19  ;;  %v933_v53 = vld [vmem:[#allocation18 + $0x1e0] sm:$0xff]  ;;  %v5774_v19 = vpack.c.bf16 %v782_v18, %v781_v17  ;;  %v914_v17 = vld [vmem:[#allocation18 + $0x148] sm:$0xff]  ;;  %v920_v18 = vld [vmem:[#allocation18 + $0x178] sm:$0xff]  ;;  %v5874_v37 = vpack.c.bf16 %v932_v30, %v926_v29 }
 0x231   :  { %5741 = vmatpush3.bf16.msra.mxu0 %v5738_v48  ;;  %5493 = vmatprep.mubr.f32.mxu0 %v676_v56  ;;  %v927_v48 = vld [vmem:[#allocation18 + $0x1b0] sm:$0xff]  ;;  %v952_v56 = vld [vmem:[#allocation18 + $0x278] sm:$0xff] }
 0x232   :  { %5743 = vmatprep.subr.bf16.mxu0 %v5742_v54  ;;  %5770 = vmatprep.subr.bf16.mxu1 %v7276_v5  ;;  %v5812_v51 = vpack.c.bf16 %v927_v48, %v921_v47  ;;  %v5818_v58 = vpack.c.bf16 %v952_v56, %v946_v55  ;;  %v888_v47 = vld [vmem:[#allocation18 + $0x78] sm:$0xff]  ;;  %v894_v48 = vld [vmem:[#allocation18 + $0xa8] sm:$0xff]  ;;  %v5828_v55 = vpack.c.bf16 %v881_v43, %v875_v42 }
 0x233   :  { %v944_v42 = vld [vmem:[#allocation18 + $0x238] sm:$0xff] }
 0x234   :  { %v1219_v30 = vld [vmem:[#allocation19 + $0x98] sm:$0xff] }
 0x235   :  { %5745 = vmatpush3.bf16.msra.mxu0 %v5742_v54  ;;  %v939_v54 = vld [vmem:[#allocation18 + $0x210] sm:$0xff] }
 0x236   :  { %5747 = vmatprep.subr.bf16.mxu0 %v5746_v61  ;;  %v5816_v57 = vpack.c.bf16 %v939_v54, %v933_v53 }
 0x239   :  { %5749 = vmatpush3.bf16.msra.mxu0 %v5746_v61  ;;  %v958_v61 = vld [vmem:[#allocation18 + $0x2a8] sm:$0xff] }
 0x23a   :  { %5751 = vmatprep.subr.bf16.mxu0 %v5750_v1  ;;  %v5822_v0 = vpack.c.bf16 %v964_v62, %v958_v61 }
 0x23d   :  { %5753 = vmatpush3.bf16.msra.mxu0 %v5750_v1  ;;  %v957_v1 = vld [vmem:[#allocation18 + $0x2a0] sm:$0xff] }
 0x23e   :  { %5755 = vmatprep.subr.bf16.mxu0 %v5754_v4  ;;  %v5824_v7 = vpack.c.bf16 %v963_v2, %v957_v1  ;;  %v906_v1 = vld [vmem:[#allocation18 + $0x108] sm:$0xff] }
 0x23f   :  { %v902_v2 = vld [vmem:[#allocation18 + $0xe8] sm:$0xff] }
 0x241   :  { %5757 = vmatpush3.bf16.msra.mxu0 %v5754_v4  ;;  %v884_v4 = vld [vmem:[#allocation18 + $0x58] sm:$0xff] }
 0x242   :  { %5759 = vmatprep.subr.bf16.mxu0 %v5758_v9  ;;  %v5858_v8 = vpack.c.bf16 %v884_v4, %v878_v3  ;;  %v908_v3 = vld [vmem:[#allocation18 + $0x118] sm:$0xff] }
 0x245   :  { %5761 = vmatpush3.bf16.msra.mxu0 %v5758_v9  ;;  %v5035_v9 = vld [vmem:[%s8108_s1] ss:$0 sm:$0xff] }
 0x246   :  { %5763 = vmatprep.subr.bf16.mxu0 %v5762_v12 }
 0x249   :  { %5765 = vmatpush3.bf16.msra.mxu0 %v5762_v12 }
 0x24a   :  { %5767 = vmatprep.subr.bf16.mxu0 %v5766_v15 }
 0x24d   :  { %5769 = vmatpush3.bf16.msra.mxu0 %v5766_v15  ;;  %v5771_v15 = vpack.c.bf16 %v780_v11, %v779_v10  ;;  %v899_v10 = vld [vmem:[#allocation18 + $0xd0] sm:$0xff]  ;;  %v905_v11 = vld [vmem:[#allocation18 + $0x100] sm:$0xff] }
 0x24e   :  { %5795 = vmatprep.subr.bf16.mxu0 %v5794_v23  ;;  %v785_v23 = vld [vmem:[#allocation15 + $0x30] sm:$0xff] }
 0x24f   :  { %v5780_v25 = vpack.c.bf16 %v786_v24, %v785_v23  ;;  %v917_v23 = vld [vmem:[#allocation18 + $0x160] sm:$0xff] }
 0x250   :  { %5494 = vmatmul.mubr.f32.vlgmr.msra.gmra.mrb[2].mxu0 %v677_v16  ;;  %v913_v24 = vld [vmem:[#allocation18 + $0x140] sm:$0xff] }
 0x251   :  { %1033 = vmatprep.mubr.f32.mxu0 %v7278_v6  ;;  %5797 = vmatpush1.bf16.msra.mxu0 %v5796_v27  ;;  %v788_v27 = vld [vmem:[#allocation15 + $0x48] sm:$0xff] }
 0x252   :  { %5799 = vmatprep.subr.bf16.mxu0 %v5798_v28  ;;  %v5783_v28 = vpack.c.bf16 %v788_v27, %v787_v26  ;;  %v919_v26 = vld [vmem:[#allocation18 + $0x170] sm:$0xff]  ;;  %v924_v27 = vld [vmem:[#allocation18 + $0x198] sm:$0xff] }
 0x255   :  { %5801 = vmatpush1.bf16.msra.mxu0 %v5800_v33  ;;  %v792_v33 = vld [vmem:[#allocation15 + $0x68] sm:$0xff] }
 0x256   :  { %5803 = vmatprep.subr.bf16.mxu0 %v5802_v34  ;;  %v5789_v34 = vpack.c.bf16 %v792_v33, %v791_v32  ;;  %v5872_v32 = vpack.c.bf16 %v919_v26, %v913_v24  ;;  %v1202_v26 = vld [vmem:[#allocation19 + $0x10] sm:$0xff] }
 0x259   :  { %5805 = vmatpush1.bf16.msra.mxu0 %v5804_v39  ;;  %v5792_v39 = vpack.c.bf16 %v794_v36, %v793_v35  ;;  %v929_v35 = vld [vmem:[#allocation18 + $0x1c0] sm:$0xff] }
 0x25a   :  { %5807 = vmatprep.subr.bf16.mxu0 %v5806_v40  ;;  %v5037_v40 = vld [vmem:[#allocation13] ss:$0 sm:$0xff]  ;;  %v925_v36 = vld [vmem:[#allocation18 + $0x1a0] sm:$0xff] }
 0x25d   :  { %5809 = vmatpush1.bf16.msra.mxu0 %v5808_v45 }
 0x25e   :  { %5811 = vmatprep.subr.bf16.mxu0 %v5810_v46  ;;  %v883_v46 = vld [vmem:[#allocation18 + $0x50] sm:$0xff] }
 0x25f   :  { %v5860_v56 = vpack.c.bf16 %v883_v46, %v877_v44  ;;  %v5876_v44 = vpack.c.bf16 %v931_v38, %v925_v36  ;;  %v935_v46 = vld [vmem:[#allocation18 + $0x1f0] sm:$0xff]  ;;  %v1221_v36 = vld [vmem:[#allocation19 + $0xa8] sm:$0xff] }
 0x261   :  { %5813 = vmatpush1.bf16.msra.mxu0 %v5812_v51  ;;  %v896_v51 = vld [vmem:[#allocation18 + $0xb8] sm:$0xff] }
 0x262   :  { %5815 = vmatprep.subr.bf16.mxu0 %v5814_v52  ;;  %v778_v52 = vld [vmem:[%s8109_s5] sm:$0xff]  ;;  %v5862_v62 = vpack.c.bf16 %v896_v51, %v890_v50 }
 0x263   :  { %v943_v50 = vld [vmem:[#allocation18 + $0x230] sm:$0xff]  ;;  %v948_v51 = vld [vmem:[#allocation18 + $0x258] sm:$0xff] }
 0x265   :  { %5817 = vmatpush1.bf16.msra.mxu0 %v5816_v57  ;;  %v5830_v57 = vpack.c.bf16 %v894_v48, %v888_v47  ;;  %v941_v47 = vld [vmem:[#allocation18 + $0x220] sm:$0xff] }
 0x266   :  { %5819 = vmatprep.subr.bf16.mxu0 %v5818_v58  ;;  %v887_v58 = vld [vmem:[#allocation18 + $0x70] sm:$0xff]  ;;  %v937_v48 = vld [vmem:[#allocation18 + $0x200] sm:$0xff] }
 0x269   :  { %5821 = vmatpush1.bf16.msra.mxu0 %v5820_v63  ;;  %v895_v63 = vld [vmem:[#allocation18 + $0xb0] sm:$0xff] }
 0x26a   :  { %5823 = vmatprep.subr.bf16.mxu0 %v5822_v0  ;;  %v900_v0 = vld [vmem:[#allocation18 + $0xd8] sm:$0xff] }
 0x26d   :  { %5825 = vmatpush1.bf16.msra.mxu0 %v5824_v7  ;;  %v5832_v7 = vpack.c.bf16 %v893_v59, %v887_v58  ;;  %v947_v58 = vld [vmem:[#allocation18 + $0x250] sm:$0xff]  ;;  %v953_v59 = vld [vmem:[#allocation18 + $0x280] sm:$0xff] }
 0x26e   :  { %5859 = vmatprep.subr.bf16.mxu0 %v5858_v8  ;;  %v5864_v8 = vpack.c.bf16 %v895_v63, %v889_v60  ;;  %v949_v60 = vld [vmem:[#allocation18 + $0x260] sm:$0xff]  ;;  %v955_v63 = vld [vmem:[#allocation18 + $0x290] sm:$0xff] }
 0x303   :  { %v578_v12 = vpop.f32.mrb[0].mxu0 }
 0x304   :  { %v579_v13 = vadd.f32 %v5035_v9, %v578_v12  ;;  %v5425_v14 = vpop.f32.mrb[1].mxu0  ;;  %v5834_v9 = vpack.c.bf16 %v906_v1, %v900_v0  ;;  %v901_v12 = vld [vmem:[#allocation18 + $0xe0] sm:$0xff]  ;;  %v960_v0 = vld [vmem:[#allocation18 + $0x2b8] sm:$0xff]  ;;  %v966_v1 = vld [vmem:[#allocation18 + $0x2e8] sm:$0xff] }
 0x305   :  { %v907_v14 = vld [vmem:[#allocation18 + $0x110] sm:$0xff] }
 0x306   :  { %v582_v16 = vmax.f32 %v579_v13, 0.0  ;;  %v5866_v13 = vpack.c.bf16 %v908_v3, %v902_v2  ;;  %v5868_v20 = vpack.c.bf16 %v907_v14, %v901_v12  ;;  %v962_v2 = vld [vmem:[#allocation18 + $0x2c8] sm:$0xff]  ;;  %v968_v3 = vld [vmem:[#allocation18 + $0x2f8] sm:$0xff]  ;;  %v967_v14 = vld [vmem:[#allocation18 + $0x2f0] sm:$0xff] }
 0x307   :  { %v5886_v12 = vpack.c.bf16 %v968_v3, %v962_v2  ;;  %v1251_v3 = vld [vmem:[#allocation19 + $0x198] sm:$0xff] }
 0x308   :  { %5459 = vmatmul.mubr.f32.vlgmr.msra.gmra.mrb[0].mxu1 %v582_v16  ;;  %v918_v16 = vld [vmem:[#allocation18 + $0x168] sm:$0xff] }
 0x309   :  { %5772 = vmatpush3.bf16.msra.mxu1 %v5771_v15  ;;  %5528 = vmatprep.mubr.msk.f32.mxu1 %vm7277_vm0, %v7278_v6  ;;  %v912_v15 = vld [vmem:[#allocation18 + $0x138] sm:$0xff] }
 0x30a   :  { %5773 = vmatprep.subr.bf16.mxu1 %v7276_v5  ;;  %v5838_v21 = vpack.c.bf16 %v918_v16, %v912_v15 }
 0x30d   :  { %5775 = vmatpush3.bf16.msra.mxu1 %v5774_v19  ;;  %v5836_v19 = vpack.c.bf16 %v905_v11, %v899_v10  ;;  %v959_v10 = vld [vmem:[#allocation18 + $0x2b0] sm:$0xff]  ;;  %v965_v11 = vld [vmem:[#allocation18 + $0x2e0] sm:$0xff] }
 0x30e   :  { %5776 = vmatprep.subr.bf16.mxu1 %v7276_v5  ;;  %v5856_v15 = vpack.c.bf16 %v965_v11, %v959_v10  ;;  %v1248_v10 = vld [vmem:[#allocation19 + $0x180] sm:$0xff]  ;;  %v1254_v11 = vld [vmem:[#allocation19 + $0x1b0] sm:$0xff] }
 0x311   :  { %5778 = vmatpush3.bf16.msra.mxu1 %v5777_v22  ;;  %v911_v22 = vld [vmem:[#allocation18 + $0x130] sm:$0xff] }
 0x312   :  { %5779 = vmatprep.subr.bf16.mxu1 %v7276_v5 }
 0x315   :  { %5781 = vmatpush3.bf16.msra.mxu1 %v5780_v25  ;;  %v5870_v25 = vpack.c.bf16 %v920_v18, %v914_v17  ;;  %v1201_v17 = vld [vmem:[#allocation19 + $0x8] sm:$0xff]  ;;  %v1207_v18 = vld [vmem:[#allocation19 + $0x38] sm:$0xff] }
 0x316   :  { %5782 = vmatprep.subr.bf16.mxu1 %v7276_v5 }
 0x319   :  { %5784 = vmatpush3.bf16.msra.mxu1 %v5783_v28  ;;  %v930_v28 = vld [vmem:[#allocation18 + $0x1c8] sm:$0xff] }
 0x31a   :  { %5785 = vmatprep.subr.bf16.mxu1 %v7276_v5  ;;  %v5842_v33 = vpack.c.bf16 %v930_v28, %v924_v27  ;;  %v1208_v27 = vld [vmem:[#allocation19 + $0x40] sm:$0xff]  ;;  %v1213_v28 = vld [vmem:[#allocation19 + $0x68] sm:$0xff] }
 0x31b   :  { %v5924_v29 = vpack.c.bf16 %v1208_v27, %v1202_v26  ;;  %v1268_v26 = vld [vmem:[#allocation19 + $0x220] sm:$0xff]  ;;  %v1273_v27 = vld [vmem:[#allocation19 + $0x248] sm:$0xff] }
 0x31d   :  { %5787 = vmatpush3.bf16.msra.mxu1 %v5786_v31  ;;  %v5840_v31 = vpack.c.bf16 %v917_v23, %v911_v22  ;;  %v1203_v22 = vld [vmem:[#allocation19 + $0x18] sm:$0xff]  ;;  %v1209_v23 = vld [vmem:[#allocation19 + $0x48] sm:$0xff] }
 0x31e   :  { %5788 = vmatprep.subr.bf16.mxu1 %v7276_v5 }
 0x321   :  { %5790 = vmatpush3.bf16.msra.mxu1 %v5789_v34  ;;  %v923_v34 = vld [vmem:[#allocation18 + $0x190] sm:$0xff] }
 0x322   :  { %5791 = vmatprep.subr.bf16.mxu1 %v7276_v5  ;;  %v5844_v43 = vpack.c.bf16 %v929_v35, %v923_v34  ;;  %v1215_v35 = vld [vmem:[#allocation19 + $0x78] sm:$0xff] }
 0x323   :  { %v5495_v45 = vpop.f32.mrb[2].mxu0  ;;  %v5926_v38 = vpack.c.bf16 %v1221_v36, %v1215_v35  ;;  %v1278_v35 = vld [vmem:[#allocation19 + $0x270] sm:$0xff] }
 0x324   :  { %v767_v49 = vpop.f32.mrb[3].mxu0  ;;  %v773_v53 = vadd.f32 %v5495_v45, %v5037_v40 }
 0x325   :  { %5793 = vmatpush3.bf16.msra.mxu1 %v5792_v39  ;;  %v768_v54 = vadd.f32 %v5037_v40, %v767_v49  ;;  %v936_v39 = vld [vmem:[#allocation18 + $0x1f8] sm:$0xff]  ;;  %v942_v40 = vld [vmem:[#allocation18 + $0x228] sm:$0xff] }
 0x326   :  { %5827 = vmatprep.subr.bf16.mxu1 %v5826_v41  ;;  %v7644_v4 = vmax.f32 %v773_v53, 0.0  ;;  %v938_v41 = vld [vmem:[#allocation18 + $0x208] sm:$0xff]  ;;  %v5846_v45 = vpack.c.bf16 %v942_v40, %v936_v39  ;;  %v1220_v39 = vld [vmem:[#allocation19 + $0xa0] sm:$0xff] }
 0x327   :  { %v7642_v61 = vmax.f32 %v768_v54, 0.0  ;;  %v5878_v49 = vpack.c.bf16 %v944_v42, %v938_v41  ;;  %v950_v53 = vld [vmem:[#allocation18 + $0x268] sm:$0xff]  ;;  %v956_v54 = vld [vmem:[#allocation18 + $0x298] sm:$0xff] }
 0x328   :  { %5529 = vmatmul.mubr.f32.vlgmr.msra.gmra.mrb[2].mxu1 %v778_v52  ;;  %v954_v52 = vld [vmem:[#allocation18 + $0x288] sm:$0xff]  ;;  %v1231_v41 = vld [vmem:[#allocation19 + $0xf8] sm:$0xff] }
 0x329   :  { %1034 = vmatmul.mubr.f32.vlgmr.msra.gmra.mrb[4].mxu0 %v7642_v61  ;;  %5829 = vmatpush1.bf16.msra.mxu1 %v5828_v55  ;;  %v5848_v55 = vpack.c.bf16 %v941_v47, %v935_v46  ;;  %v1225_v40 = vld [vmem:[#allocation19 + $0xc8] sm:$0xff]  ;;  %v1227_v46 = vld [vmem:[#allocation19 + $0xd8] sm:$0xff] }
 0x32a   :  { %5861 = vmatpush1.bf16.msra.mxu0 %v5860_v56  ;;  %5831 = vmatprep.subr.bf16.mxu1 %v5830_v57  ;;  %v5880_v56 = vpack.c.bf16 %v943_v50, %v937_v48  ;;  %v5850_v57 = vpack.c.bf16 %v954_v52, %v948_v51  ;;  %v1233_v47 = vld [vmem:[#allocation19 + $0x108] sm:$0xff]  ;;  %v1226_v48 = vld [vmem:[#allocation19 + $0xd0] sm:$0xff] }
 0x32b   :  { %5863 = vmatprep.subr.bf16.mxu0 %v5862_v62  ;;  %1039 = vmatprep.mubr.f32.mxu0 %v7278_v6  ;;  %v5882_v62 = vpack.c.bf16 %v956_v54, %v950_v53  ;;  %v5930_v51 = vpack.c.bf16 %v1233_v47, %v1227_v46  ;;  %v1237_v52 = vld [vmem:[#allocation19 + $0x128] sm:$0xff]  ;;  %v1243_v53 = vld [vmem:[#allocation19 + $0x158] sm:$0xff]  ;;  %v1236_v54 = vld [vmem:[#allocation19 + $0x120] sm:$0xff] }
 0x32c   :  { %1110 = vmatprep.mubr.f32.mxu1 %v7278_v6  ;;  %v1287_v46 = vld [vmem:[#allocation19 + $0x2b8] sm:$0xff] }
 0x32d   :  { %5833 = vmatpush1.bf16.msra.mxu1 %v5832_v7  ;;  %1040 = vmatmul.mubr.f32.gmra.mrb[6].mxu0 %v7644_v4  ;;  %v5852_v7 = vpack.c.bf16 %v953_v59, %v947_v58  ;;  %v1239_v58 = vld [vmem:[#allocation19 + $0x138] sm:$0xff]  ;;  %v1245_v59 = vld [vmem:[#allocation19 + $0x168] sm:$0xff] }
 0x32e   :  { %5865 = vmatpush1.bf16.msra.mxu0 %v5864_v8  ;;  %5835 = vmatprep.subr.bf16.mxu1 %v5834_v9  ;;  %v5884_v8 = vpack.c.bf16 %v955_v63, %v949_v60  ;;  %v5854_v9 = vpack.c.bf16 %v966_v1, %v960_v0  ;;  %v5934_v60 = vpack.c.bf16 %v1245_v59, %v1239_v58  ;;  %v1244_v63 = vld [vmem:[#allocation19 + $0x160] sm:$0xff]  ;;  %v1249_v0 = vld [vmem:[#allocation19 + $0x188] sm:$0xff]  ;;  %v1255_v1 = vld [vmem:[#allocation19 + $0x1b8] sm:$0xff] }
 0x32f   :  { %5867 = vmatprep.subr.bf16.mxu0 %v5866_v13  ;;  %1187 = vmatprep.mubr.f32.mxu0 %v7278_v6  ;;  %v961_v13 = vld [vmem:[#allocation18 + $0x2c0] sm:$0xff]  ;;  %v5038_v58 = vld [vmem:[#allocation16] ss:$0 sm:$0xff] }
 0x330   :  { %v5888_v16 = vpack.c.bf16 %v967_v14, %v961_v13  ;;  %v1256_v14 = vld [vmem:[#allocation19 + $0x1c0] sm:$0xff] }
 0x331   :  { %5837 = vmatpush1.bf16.msra.mxu1 %v5836_v19  ;;  %v1200_v19 = vld [vmem:[#allocation19] sm:$0xff] }
 0x332   :  { %5869 = vmatpush1.bf16.msra.mxu0 %v5868_v20  ;;  %5839 = vmatprep.subr.bf16.mxu1 %v5838_v21  ;;  %v5890_v20 = vpack.c.bf16 %v1207_v18, %v1201_v17  ;;  %v1206_v21 = vld [vmem:[#allocation19 + $0x30] sm:$0xff]  ;;  %v1263_v17 = vld [vmem:[#allocation19 + $0x1f8] sm:$0xff]  ;;  %v1269_v18 = vld [vmem:[#allocation19 + $0x228] sm:$0xff] }
 0x333   :  { %5871 = vmatprep.subr.bf16.mxu0 %v5870_v25  ;;  %v5892_v24 = vpack.c.bf16 %v1206_v21, %v1200_v19  ;;  %v5922_v25 = vpack.c.bf16 %v1209_v23, %v1203_v22  ;;  %v5908_v19 = vpack.c.bf16 %v1254_v11, %v1248_v10  ;;  %v1260_v22 = vld [vmem:[#allocation19 + $0x1e0] sm:$0xff]  ;;  %v1266_v23 = vld [vmem:[#allocation19 + $0x210] sm:$0xff] }
 0x334   :  { %v1204_v59 = vld [vmem:[#allocation19 + $0x20] sm:$0xff] }
 0x335   :  { %5841 = vmatpush1.bf16.msra.mxu1 %v5840_v31  ;;  %v1212_v31 = vld [vmem:[#allocation19 + $0x60] sm:$0xff] }
 0x336   :  { %5873 = vmatpush1.bf16.msra.mxu0 %v5872_v32  ;;  %5843 = vmatprep.subr.bf16.mxu1 %v5842_v33  ;;  %v1218_v32 = vld [vmem:[#allocation19 + $0x90] sm:$0xff]  ;;  %v5894_v33 = vpack.c.bf16 %v1219_v30, %v1213_v28  ;;  %v1279_v28 = vld [vmem:[#allocation19 + $0x278] sm:$0xff]  ;;  %v1281_v30 = vld [vmem:[#allocation19 + $0x288] sm:$0xff] }
 0x337   :  { %5875 = vmatprep.subr.bf16.mxu0 %v5874_v37  ;;  %v5896_v34 = vpack.c.bf16 %v1218_v32, %v1212_v31  ;;  %v1214_v37 = vld [vmem:[#allocation19 + $0x70] sm:$0xff]  ;;  %v5912_v31 = vpack.c.bf16 %v1266_v23, %v1260_v22  ;;  %v1216_v11 = vld [vmem:[#allocation19 + $0x80] sm:$0xff]  ;;  %v1247_v22 = vld [vmem:[#allocation19 + $0x178] sm:$0xff] }
 0x338   :  { %v5928_v42 = vpack.c.bf16 %v1220_v39, %v1214_v37  ;;  %v1274_v37 = vld [vmem:[#allocation19 + $0x250] sm:$0xff] }
 0x339   :  { %5845 = vmatpush1.bf16.msra.mxu1 %v5844_v43  ;;  %v5898_v43 = vpack.c.bf16 %v1231_v41, %v1225_v40  ;;  %v1285_v41 = vld [vmem:[#allocation19 + $0x2a8] sm:$0xff] }
 0x33a   :  { %5877 = vmatpush1.bf16.msra.mxu0 %v5876_v44  ;;  %5847 = vmatprep.subr.bf16.mxu1 %v5846_v45  ;;  %v1224_v44 = vld [vmem:[#allocation19 + $0xc0] sm:$0xff]  ;;  %v1230_v45 = vld [vmem:[#allocation19 + $0xf0] sm:$0xff] }
 0x33b   :  { %5879 = vmatprep.subr.bf16.mxu0 %v5878_v49  ;;  %v1232_v49 = vld [vmem:[#allocation19 + $0x100] sm:$0xff]  ;;  %v5900_v50 = vpack.c.bf16 %v1230_v45, %v1224_v44  ;;  %v1290_v45 = vld [vmem:[#allocation19 + $0x2d0] sm:$0xff] }
 0x33c   :  { %v1284_v44 = vld [vmem:[#allocation19 + $0x2a0] sm:$0xff] }
 0x33d   :  { %5849 = vmatpush1.bf16.msra.mxu1 %v5848_v55  ;;  %v5932_v55 = vpack.c.bf16 %v1232_v49, %v1226_v48  ;;  %v5920_v47 = vpack.c.bf16 %v1290_v45, %v1284_v44  ;;  %v1293_v48 = vld [vmem:[#allocation19 + $0x2e8] sm:$0xff]  ;;  %v1286_v49 = vld [vmem:[#allocation19 + $0x2b0] sm:$0xff] }
 0x33e   :  { %5881 = vmatpush1.bf16.msra.mxu0 %v5880_v56  ;;  %5851 = vmatprep.subr.bf16.mxu1 %v5850_v57  ;;  %v5902_v56 = vpack.c.bf16 %v1243_v53, %v1237_v52  ;;  %v1242_v57 = vld [vmem:[#allocation19 + $0x150] sm:$0xff]  ;;  %v1205_v53 = vld [vmem:[#allocation19 + $0x28] sm:$0xff] }
 0x33f   :  { %5883 = vmatprep.subr.bf16.mxu0 %v5882_v62  ;;  %v1238_v62 = vld [vmem:[#allocation19 + $0x130] sm:$0xff]  ;;  %v5904_v2 = vpack.c.bf16 %v1242_v57, %v1236_v54  ;;  %v1211_v54 = vld [vmem:[#allocation19 + $0x58] sm:$0xff]  ;;  %v1289_v45 = vld [vmem:[#allocation19 + $0x2c8] sm:$0xff] }
 0x340   :  { %v1282_v44 = vld [vmem:[#allocation19 + $0x290] sm:$0xff] }
 0x341   :  { %5853 = vmatpush1.bf16.msra.mxu1 %v5852_v7  ;;  %v1257_v7 = vld [vmem:[#allocation19 + $0x1c8] sm:$0xff] }
 0x342   :  { %5885 = vmatpush1.bf16.msra.mxu0 %v5884_v8  ;;  %5855 = vmatprep.subr.bf16.mxu1 %v5854_v9  ;;  %v5936_v8 = vpack.c.bf16 %v1244_v63, %v1238_v62  ;;  %v5906_v9 = vpack.c.bf16 %v1255_v1, %v1249_v0  ;;  %v5938_v13 = vpack.c.bf16 %v1257_v7, %v1251_v3  ;;  %v1217_v63 = vld [vmem:[#allocation19 + $0x88] sm:$0xff]  ;;  %v1223_v0 = vld [vmem:[#allocation19 + $0xb8] sm:$0xff] }
 0x343   :  { %5887 = vmatprep.subr.bf16.mxu0 %v5886_v12  ;;  %v1250_v12 = vld [vmem:[#allocation19 + $0x190] sm:$0xff]  ;;  %v5958_v10 = vpack.c.bf16 %v1223_v0, %v1217_v63 }
 0x345   :  { %5857 = vmatpush1.bf16.msra.mxu1 %v5856_v15  ;;  %v1261_v15 = vld [vmem:[#allocation19 + $0x1e8] sm:$0xff] }
 0x346   :  { %5889 = vmatpush1.bf16.msra.mxu0 %v5888_v16  ;;  %5891 = vmatprep.subr.bf16.mxu1 %v5890_v20  ;;  %v1267_v16 = vld [vmem:[#allocation19 + $0x218] sm:$0xff]  ;;  %v5940_v20 = vpack.c.bf16 %v1256_v14, %v1250_v12  ;;  %v1222_v12 = vld [vmem:[#allocation19 + $0xb0] sm:$0xff] }
 0x347   :  { %5923 = vmatprep.subr.bf16.mxu0 %v5922_v25  ;;  %v5910_v21 = vpack.c.bf16 %v1267_v16, %v1261_v15  ;;  %v5942_v25 = vpack.c.bf16 %v1269_v18, %v1263_v17  ;;  %v1235_v14 = vld [vmem:[#allocation19 + $0x118] sm:$0xff]  ;;  %v5960_v16 = vpack.c.bf16 %v1222_v12, %v1216_v11 }
 0x348   :  { %1111 = vmatmul.mubr.f32.vlgmr.msra.gmra.mrb[4].mxu1 %v7642_v61 }
 0x349   :  { %1188 = vmatmul.mubr.f32.vlgmr.msra.gmra.mrb[8].mxu0 %v7642_v61  ;;  %1116 = vmatprep.mubr.f32.mxu1 %v7278_v6 }
 0x34a   :  { %1193 = vmatprep.mubr.f32.mxu0 %v7278_v6  ;;  %5893 = vmatpush1.bf16.msra.mxu1 %v5892_v24  ;;  %v1262_v24 = vld [vmem:[#allocation19 + $0x1f0] sm:$0xff] }
 0x34b   :  { %5925 = vmatpush1.bf16.msra.mxu0 %v5924_v29  ;;  %5895 = vmatprep.subr.bf16.mxu1 %v5894_v33  ;;  %v1275_v29 = vld [vmem:[#allocation19 + $0x258] sm:$0xff]  ;;  %v5944_v32 = vpack.c.bf16 %v1268_v26, %v1262_v24  ;;  %v5914_v33 = vpack.c.bf16 %v1279_v28, %v1273_v27  ;;  %v1246_v26 = vld [vmem:[#allocation19 + $0x170] sm:$0xff]  ;;  %v1253_v27 = vld [vmem:[#allocation19 + $0x1a8] sm:$0xff] }
 0x34c   :  { %1117 = vmatmul.mubr.f32.gmra.mrb[6].mxu1 %v7644_v4  ;;  %5927 = vmatprep.subr.bf16.mxu0 %v5926_v38  ;;  %v5946_v36 = vpack.c.bf16 %v1281_v30, %v1275_v29  ;;  %v1280_v38 = vld [vmem:[#allocation19 + $0x280] sm:$0xff]  ;;  %v1259_v28 = vld [vmem:[#allocation19 + $0x1d8] sm:$0xff] }
 0x34d   :  { %1194 = vmatmul.mubr.f32.gmra.mrb[10].mxu0 %v7644_v4  ;;  %1360 = vmatprep.mubr.f32.mxu1 %v7278_v6  ;;  %v5948_v40 = vpack.c.bf16 %v1280_v38, %v1274_v37  ;;  %v5970_v30 = vpack.c.bf16 %v1259_v28, %v1253_v27  ;;  %v1264_v37 = vld [vmem:[#allocation19 + $0x200] sm:$0xff]  ;;  %v1270_v38 = vld [vmem:[#allocation19 + $0x230] sm:$0xff] }
 0x34e   :  { %1431 = vmatprep.mubr.f32.mxu0 %v7278_v6  ;;  %5897 = vmatpush1.bf16.msra.mxu1 %v5896_v34  ;;  %v1272_v34 = vld [vmem:[#allocation19 + $0x240] sm:$0xff] }
 0x34f   :  { %5929 = vmatpush1.bf16.msra.mxu0 %v5928_v42  ;;  %5899 = vmatprep.subr.bf16.mxu1 %v5898_v43  ;;  %v5916_v39 = vpack.c.bf16 %v1278_v35, %v1272_v34  ;;  %v1291_v42 = vld [vmem:[#allocation19 + $0x2d8] sm:$0xff] }
 0x350   :  { %5931 = vmatprep.subr.bf16.mxu0 %v5930_v51  ;;  %v5918_v43 = vpack.c.bf16 %v1291_v42, %v1285_v41  ;;  %v5950_v51 = vpack.c.bf16 %v1293_v48, %v1287_v46  ;;  %v1271_v34 = vld [vmem:[#allocation19 + $0x238] sm:$0xff]  ;;  %v5976_v41 = vpack.c.bf16 %v1270_v38, %v1264_v37 }
 0x351   :  { %v1295_v46 = vld [vmem:[#allocation19 + $0x2f8] sm:$0xff] }
 0x352   :  { %5901 = vmatpush1.bf16.msra.mxu1 %v5900_v50  ;;  %v1292_v50 = vld [vmem:[#allocation19 + $0x2e0] sm:$0xff]  ;;  %v5982_v48 = vpack.c.bf16 %v1295_v46, %v1289_v45 }
 0x353   :  { %5933 = vmatpush1.bf16.msra.mxu0 %v5932_v55  ;;  %5903 = vmatprep.subr.bf16.mxu1 %v5902_v56  ;;  %v5952_v52 = vpack.c.bf16 %v1292_v50, %v1286_v49  ;;  %v5954_v55 = vpack.c.bf16 %v1211_v54, %v1205_v53  ;;  %v1288_v49 = vld [vmem:[#allocation19 + $0x2c0] sm:$0xff]  ;;  %v1294_v50 = vld [vmem:[#allocation19 + $0x2f0] sm:$0xff] }
 0x354   :  { %5935 = vmatprep.subr.bf16.mxu0 %v5934_v60  ;;  %v1210_v60 = vld [vmem:[#allocation19 + $0x50] sm:$0xff] }
 0x355   :  { %v5956_v7 = vpack.c.bf16 %v1210_v60, %v1204_v59 }
 0x356   :  { %5905 = vmatpush1.bf16.msra.mxu1 %v5904_v2 }
 0x357   :  { %5937 = vmatpush1.bf16.msra.mxu0 %v5936_v8  ;;  %5907 = vmatprep.subr.bf16.mxu1 %v5906_v9 }
 0x358   :  { %5939 = vmatprep.subr.bf16.mxu0 %v5938_v13  ;;  %v1229_v13 = vld [vmem:[#allocation19 + $0xe8] sm:$0xff] }
 0x359   :  { %v5962_v18 = vpack.c.bf16 %v1235_v14, %v1229_v13  ;;  %v7708_v13 = vld [vmem:[%s8110_s24] sm:$0xff]  ;;  %v7711_v14 = vld [vmem:[%s8110_s24 + $0x8] sm:$0xff] }
 0x35a   :  { %5909 = vmatpush1.bf16.msra.mxu1 %v5908_v19  ;;  %v1228_v19 = vld [vmem:[#allocation19 + $0xe0] sm:$0xff]  ;;  %vm462_vm1 = vcmp.gt.f32.partialorder %v7708_v13, 0.0  ;;  %vm463_vm2 = vcmp.gt.f32.partialorder %v7711_v14, 0.0 }
 0x35b   :  { %5941 = vmatpush1.bf16.msra.mxu0 %v5940_v20  ;;  %5911 = vmatprep.subr.bf16.mxu1 %v5910_v21  ;;  %v1234_v20 = vld [vmem:[#allocation19 + $0x110] sm:$0xff]  ;;  %v1241_v21 = vld [vmem:[#allocation19 + $0x148] sm:$0xff] }
 0x35c   :  { %5943 = vmatprep.subr.bf16.mxu0 %v5942_v25  ;;  %v5964_v23 = vpack.c.bf16 %v1234_v20, %v1228_v19  ;;  %v5966_v24 = vpack.c.bf16 %v1247_v22, %v1241_v21  ;;  %v1240_v25 = vld [vmem:[#allocation19 + $0x140] sm:$0xff] }
 0x35d   :  { %v5968_v29 = vpack.c.bf16 %v1246_v26, %v1240_v25 }
 0x35e   :  { %5913 = vmatpush1.bf16.msra.mxu1 %v5912_v31  ;;  %v1252_v31 = vld [vmem:[#allocation19 + $0x1a0] sm:$0xff] }
 0x35f   :  { %5945 = vmatpush1.bf16.msra.mxu0 %v5944_v32  ;;  %5915 = vmatprep.subr.bf16.mxu1 %v5914_v33  ;;  %v1258_v32 = vld [vmem:[#allocation19 + $0x1d0] sm:$0xff]  ;;  %v1265_v33 = vld [vmem:[#allocation19 + $0x208] sm:$0xff] }
 0x360   :  { %5947 = vmatprep.subr.bf16.mxu0 %v5946_v36  ;;  %v5972_v35 = vpack.c.bf16 %v1258_v32, %v1252_v31  ;;  %v5974_v36 = vpack.c.bf16 %v1271_v34, %v1265_v33 }
 0x362   :  { %5917 = vmatpush1.bf16.msra.mxu1 %v5916_v39  ;;  %v1277_v39 = vld [vmem:[#allocation19 + $0x268] sm:$0xff] }
 0x363   :  { %5949 = vmatpush1.bf16.msra.mxu0 %v5948_v40  ;;  %5919 = vmatprep.subr.bf16.mxu1 %v5918_v43  ;;  %v1283_v40 = vld [vmem:[#allocation19 + $0x298] sm:$0xff]  ;;  %v1276_v43 = vld [vmem:[#allocation19 + $0x260] sm:$0xff] }
 0x364   :  { %5951 = vmatprep.subr.bf16.mxu0 %v5950_v51  ;;  %v5978_v42 = vpack.c.bf16 %v1283_v40, %v1277_v39  ;;  %v5984_v51 = vpack.c.bf16 %v1294_v50, %v1288_v49 }
 0x366   :  { %5921 = vmatpush1.bf16.msra.mxu1 %v5920_v47  ;;  %v5980_v47 = vpack.c.bf16 %v1282_v44, %v1276_v43 }
 0x367   :  { %5953 = vmatpush1.bf16.msra.mxu0 %v5952_v52  ;;  %5955 = vmatprep.subr.bf16.mxu1 %v5954_v55 }
 0x3db   :  { %v7659_v56 = vpop.f32.mrb[0].mxu1 }
 0x3dc   :  { %v5460_v57 = vpop.f32.mrb[1].mxu1 }
 0x3fb   :  { %v868_v62 = vpop.f32.mrb[2].mxu1 }
 0x3fc   :  { %v869_v1 = vadd.f32 %v5038_v58, %v868_v62  ;;  %v5530_v2 = vpop.f32.mrb[3].mxu1  ;;  %v1035_v3 = vpop.f32.mrb[4].mxu0 }
 0x3fd   :  { %v7661_v8 = vpop.f32.mrb[5].mxu0 }
 0x3fe   :  { %v7663_v9 = vmax.f32 %v869_v1, 0.0 }
 0x400   :  { %1361 = vmatmul.mubr.f32.vlgmr.msra.gmra.mrb[8].mxu1 %v7663_v9  ;;  %1432 = vmatmul.mubr.f32.vlgmr.msra.gmra.mrb[12].mxu0 %v7663_v9  ;;  %v7667_v15 = vpop.f32.mrb[6].mxu0 }
 0x401   :  { %5957 = vmatpush1.bf16.msra.mxu1 %v5956_v7  ;;  %1502 = vmatprep.mubr.f32.mxu1 %v7278_v6  ;;  %v7670_v17 = vpop.f32.mrb[7].mxu0 }
 0x402   :  { %5959 = vmatprep.subr.bf16.mxu1 %v5958_v10  ;;  %5533 = vmatprep.mubr.f32.mxu0 %v1035_v3 }
 0x405   :  { %5961 = vmatpush1.bf16.msra.mxu1 %v5960_v16 }
 0x406   :  { %5963 = vmatprep.subr.bf16.mxu1 %v5962_v18 }
 0x409   :  { %5965 = vmatpush1.bf16.msra.mxu1 %v5964_v23 }
 0x40a   :  { %5967 = vmatprep.subr.bf16.mxu1 %v5966_v24 }
 0x40d   :  { %5969 = vmatpush1.bf16.msra.mxu1 %v5968_v29 }
 0x40e   :  { %5971 = vmatprep.subr.bf16.mxu1 %v5970_v30 }
 0x411   :  { %5973 = vmatpush1.bf16.msra.mxu1 %v5972_v35 }
 0x412   :  { %5975 = vmatprep.subr.bf16.mxu1 %v5974_v36 }
 0x415   :  { %5977 = vmatpush1.bf16.msra.mxu1 %v5976_v41 }
 0x416   :  { %5979 = vmatprep.subr.bf16.mxu1 %v5978_v42 }
 0x419   :  { %5981 = vmatpush1.bf16.msra.mxu1 %v5980_v47 }
 0x41a   :  { %5983 = vmatprep.subr.bf16.mxu1 %v5982_v48 }
 0x41b   :  { %v7672_v52 = vpop.f32.mrb[4].mxu1 }
 0x41c   :  { %v7674_v53 = vpop.f32.mrb[8].mxu0  ;;  %v7676_v54 = vpop.f32.mrb[5].mxu1 }
 0x41d   :  { %5985 = vmatpush1.bf16.msra.mxu1 %v5984_v51  ;;  %v7678_v55 = vpop.f32.mrb[9].mxu0 }
 0x41f   :  { %v7680_v57 = vpop.f32.mrb[6].mxu1 }
 0x420   :  { %1503 = vmatmul.mubr.f32.vlgmr.msra.gmra.mrb[10].mxu1 %v7663_v9  ;;  %v6019_v58 = vpack.c.bf16 %v7680_v57, %v7672_v52  ;;  %v7685_v59 = vpop.f32.mrb[10].mxu0  ;;  %v7687_v60 = vpop.f32.mrb[7].mxu1  ;;  %v461_v57 = vld [vmem:[%s8111_s30] sm:$0xff] }
 0x421   :  { %v6022_v62 = vpack.c.bf16 %v7685_v59, %v7674_v53  ;;  %v6025_v63 = vpack.c.bf16 %v7687_v60, %v7676_v54  ;;  %v7693_v0 = vpop.f32.mrb[11].mxu0  ;;  %vm479_vm4 = vcmp.gt.f32.partialorder %v461_v57, 0.0 }
 0x422   :  { %v6028_v1 = vpack.c.bf16 %v7693_v0, %v7678_v55 }
 0x4d3   :  { %v7697_v2 = vpop.f32.mrb[8].mxu1  ;;  %v1433_v3 = vpop.f32.mrb[12].mxu0 }
 0x4d4   :  { %v7699_v7 = vpop.f32.mrb[9].mxu1  ;;  %v1435_v10 = vpop.f32.mrb[13].mxu0  ;;  %5531 = vmatprep.subr.mxu0 %v1433_v3 }
 0x4d5   :  { %5532 = vmatpush3.xpose.msra.mxu0 %v1433_v3 }
 0x4d6   :  { %5541 = vmatprep.subr.mxu0 %v1435_v10 }
 0x4d8   :  { %5534 = vmatmul.mubr.f32.vlgmr.msra.gmra.mrb[14].mxu0 %v7667_v15  ;;  %v7279_v15 = vmov -1e+30  }
 0x4d9   :  { %5542 = vmatpush3.xpose.msra.mxu0 %v1435_v10  ;;  %5543 = vmatprep.mubr.f32.mxu0 %v7661_v8  ;;  %v7716_v8 = vsel %vm462_vm1, 0.0, %v7279_v15 }
 0x4dc   :  { %5544 = vmatmul.mubr.f32.vlgmr.msra.gmra.mrb[16].mxu0 %v7670_v17  ;;  %v7719_v17 = vsel %vm463_vm2, 0.0, %v7279_v15 }
 0x4f3   :  { %v1504_v11 = vpop.f32.mrb[10].mxu1 }
 0x4f4   :  { %v7704_v12 = vpop.f32.mrb[11].mxu1  ;;  %5536 = vmatprep.subr.mxu1 %v1504_v11 }
 0x4f5   :  { %5537 = vmatpush3.msra.mxu1 %v1504_v11 }
 0x4f6   :  { %5546 = vmatprep.subr.mxu1 %v7704_v12 }
 0x5ab   :  { %v5535_v16 = vpop.f32.mrb[14].mxu0 }
 0x5ac   :  { %v1609_v18 = vpop.f32.mrb[15].mxu0  ;;  %v1615_v20 = vadd.f32 %v5535_v16, %v7719_v17 }
 0x5ad   :  { %v1610_v19 = vadd.f32 %v1609_v18, %v7716_v8 }
 0x5ae   :  { %v1621_v27 = vsel %vm466_vm3, %v1615_v20, -inf }
 0x5af   :  { %v5545_v21 = vpop.f32.mrb[16].mxu0  ;;  %v1618_v22 = vsel %vm466_vm3, %v1610_v19, -inf }
 0x5b0   :  { %v1787_v23 = vpop.f32.mrb[17].mxu0  ;;  %1619 = vmax.xlane.f32.xlu0 %v1618_v22  ;;  %v1793_v25 = vadd.f32 %v5545_v21, %v7719_v17 }
 0x5b1   :  { %v1788_v24 = vadd.f32 %v1787_v23, %v7716_v8 }
 0x5b2   :  { %v1799_v28 = vsel %vm466_vm3, %v1793_v25, -inf }
 0x5b3   :  { %v1796_v26 = vsel %vm466_vm3, %v1788_v24, -inf }
 0x5b4   :  { %1797 = vmax.xlane.f32.xlu1 %v1796_v26  ;;  %1622 = vmax.xlane.f32.xlu0 %v1621_v27 }
 0x5b8   :  { %1800 = vmax.xlane.f32.xlu1 %v1799_v28 }
 0x63d   :  { %v1620_v29 = vpop.xlane.xlu0 %1619 }
 0x63e   :  { %v1624_v30 = vsub.f32 %v1610_v19, %v1620_v29 }
 0x640   :  { %v1626_v31 = vmul.f32 1.442695, %v1624_v30 }
 0x641   :  { %v1798_v32 = vpop.xlane.xlu1 %1797  ;;  %v1623_v33 = vpop.xlane.xlu0 %1622 }
 0x642   :  { %6570 = vpow2.f32 %v1626_v31  ;;  %v1802_v34 = vsub.f32 %v1788_v24, %v1798_v32  ;;  %v1625_v35 = vsub.f32 %v1615_v20, %v1623_v33  ;;  %v7280_v32 = vmov 0  }
 0x643   :  { %6569 = vset.pattern.permute.xlu0 %v7280_v32  ;;  %6568 = vset.pattern.permute.xlu1 %v7280_v32  ;;  %v482_v33 = vsel %vm481_vm5, %v461_v57, 0.0  ;;  %v1517_v57 = vld [vmem:[%s8112_s0 + $0x40] sm:$0xff]  ;;  %v1522_v32 = vld [vmem:[%s8112_s0 + $0x68] sm:$0xff] }
 0x644   :  { %v1804_v36 = vmul.f32 1.442695, %v1802_v34  ;;  %v1628_v37 = vmul.f32 1.442695, %v1625_v35  ;;  %v1525_v34 = vld [vmem:[%s8112_s0 + $0x80] sm:$0xff]  ;;  %v1526_v35 = vld [vmem:[%s8112_s0 + $0x88] sm:$0xff] }
 0x645   :  { %v1801_v38 = vpop.xlane.xlu1 %1800 }
 0x646   :  { %6572 = vpow2.f32 %v1804_v36  ;;  %v1803_v39 = vsub.f32 %v1793_v25, %v1801_v38  ;;  %v5986_v36 = vpack.c.bf16 %v1526_v35, %v1525_v34  ;;  %v1510_v38 = vld [vmem:[%s8112_s0 + $0x8] sm:$0xff] }
 0x647   :  { %6574 = vpow2.f32 %v1628_v37  ;;  %v1509_v37 = vld [vmem:[%s8112_s0] sm:$0xff] }
 0x648   :  { %v1806_v40 = vmul.f32 1.442695, %v1803_v39  ;;  %v5988_v39 = vpack.c.bf16 %v1510_v38, %v1509_v37  ;;  %5987 = vmatprep.subr.bf16.mxu0 %v5986_v36 }
 0x64a   :  { %6576 = vpow2.f32 %v1806_v40  ;;  %5989 = vmatpush3.bf16.msra.mxu0 %v5988_v39  ;;  %v1527_v40 = vld [vmem:[%s8112_s0 + $0x90] sm:$0xff] }
 0x64c   :  { %v6571_v41 = vpop.eup %6570 }
 0x64d   :  { %v1630_v42 = vsel %vm466_vm3, %v6571_v41, 0.0 }
 0x64e   :  { %1631 = vadd.xlane.f32.xlu0 %v1630_v42  ;;  %v1511_v42 = vld [vmem:[%s8112_s0 + $0x10] sm:$0xff] }
 0x650   :  { %v6573_v43 = vpop.eup %6572 }
 0x651   :  { %v6575_v44 = vpop.eup %6574  ;;  %v1808_v45 = vsel %vm466_vm3, %v6573_v43, 0.0 }
 0x652   :  { %1809 = vadd.xlane.f32.xlu0 %v1808_v45  ;;  %v1633_v46 = vsel %vm466_vm3, %v6575_v44, 0.0  ;;  %v1529_v45 = vld [vmem:[%s8112_s0 + $0xa0] sm:$0xff] }
 0x653   :  { %1634 = vadd.xlane.f32.xlu1 %v1633_v46  ;;  %v1530_v46 = vld [vmem:[%s8112_s0 + $0xa8] sm:$0xff] }
 0x654   :  { %v6577_v47 = vpop.eup %6576 }
 0x655   :  { %v1811_v48 = vsel %vm466_vm3, %v6577_v47, 0.0 }
 0x657   :  { %1812 = vadd.xlane.f32.xlu1 %v1811_v48  ;;  %v1513_v48 = vld [vmem:[%s8112_s0 + $0x20] sm:$0xff] }
 0x6db   :  { %v1632_v49 = vpop.xlane.xlu0 %1631 }
 0x6dc   :  { %6578 = vrcp.f32 %v1632_v49  ;;  %v1514_v49 = vld [vmem:[%s8112_s0 + $0x28] sm:$0xff] }
 0x6df   :  { %v1810_v50 = vpop.xlane.xlu0 %1809 }
 0x6e0   :  { %v1635_v51 = vpop.xlane.xlu1 %1634  ;;  %6580 = vrcp.f32 %v1810_v50  ;;  %v5996_v50 = vpack.c.bf16 %v1514_v49, %v1513_v48 }
 0x6e1   :  { %6582 = vrcp.f32 %v1635_v51  ;;  %v5048_v51 = vld [vmem:[#allocation3] ss:$0 sm:$0xff] }
 0x6e4   :  { %v1813_v3 = vpop.xlane.xlu1 %1812 }
 0x6e5   :  { %6584 = vrcp.f32 %v1813_v3  ;;  %v1531_v3 = vld [vmem:[%s8112_s0 + $0xb0] sm:$0xff] }
 0x6e6   :  { %v6579_v10 = vpop.eup %6578 }
 0x6e7   :  { %v1638_v11 = vmul.f32 %v6579_v10, %v6571_v41  ;;  %v1528_v41 = vld [vmem:[%s8112_s0 + $0x98] sm:$0xff] }
 0x6e8   :  { %v1532_v10 = vld [vmem:[%s8112_s0 + $0xb8] sm:$0xff] }
 0x6e9   :  { %5538 = vmatprep.mubr.msk.f32.mxu1 %vm466_vm3, %v1638_v11  ;;  %v5998_v11 = vpack.c.bf16 %v1532_v10, %v1531_v3 }
 0x6ea   :  { %v6581_v16 = vpop.eup %6580 }
 0x6eb   :  { %v6583_v18 = vpop.eup %6582  ;;  %v1816_v19 = vmul.f32 %v6581_v16, %v6573_v43  ;;  %v1512_v43 = vld [vmem:[%s8112_s0 + $0x18] sm:$0xff]  ;;  %v1515_v16 = vld [vmem:[%s8112_s0 + $0x30] sm:$0xff] }
 0x6ec   :  { %v1639_v20 = vmul.f32 %v6583_v18, %v6575_v44  ;;  %v5992_v44 = vpack.c.bf16 %v1512_v43, %v1511_v42  ;;  %v1516_v18 = vld [vmem:[%s8112_s0 + $0x38] sm:$0xff] }
 0x6ee   :  { %5539 = vmatmul.mubr.msk.f32.vlgmr.msra.gmra.mrb[12].mxu1 %vm466_vm3, %v1639_v20  ;;  %v1533_v20 = vld [vmem:[%s8112_s0 + $0xc0] sm:$0xff] }
 0x6ef   :  { %v6585_v21 = vpop.eup %6584  ;;  %5547 = vmatpush3.msra.mxu1 %v7704_v12  ;;  %5548 = vmatprep.mubr.msk.f32.mxu1 %vm466_vm3, %v1816_v19  ;;  %v6000_v19 = vpack.c.bf16 %v1516_v18, %v1515_v16 }
 0x6f0   :  { %v1817_v22 = vmul.f32 %v6585_v21, %v6577_v47  ;;  %6018 = vmatprep.subr.bf16.mxu1 %v7276_v5  ;;  %v5994_v47 = vpack.c.bf16 %v1530_v46, %v1529_v45  ;;  %v1534_v21 = vld [vmem:[%s8112_s0 + $0xc8] sm:$0xff] }
 0x6f2   :  { %5549 = vmatmul.mubr.msk.f32.vlgmr.msra.gmra.mrb[14].mxu1 %vm466_vm3, %v1817_v22  ;;  %v6002_v22 = vpack.c.bf16 %v1534_v21, %v1533_v20  ;;  %v5044_v21 = vld [vmem:[#allocation2] ss:$0 sm:$0xff] }
 0x6f3   :  { %5555 = vmatprep.mubr.msk.f32.mxu1 %vm7277_vm0, %v7278_v6 }
 0x6f6   :  { %6020 = vmatpush3.bf16.xpose.msra.mxu1 %v6019_v58  ;;  %v7762_v58 = vsel %vm479_vm4, 0.0, %v7279_v15 }
 0x6f7   :  { %6021 = vmatprep.subr.bf16.mxu1 %v7276_v5 }
 0x6fd   :  { %5556 = vmatmul.mubr.f32.vlgmr.msra.gmra.mrb[16].mxu1 %v7697_v2 }
 0x6fe   :  { %6023 = vmatpush3.bf16.msra.mxu1 %v6022_v62  ;;  %5562 = vmatprep.mubr.msk.f32.mxu1 %vm7277_vm0, %v7278_v6 }
 0x6ff   :  { %6024 = vmatprep.subr.bf16.mxu1 %v7276_v5 }
 0x7c1   :  { %v7752_v12 = vpop.f32.mrb[12].mxu1 }
 0x7c2   :  { %v7754_v23 = vpop.f32.mrb[13].mxu1 }
 0x7c5   :  { %v7756_v24 = vpop.f32.mrb[14].mxu1 }
 0x7c6   :  { %v7758_v52 = vpop.f32.mrb[15].mxu1 }
 0x7d0   :  { %v2135_v53 = vpop.f32.mrb[16].mxu1 }
 0x7d1   :  { %v2136_v59 = vadd.f32 %v2135_v53, %v7762_v58  ;;  %v5557_v62 = vpop.f32.mrb[17].mxu1  ;;  %v1518_v53 = vld [vmem:[%s8112_s0 + $0x48] sm:$0xff] }
 0x7d2   :  { %v1535_v62 = vld [vmem:[%s8112_s0 + $0xd0] sm:$0xff] }
 0x7d3   :  { %v2139_v2 = vsel %vm481_vm5, %v2136_v59, -inf }
 0x7d4   :  { %2140 = vmax.xlane.f32.xlu0 %v2139_v2  ;;  %v1536_v2 = vld [vmem:[%s8112_s0 + $0xd8] sm:$0xff] }
 0x861   :  { %v2141_v25 = vpop.xlane.xlu0 %2140 }
 0x862   :  { %v2142_v26 = vsub.f32 %v2136_v59, %v2141_v25  ;;  %v6004_v59 = vpack.c.bf16 %v1518_v53, %v1517_v57  ;;  %v1519_v25 = vld [vmem:[%s8112_s0 + $0x50] sm:$0xff]  ;;  %v2493_v57 = vld [vmem:[#allocation25 + $0x38] sm:$0xff] }
 0x863   :  { %v2486_v53 = vld [vmem:[#allocation25] sm:$0xff] }
 0x864   :  { %v2143_v27 = vmul.f32 1.442695, %v2142_v26  ;;  %v6006_v26 = vpack.c.bf16 %v1536_v2, %v1535_v62  ;;  %v2499_v62 = vld [vmem:[#allocation25 + $0x68] sm:$0xff]  ;;  %v2505_v2 = vld [vmem:[#allocation25 + $0x98] sm:$0xff] }
 0x866   :  { %6586 = vpow2.f32 %v2143_v27  ;;  %v1520_v27 = vld [vmem:[%s8112_s0 + $0x58] sm:$0xff] }
 0x870   :  { %v6587_v28 = vpop.eup %6586 }
 0x871   :  { %v2145_v29 = vsel %vm481_vm5, %v6587_v28, 0.0 }
 0x872   :  { %2146 = vadd.xlane.f32.xlu1 %v2145_v29  ;;  %v1538_v29 = vld [vmem:[%s8112_s0 + $0xe8] sm:$0xff] }
 0x8ff   :  { %v2147_v30 = vpop.xlane.xlu1 %2146 }
 0x900   :  { %6588 = vrcp.f32 %v2147_v30  ;;  %v6008_v30 = vpack.c.bf16 %v1520_v27, %v1519_v25  ;;  %v2498_v27 = vld [vmem:[#allocation25 + $0x60] sm:$0xff] }
 0x90a   :  { %v6589_v15 = vpop.eup %6588 }
 0x90b   :  { %v2149_v31 = vmul.f32 %v6589_v15, %v6587_v28  ;;  %v1537_v28 = vld [vmem:[%s8112_s0 + $0xe0] sm:$0xff] }
 0x90c   :  { %v6010_v15 = vpack.c.bf16 %v1538_v29, %v1537_v28  ;;  %v2504_v28 = vld [vmem:[#allocation25 + $0x90] sm:$0xff]  ;;  %v2511_v29 = vld [vmem:[#allocation25 + $0xc8] sm:$0xff] }
 0x90d   :  { %5563 = vmatmul.mubr.msk.f32.vlgmr.msra.gmra.mrb[18].mxu1 %vm481_vm5, %v2149_v31  ;;  %v1521_v31 = vld [vmem:[%s8112_s0 + $0x60] sm:$0xff] }
 0x90e   :  { %6026 = vmatpush3.bf16.xpose.msra.mxu1 %v6025_v63  ;;  %5569 = vmatprep.mubr.msk.f32.mxu1 %vm7277_vm0, %v7278_v6 }
 0x90f   :  { %6027 = vmatprep.subr.bf16.mxu1 %v7276_v5 }
 0x915   :  { %5570 = vmatmul.mubr.f32.vlgmr.msra.gmra.mrb[20].mxu1 %v7699_v7 }
 0x916   :  { %6029 = vmatpush3.bf16.msra.mxu1 %v6028_v1  ;;  %5576 = vmatprep.mubr.msk.f32.mxu1 %vm7277_vm0, %v7278_v6  ;;  %v467_v1 = vsel %vm466_vm3, %v7708_v13, 0.0  ;;  %v5990_v13 = vpack.c.bf16 %v1528_v41, %v1527_v40 }
 0x918   :  { %5991 = vmatprep.subr.bf16.mxu0 %v5990_v13 }
 0x919   :  { %5993 = vmatpush3.bf16.msra.mxu0 %v5992_v44 }
 0x91a   :  { %5995 = vmatprep.subr.bf16.mxu0 %v5994_v47 }
 0x91d   :  { %5997 = vmatpush3.bf16.msra.mxu0 %v5996_v50 }
 0x91e   :  { %5999 = vmatprep.subr.bf16.mxu0 %v5998_v11 }
 0x921   :  { %6001 = vmatpush3.bf16.msra.mxu0 %v6000_v19 }
 0x922   :  { %6003 = vmatprep.subr.bf16.mxu0 %v6002_v22  ;;  %v2487_v22 = vld [vmem:[#allocation25 + $0x8] sm:$0xff] }
 0x925   :  { %6005 = vmatpush3.bf16.msra.mxu0 %v6004_v59  ;;  %v6062_v59 = vpack.c.bf16 %v2493_v57, %v2487_v22 }
 0x926   :  { %6007 = vmatprep.subr.bf16.mxu0 %v6006_v26  ;;  %v6066_v26 = vpack.c.bf16 %v2505_v2, %v2499_v62  ;;  %v2035_v2 = vld [vmem:[#allocation22] sm:$0xff] }
 0x929   :  { %6009 = vmatpush3.bf16.msra.mxu0 %v6008_v30  ;;  %v2517_v30 = vld [vmem:[#allocation25 + $0xf8] sm:$0xff] }
 0x92a   :  { %6011 = vmatprep.subr.bf16.mxu0 %v6010_v15  ;;  %v6068_v15 = vpack.c.bf16 %v2504_v28, %v2498_v27 }
 0x9e0   :  { %v7780_v54 = vpop.f32.mrb[18].mxu1 }
 0x9e1   :  { %v5564_v60 = vpop.f32.mrb[19].mxu1 }
 0x9e2   :  { %v1539_v60 = vld [vmem:[%s8112_s0 + $0xf0] sm:$0xff] }
 0x9e8   :  { %v2289_v63 = vpop.f32.mrb[20].mxu1 }
 0x9e9   :  { %v7783_v7 = vadd.f32 %v2289_v63, %v7762_v58  ;;  %v5571_v55 = vpop.f32.mrb[21].mxu1  ;;  %v1540_v63 = vld [vmem:[%s8112_s0 + $0xf8] sm:$0xff] }
 0x9ea   :  { %v6012_v55 = vpack.c.bf16 %v1522_v32, %v1521_v31  ;;  %v6070_v31 = vpack.c.bf16 %v2517_v30, %v2511_v29  ;;  %v2510_v32 = vld [vmem:[#allocation25 + $0xc0] sm:$0xff] }
 0x9eb   :  { %v2293_v0 = vsel %vm481_vm5, %v7783_v7, -inf }
 0x9ec   :  { %2294 = vmax.xlane.f32.xlu0 %v2293_v0  ;;  %v6014_v0 = vpack.c.bf16 %v1540_v63, %v1539_v60  ;;  %6013 = vmatpush3.bf16.msra.mxu0 %v6012_v55  ;;  %v2516_v60 = vld [vmem:[#allocation25 + $0xf0] sm:$0xff]  ;;  %v2523_v63 = vld [vmem:[#allocation25 + $0x128] sm:$0xff]  ;;  %v2529_v55 = vld [vmem:[#allocation25 + $0x158] sm:$0xff] }
 0x9ee   :  { %6015 = vmatprep.subr.bf16.mxu0 %v6014_v0  ;;  %v6072_v0 = vpack.c.bf16 %v2516_v60, %v2510_v32 }
 0x9f0   :  { %468 = vadd.xlane.f32.xlu0 %v467_v1  ;;  %v1523_v1 = vld [vmem:[%s8112_s0 + $0x70] sm:$0xff] }
 0x9f4   :  { %483 = vadd.xlane.f32.xlu0 %v482_v33  ;;  %v1524_v33 = vld [vmem:[%s8112_s0 + $0x78] sm:$0xff] }
 0x9f5   :  { %v6016_v34 = vpack.c.bf16 %v1524_v33, %v1523_v1  ;;  %v6074_v1 = vpack.c.bf16 %v2529_v55, %v2523_v63  ;;  %v2522_v33 = vld [vmem:[#allocation25 + $0x120] sm:$0xff] }
 0x9f7   :  { %6017 = vmatpush3.bf16.msra.mxu0 %v6016_v34  ;;  %v2528_v34 = vld [vmem:[#allocation25 + $0x150] sm:$0xff] }
 0x9f8   :  { %6063 = vmatprep.subr.bf16.mxu0 %v6062_v59 }
 0xa0a   :  { %2479 = vperm.xlu0 %6569, %v5048_v51  }
 0xa79   :  { %v2295_v35 = vpop.xlane.xlu0 %2294 }
 0xa7a   :  { %v2296_v36 = vsub.f32 %v7783_v7, %v2295_v35  ;;  %v2535_v35 = vld [vmem:[#allocation25 + $0x188] sm:$0xff] }
 0xa7c   :  { %v2297_v37 = vmul.f32 1.442695, %v2296_v36  ;;  %v2541_v36 = vld [vmem:[#allocation25 + $0x1b8] sm:$0xff] }
 0xa7d   :  { %v469_v38 = vpop.xlane.xlu0 %468 }
 0xa7e   :  { %6590 = vpow2.f32 %v2297_v37  ;;  %vm473_vm6 = vcmp.gt.f32.partialorder %v469_v38, 0.0  ;;  %v6076_v37 = vpack.c.bf16 %v2528_v34, %v2522_v33  ;;  %v6078_v38 = vpack.c.bf16 %v2541_v36, %v2535_v35 }
 0xa7f   :  { %v7824_v39 = vsel %vm473_vm6, 1.0, %v7278_v6 }
 0xa80   :  { %v1899_v40 = vmul.f32 %v7824_v39, %v7754_v23  ;;  %v1900_v41 = vmul.f32 %v7824_v39, %v7758_v52  ;;  %v470_v23 = vsel %vm466_vm3, %v7711_v14, 0.0  ;;  %v2492_v14 = vld [vmem:[#allocation25 + $0x30] sm:$0xff] }
 0xa81   :  { %v6064_v25 = vpack.c.bf16 %v2492_v14, %v2486_v53 }
 0xa82   :  { %v1903_v13 = vmul.f32 %v1899_v40, %v1899_v40  ;;  %v1904_v42 = vmul.f32 %v1900_v41, %v1900_v41 }
 0xa84   :  { %v1907_v43 = vmul.f32 %v1903_v13, %v1899_v40  ;;  %v1908_v44 = vmul.f32 %v1904_v42, %v1900_v41  ;;  %v2547_v13 = vld [vmem:[#allocation25 + $0x1e8] sm:$0xff]  ;;  %v2553_v42 = vld [vmem:[#allocation25 + $0x218] sm:$0xff] }
 0xa86   :  { %v1911_v45 = vmul.f32 0.044715, %v1907_v43  ;;  %v1912_v46 = vmul.f32 0.044715, %v1908_v44  ;;  %v6082_v44 = vpack.c.bf16 %v2553_v42, %v2547_v13 }
 0xa88   :  { %v7830_v7 = vpop.eup %6590  ;;  %v1915_v47 = vadd.f32 %v1911_v45, %v1899_v40  ;;  %v1916_v48 = vadd.f32 %v1912_v46, %v1900_v41  ;;  %v2546_v45 = vld [vmem:[#allocation25 + $0x1e0] sm:$0xff]  ;;  %v2552_v46 = vld [vmem:[#allocation25 + $0x210] sm:$0xff] }
 0xa89   :  { %v2299_v49 = vsel %vm481_vm5, %v7830_v7, 0.0 }
 0xa8a   :  { %2300 = vadd.xlane.f32.xlu1 %v2299_v49  ;;  %v1920_v50 = vmul.f32 0.7978846, %v1916_v48  ;;  %v1919_v51 = vmul.f32 0.7978846, %v1915_v47  ;;  %v6084_v47 = vpack.c.bf16 %v2552_v46, %v2546_v45  ;;  %v2559_v48 = vld [vmem:[#allocation25 + $0x248] sm:$0xff]  ;;  %v2565_v49 = vld [vmem:[#allocation25 + $0x278] sm:$0xff] }
 0xa8b   :  { %v2053_v46 = vld [vmem:[#allocation22 + $0x90] sm:$0xff] }
 0xa8c   :  { %6592 = vtanh.f32 %v1920_v50  ;;  %v6086_v50 = vpack.c.bf16 %v2565_v49, %v2559_v48 }
 0xa8d   :  { %6594 = vtanh.f32 %v1919_v51  ;;  %v2558_v51 = vld [vmem:[#allocation25 + $0x240] sm:$0xff] }
 0xa8e   :  { %471 = vadd.xlane.f32.xlu1 %v470_v23  ;;  %v2564_v23 = vld [vmem:[#allocation25 + $0x270] sm:$0xff] }
 0xa96   :  { %v6593_v52 = vpop.eup %6592 }
 0xa97   :  { %v6595_v3 = vpop.eup %6594  ;;  %v1928_v10 = vadd.f32 1.0, %v6593_v52  ;;  %v6088_v52 = vpack.c.bf16 %v2564_v23, %v2558_v51  ;;  %v2038_v51 = vld [vmem:[#allocation22 + $0x18] sm:$0xff] }
 0xa98   :  { %v1927_v11 = vadd.f32 1.0, %v6595_v3  ;;  %v2571_v3 = vld [vmem:[#allocation25 + $0x2a8] sm:$0xff] }
 0xa99   :  { %v1932_v16 = vmul.f32 0.5, %v1928_v10  ;;  %v2577_v10 = vld [vmem:[#allocation25 + $0x2d8] sm:$0xff] }
 0xa9a   :  { %v1931_v18 = vmul.f32 0.5, %v1927_v11  ;;  %v6090_v11 = vpack.c.bf16 %v2577_v10, %v2571_v3  ;;  %v2497_v3 = vld [vmem:[#allocation25 + $0x58] sm:$0xff] }
 0xa9b   :  { %v1936_v19 = vmul.f32 %v1932_v16, %v1900_v41  ;;  %v2540_v41 = vld [vmem:[#allocation25 + $0x1b0] sm:$0xff]  ;;  %v2570_v16 = vld [vmem:[#allocation25 + $0x2a0] sm:$0xff] }
 0xa9c   :  { %v1935_v20 = vmul.f32 %v1931_v18, %v1899_v40  ;;  %v2534_v40 = vld [vmem:[#allocation25 + $0x180] sm:$0xff]  ;;  %v2576_v18 = vld [vmem:[#allocation25 + $0x2d0] sm:$0xff] }
 0xa9d   :  { %2009 = vmatprep.mubr.f32.mxu0 %v1936_v19  ;;  %v6080_v43 = vpack.c.bf16 %v2540_v41, %v2534_v40  ;;  %v6092_v19 = vpack.c.bf16 %v2576_v18, %v2570_v16  ;;  %v7848_v41 = vld [vmem:[#allocation21] ss:$0 sm:$0xff]  ;;  %v2490_v16 = vld [vmem:[#allocation25 + $0x20] sm:$0xff] }
 0xa9e   :  { %2010 = vmatmul.mubr.f32.vlgmr.msra.gmra.mrb[18].mxu0 %v1935_v20  ;;  %v2051_v20 = vld [vmem:[#allocation22 + $0x80] sm:$0xff] }
 0xa9f   :  { %2026 = vperm.xlu1 %6568, %v5044_v21   ;;  %6065 = vmatpush1.bf16.msra.mxu0 %v6064_v25  ;;  %v2052_v21 = vld [vmem:[#allocation22 + $0x88] sm:$0xff] }
 0xaa0   :  { %6067 = vmatprep.subr.bf16.mxu0 %v6066_v26  ;;  %v6030_v22 = vpack.c.bf16 %v2052_v21, %v2051_v20  ;;  %v2036_v25 = vld [vmem:[#allocation22 + $0x8] sm:$0xff]  ;;  %v2039_v20 = vld [vmem:[#allocation22 + $0x20] sm:$0xff] }
 0xaa1   :  { %v2040_v21 = vld [vmem:[#allocation22 + $0x28] sm:$0xff] }
 0xaa2   :  { %6031 = vmatprep.subr.bf16.mxu1 %v6030_v22 }
 0xaa3   :  { %6069 = vmatpush1.bf16.msra.mxu0 %v6068_v15  ;;  %v6032_v15 = vpack.c.bf16 %v2036_v25, %v2035_v2  ;;  %v2057_v2 = vld [vmem:[#allocation22 + $0xb0] sm:$0xff]  ;;  %v2058_v25 = vld [vmem:[#allocation22 + $0xb8] sm:$0xff] }
 0xaa4   :  { %6071 = vmatprep.subr.bf16.mxu0 %v6070_v31 }
 0xaa7   :  { %6073 = vmatpush1.bf16.msra.mxu0 %v6072_v0 }
 0xaa8   :  { %6075 = vmatprep.subr.bf16.mxu0 %v6074_v1 }
 0xaab   :  { %6077 = vmatpush1.bf16.msra.mxu0 %v6076_v37 }
 0xaac   :  { %6079 = vmatprep.subr.bf16.mxu0 %v6078_v38 }
 0xaaf   :  { %6081 = vmatpush1.bf16.msra.mxu0 %v6080_v43 }
 0xab0   :  { %6083 = vmatprep.subr.bf16.mxu0 %v6082_v44 }
 0xab3   :  { %6085 = vmatpush1.bf16.msra.mxu0 %v6084_v47  ;;  %v2054_v47 = vld [vmem:[#allocation22 + $0x98] sm:$0xff] }
 0xab4   :  { %6087 = vmatprep.subr.bf16.mxu0 %v6086_v50  ;;  %v6034_v49 = vpack.c.bf16 %v2054_v47, %v2053_v46  ;;  %v2037_v50 = vld [vmem:[#allocation22 + $0x10] sm:$0xff] }
 0xab5   :  { %v6036_v23 = vpack.c.bf16 %v2038_v51, %v2037_v50  ;;  %v2045_v46 = vld [vmem:[#allocation22 + $0x50] sm:$0xff]  ;;  %v2545_v51 = vld [vmem:[#allocation25 + $0x1d8] sm:$0xff] }
 0xab6   :  { %v2539_v50 = vld [vmem:[#allocation25 + $0x1a8] sm:$0xff] }
 0xab7   :  { %6089 = vmatpush1.bf16.msra.mxu0 %v6088_v52  ;;  %v2491_v52 = vld [vmem:[#allocation25 + $0x28] sm:$0xff] }
 0xab8   :  { %6091 = vmatprep.subr.bf16.mxu0 %v6090_v11  ;;  %v6126_v10 = vpack.c.bf16 %v2497_v3, %v2491_v52  ;;  %v2055_v11 = vld [vmem:[#allocation22 + $0xa0] sm:$0xff]  ;;  %v6142_v52 = vpack.c.bf16 %v2545_v51, %v2539_v50 }
 0xab9   :  { %v2063_v3 = vld [vmem:[#allocation22 + $0xe0] sm:$0xff] }
 0xabb   :  { %6093 = vmatpush1.bf16.msra.mxu0 %v6092_v19  ;;  %v2496_v19 = vld [vmem:[#allocation25 + $0x50] sm:$0xff] }
 0xabc   :  { %6127 = vmatprep.subr.bf16.mxu0 %v6126_v10  ;;  %v6128_v22 = vpack.c.bf16 %v2496_v19, %v2490_v16  ;;  %v2064_v10 = vld [vmem:[#allocation22 + $0xe8] sm:$0xff]  ;;  %v2544_v16 = vld [vmem:[#allocation25 + $0x1d0] sm:$0xff]  ;;  %v2047_v19 = vld [vmem:[#allocation22 + $0x60] sm:$0xff] }
 0xb17   :  { %v2301_v57 = vpop.xlane.xlu1 %2300 }
 0xb18   :  { %6596 = vrcp.f32 %v2301_v57  ;;  %v6040_v57 = vpack.c.bf16 %v2040_v21, %v2039_v20  ;;  %v2048_v20 = vld [vmem:[#allocation22 + $0x68] sm:$0xff] }
 0xb19   :  { %v6056_v21 = vpack.c.bf16 %v2048_v20, %v2047_v19 }
 0xb1b   :  { %v472_v53 = vpop.xlane.xlu1 %471 }
 0xb1c   :  { %vm474_vm7 = vcmp.gt.f32.partialorder %v472_v53, 0.0  ;;  %v2503_v53 = vld [vmem:[#allocation25 + $0x88] sm:$0xff] }
 0xb1d   :  { %v7837_v59 = vsel %vm474_vm7, 1.0, %v7278_v6 }
 0xb1e   :  { %v1901_v14 = vmul.f32 %v7752_v12, %v7837_v59  ;;  %v1902_v62 = vmul.f32 %v7756_v24, %v7837_v59 }
 0xb1f   :  { %v7846_v40 = vpop.permute.xlu1 %2026 }
 0xb20   :  { %v1905_v26 = vmul.f32 %v1901_v14, %v1901_v14  ;;  %v1906_v27 = vmul.f32 %v1902_v62, %v1902_v62  ;;  %v2029_v43 = vmul.f32 %v7846_v40, %v7642_v61  ;;  %v2056_v61 = vld [vmem:[#allocation22 + $0xa8] sm:$0xff] }
 0xb21   :  { %v6038_v18 = vpack.c.bf16 %v2056_v61, %v2055_v11  ;;  %v2538_v11 = vld [vmem:[#allocation25 + $0x1a0] sm:$0xff]  ;;  %v6054_v61 = vpack.c.bf16 %v2064_v10, %v2063_v3 }
 0xb22   :  { %v6597_v28 = vpop.eup %6596  ;;  %v1910_v29 = vmul.f32 %v1906_v27, %v1902_v62  ;;  %v1909_v30 = vmul.f32 %v1905_v26, %v1901_v14  ;;  %v2502_v26 = vld [vmem:[#allocation25 + $0x80] sm:$0xff]  ;;  %v6042_v27 = vpack.c.bf16 %v2058_v25, %v2057_v2 }
 0xb23   :  { %v2303_v31 = vmul.f32 %v6597_v28, %v7830_v7  ;;  %v2508_v28 = vld [vmem:[#allocation25 + $0xb0] sm:$0xff]  ;;  %v2550_v2 = vld [vmem:[#allocation25 + $0x200] sm:$0xff] }
 0xb24   :  { %v1914_v32 = vmul.f32 0.044715, %v1910_v29  ;;  %v1913_v60 = vmul.f32 0.044715, %v1909_v30  ;;  %v2041_v29 = vld [vmem:[#allocation22 + $0x30] sm:$0xff]  ;;  %v2042_v30 = vld [vmem:[#allocation22 + $0x38] sm:$0xff] }
 0xb25   :  { %5577 = vmatmul.mubr.msk.f32.vlgmr.msra.gmra.mrb[22].mxu1 %vm481_vm5, %v2303_v31  ;;  %v6044_v31 = vpack.c.bf16 %v2042_v30, %v2041_v29 }
 0xb26   :  { %v1918_v63 = vadd.f32 %v1914_v32, %v1902_v62  ;;  %v1917_v55 = vadd.f32 %v1913_v60, %v1901_v14  ;;  %6033 = vmatpush3.bf16.msra.mxu1 %v6032_v15  ;;  %v6132_v15 = vpack.c.bf16 %v2508_v28, %v2502_v26  ;;  %v2515_v32 = vld [vmem:[#allocation25 + $0xe8] sm:$0xff]  ;;  %v2521_v60 = vld [vmem:[#allocation25 + $0x118] sm:$0xff]  ;;  %v2556_v26 = vld [vmem:[#allocation25 + $0x230] sm:$0xff] }
 0xb27   :  { %6035 = vmatprep.subr.bf16.mxu1 %v6034_v49  ;;  %v2046_v49 = vld [vmem:[#allocation22 + $0x58] sm:$0xff]  ;;  %v6148_v29 = vpack.c.bf16 %v2556_v26, %v2550_v2  ;;  %v2507_v26 = vld [vmem:[#allocation25 + $0xa8] sm:$0xff] }
 0xb28   :  { %v1922_v12 = vmul.f32 0.7978846, %v1918_v63  ;;  %v1921_v0 = vmul.f32 0.7978846, %v1917_v55  ;;  %v2059_v63 = vld [vmem:[#allocation22 + $0xc0] sm:$0xff]  ;;  %v6134_v55 = vpack.c.bf16 %v2521_v60, %v2515_v32  ;;  %v2050_v28 = vld [vmem:[#allocation22 + $0x78] sm:$0xff] }
 0xb29   :  { %v2489_v60 = vld [vmem:[#allocation25 + $0x18] sm:$0xff] }
 0xb2a   :  { %6598 = vtanh.f32 %v1922_v12  ;;  %6037 = vmatpush3.bf16.msra.mxu1 %v6036_v23  ;;  %v2060_v12 = vld [vmem:[#allocation22 + $0xc8] sm:$0xff]  ;;  %v6052_v23 = vpack.c.bf16 %v2046_v49, %v2045_v46 }
 0xb2b   :  { %6600 = vtanh.f32 %v1921_v0  ;;  %6039 = vmatprep.subr.bf16.mxu1 %v6038_v18  ;;  %v2514_v0 = vld [vmem:[#allocation25 + $0xe0] sm:$0xff]  ;;  %v6144_v18 = vpack.c.bf16 %v2544_v16, %v2538_v11 }
 0xb2e   :  { %6041 = vmatpush3.bf16.msra.mxu1 %v6040_v57  ;;  %v2557_v57 = vld [vmem:[#allocation25 + $0x238] sm:$0xff] }
 0xb2f   :  { %6043 = vmatprep.subr.bf16.mxu1 %v6042_v27  ;;  %v2049_v27 = vld [vmem:[#allocation22 + $0x70] sm:$0xff] }
 0xb30   :  { %v6060_v30 = vpack.c.bf16 %v2050_v28, %v2049_v27  ;;  %v2030_v27 = vmul.f32 %v7846_v40, %v7644_v4  ;;  %v2828_v4 = vld [vmem:[#allocation27 + $0x78] sm:$0xff]  ;;  %v2834_v40 = vld [vmem:[#allocation27 + $0xa8] sm:$0xff] }
 0xb32   :  { %6045 = vmatpush3.bf16.msra.mxu1 %v6044_v31  ;;  %v2569_v31 = vld [vmem:[#allocation25 + $0x298] sm:$0xff] }
 0xb34   :  { %v6599_v24 = vpop.eup %6598 }
 0xb35   :  { %v6601_v1 = vpop.eup %6600  ;;  %v1930_v33 = vadd.f32 1.0, %v6599_v24  ;;  %v2520_v24 = vld [vmem:[#allocation25 + $0x110] sm:$0xff] }
 0xb36   :  { %v1929_v34 = vadd.f32 1.0, %v6601_v1  ;;  %v6046_v1 = vpack.c.bf16 %v2060_v12, %v2059_v63  ;;  %v2495_v63 = vld [vmem:[#allocation25 + $0x48] sm:$0xff] }
 0xb37   :  { %v1934_v35 = vmul.f32 0.5, %v1930_v33  ;;  %v6136_v33 = vpack.c.bf16 %v2520_v24, %v2514_v0  ;;  %v6094_v12 = vpack.c.bf16 %v2495_v63, %v2489_v60  ;;  %v2568_v0 = vld [vmem:[#allocation25 + $0x290] sm:$0xff]  ;;  %v2506_v63 = vld [vmem:[#allocation25 + $0xa0] sm:$0xff] }
 0xb38   :  { %v1933_v36 = vmul.f32 0.5, %v1929_v34  ;;  %v2043_v34 = vld [vmem:[#allocation22 + $0x40] sm:$0xff]  ;;  %6047 = vmatprep.subr.bf16.mxu1 %v6046_v1  ;;  %v2575_v1 = vld [vmem:[#allocation25 + $0x2c8] sm:$0xff]  ;;  %v2500_v60 = vld [vmem:[#allocation25 + $0x70] sm:$0xff] }
 0xb39   :  { %v1938_v37 = vmul.f32 %v1934_v35, %v1902_v62  ;;  %v2044_v35 = vld [vmem:[#allocation22 + $0x48] sm:$0xff] }
 0xb3a   :  { %v1937_v38 = vmul.f32 %v1933_v36, %v1901_v14  ;;  %v2509_v14 = vld [vmem:[#allocation25 + $0xb8] sm:$0xff]  ;;  %v2527_v36 = vld [vmem:[#allocation25 + $0x148] sm:$0xff] }
 0xb3b   :  { %2014 = vmatprep.mubr.f32.mxu0 %v1938_v37  ;;  %v6130_v62 = vpack.c.bf16 %v2509_v14, %v2503_v53  ;;  %v6048_v37 = vpack.c.bf16 %v2044_v35, %v2043_v34  ;;  %v2065_v14 = vld [vmem:[#allocation22 + $0xf0] sm:$0xff]  ;;  %v2574_v35 = vld [vmem:[#allocation25 + $0x2c0] sm:$0xff] }
 0xb3c   :  { %2015 = vmatmul.mubr.f32.gmra.mrb[20].mxu0 %v1937_v38  ;;  %v2533_v38 = vld [vmem:[#allocation25 + $0x178] sm:$0xff] }
 0xb3d   :  { %2646 = vmatprep.mubr.f32.mxu0 %v7278_v6  ;;  %6049 = vmatpush3.bf16.msra.mxu1 %v6048_v37 }
 0xb71   :  { %v5177_v7 = vpop.f32.mrb[18].mxu0 }
 0xb72   :  { %v5178_v13 = vpop.f32.mrb[19].mxu0 }
 0xb73   :  { %v5179_v42 = vadd.f32 %v5178_v13, %v5177_v7  ;;  %v2061_v7 = vld [vmem:[#allocation22 + $0xd0] sm:$0xff]  ;;  %v2062_v13 = vld [vmem:[#allocation22 + $0xd8] sm:$0xff] }
 0xb75   :  { %v2012_v44 = vadd.f32 %v5179_v42, %v7848_v41  ;;  %v6138_v42 = vpack.c.bf16 %v2533_v38, %v2527_v36  ;;  %v2580_v36 = vld [vmem:[#allocation25 + $0x2f0] sm:$0xff]  ;;  %v2816_v38 = vld [vmem:[#allocation27 + $0x18] sm:$0xff] }
 0xb76   :  { %v6156_v37 = vpack.c.bf16 %v2580_v36, %v2574_v35  ;;  %v2518_v35 = vld [vmem:[#allocation25 + $0x100] sm:$0xff]  ;;  %v2525_v36 = vld [vmem:[#allocation25 + $0x138] sm:$0xff] }
 0xb77   :  { %v2031_v45 = vadd.f32 %v2029_v43, %v2012_v44  ;;  %v6050_v43 = vpack.c.bf16 %v2062_v13, %v2061_v7  ;;  %v2526_v44 = vld [vmem:[#allocation25 + $0x140] sm:$0xff]  ;;  %v2822_v7 = vld [vmem:[#allocation27 + $0x48] sm:$0xff] }
 0xb78   :  { %v6190_v13 = vpack.c.bf16 %v2822_v7, %v2816_v38  ;;  %v6194_v7 = vpack.c.bf16 %v2834_v40, %v2828_v4  ;;  %v2579_v4 = vld [vmem:[#allocation25 + $0x2e8] sm:$0xff] }
 0xb79   :  { %v7853_v48 = vmax.f32 %v2031_v45, 0.0  ;;  %v2532_v45 = vld [vmem:[#allocation25 + $0x170] sm:$0xff]  ;;  %6051 = vmatprep.subr.bf16.mxu1 %v6050_v43 }
 0xb7a   :  { %v6140_v47 = vpack.c.bf16 %v2532_v45, %v2526_v44  ;;  %6053 = vmatpush3.bf16.msra.mxu1 %v6052_v23 }
 0xb7b   :  { %2647 = vmatmul.mubr.f32.vlgmr.msra.gmra.mrb[22].mxu0 %v7853_v48  ;;  %6055 = vmatprep.subr.bf16.mxu1 %v6054_v61 }
 0xb7c   :  { %2652 = vmatprep.mubr.f32.mxu0 %v7278_v6  ;;  %6129 = vmatpush1.bf16.msra.mxu0 %v6128_v22  ;;  %v2551_v22 = vld [vmem:[#allocation25 + $0x208] sm:$0xff] }
 0xb7d   :  { %6131 = vmatprep.subr.bf16.mxu0 %v6130_v62  ;;  %v6146_v53 = vpack.c.bf16 %v2557_v57, %v2551_v22  ;;  %v2066_v62 = vld [vmem:[#allocation22 + $0xf8] sm:$0xff] }
 0xb7e   :  { %6057 = vmatpush3.bf16.msra.mxu1 %v6056_v21  ;;  %v6058_v25 = vpack.c.bf16 %v2066_v62, %v2065_v14  ;;  %v2488_v14 = vld [vmem:[#allocation25 + $0x10] sm:$0xff]  ;;  %v2494_v62 = vld [vmem:[#allocation25 + $0x40] sm:$0xff] }
 0xb80   :  { %6133 = vmatpush1.bf16.msra.mxu0 %v6132_v15  ;;  %6059 = vmatprep.subr.bf16.mxu1 %v6058_v25  ;;  %v2563_v15 = vld [vmem:[#allocation25 + $0x268] sm:$0xff]  ;;  %v2501_v25 = vld [vmem:[#allocation25 + $0x78] sm:$0xff] }
 0xb81   :  { %6135 = vmatprep.subr.bf16.mxu0 %v6134_v55  ;;  %v6150_v32 = vpack.c.bf16 %v2569_v31, %v2563_v15  ;;  %v2562_v55 = vld [vmem:[#allocation25 + $0x260] sm:$0xff] }
 0xb82   :  { %6061 = vmatpush3.bf16.msra.mxu1 %v6060_v30  ;;  %v6152_v24 = vpack.c.bf16 %v2568_v0, %v2562_v55  ;;  %v6096_v30 = vpack.c.bf16 %v2494_v62, %v2488_v14  ;;  %v2513_v55 = vld [vmem:[#allocation25 + $0xd8] sm:$0xff]  ;;  %v2851_v14 = vld [vmem:[#allocation27 + $0x130] sm:$0xff]  ;;  %v2857_v62 = vld [vmem:[#allocation27 + $0x160] sm:$0xff] }
 0xb83   :  { %6095 = vmatprep.subr.bf16.mxu1 %v6094_v12  ;;  %v2519_v12 = vld [vmem:[#allocation25 + $0x108] sm:$0xff] }
 0xb84   :  { %6137 = vmatpush1.bf16.msra.mxu0 %v6136_v33  ;;  %v2581_v33 = vld [vmem:[#allocation25 + $0x2f8] sm:$0xff] }
 0xb85   :  { %6139 = vmatprep.subr.bf16.mxu0 %v6138_v42  ;;  %v6154_v34 = vpack.c.bf16 %v2581_v33, %v2575_v1  ;;  %v484_v42 = vpop.xlane.xlu0 %483  ;;  %v2821_v1 = vld [vmem:[#allocation27 + $0x40] sm:$0xff]  ;;  %v6100_v33 = vpack.c.bf16 %v2506_v63, %v2500_v60  ;;  %v2863_v60 = vld [vmem:[#allocation27 + $0x190] sm:$0xff] }
 0xb86   :  { %vm485_vm8 = vcmp.gt.f32.partialorder %v484_v42, 0.0  ;;  %v2833_v42 = vld [vmem:[#allocation27 + $0xa0] sm:$0xff] }
 0xb87   :  { %v7858_v43 = vsel %vm485_vm8, 1.0, %v7278_v6  ;;  %v2869_v63 = vld [vmem:[#allocation27 + $0x1c0] sm:$0xff] }
 0xb88   :  { %6141 = vmatpush1.bf16.msra.mxu0 %v6140_v47  ;;  %v2377_v44 = vmul.f32 %v7858_v43, %v7780_v54  ;;  %v6208_v40 = vpack.c.bf16 %v2869_v63, %v2863_v60  ;;  %v2882_v63 = vld [vmem:[#allocation27 + $0x228] sm:$0xff] }
 0xb89   :  { %6143 = vmatprep.subr.bf16.mxu0 %v6142_v52 }
 0xb8a   :  { %v2379_v45 = vmul.f32 %v2377_v44, %v2377_v44 }
 0xb8c   :  { %6145 = vmatpush1.bf16.msra.mxu0 %v6144_v18  ;;  %v2381_v46 = vmul.f32 %v2379_v45, %v2377_v44  ;;  %v2840_v45 = vld [vmem:[#allocation27 + $0xd8] sm:$0xff] }
 0xb8d   :  { %6147 = vmatprep.subr.bf16.mxu0 %v6146_v53 }
 0xb8e   :  { %v2383_v47 = vmul.f32 0.044715, %v2381_v46  ;;  %v2846_v46 = vld [vmem:[#allocation27 + $0x108] sm:$0xff] }
 0xb90   :  { %6149 = vmatpush1.bf16.msra.mxu0 %v6148_v29  ;;  %v2385_v49 = vadd.f32 %v2383_v47, %v2377_v44 }
 0xb91   :  { %6151 = vmatprep.subr.bf16.mxu0 %v6150_v32  ;;  %v6098_v32 = vpack.c.bf16 %v2507_v26, %v2501_v25  ;;  %v2864_v25 = vld [vmem:[#allocation27 + $0x198] sm:$0xff]  ;;  %v2870_v26 = vld [vmem:[#allocation27 + $0x1c8] sm:$0xff] }
 0xb92   :  { %v2387_v3 = vmul.f32 0.7978846, %v2385_v49  ;;  %v2524_v49 = vld [vmem:[#allocation25 + $0x130] sm:$0xff] }
 0xb94   :  { %6153 = vmatpush1.bf16.msra.mxu0 %v6152_v24  ;;  %6602 = vtanh.f32 %v2387_v3  ;;  %v2815_v24 = vld [vmem:[#allocation27 + $0x10] sm:$0xff]  ;;  %v6198_v3 = vpack.c.bf16 %v2846_v46, %v2840_v45  ;;  %v2826_v45 = vld [vmem:[#allocation27 + $0x68] sm:$0xff]  ;;  %v2832_v46 = vld [vmem:[#allocation27 + $0x98] sm:$0xff] }
 0xb95   :  { %6155 = vmatprep.subr.bf16.mxu0 %v6154_v34  ;;  %v2512_v34 = vld [vmem:[#allocation25 + $0xd0] sm:$0xff]  ;;  %v6192_v38 = vpack.c.bf16 %v2821_v1, %v2815_v24  ;;  %v2566_v1 = vld [vmem:[#allocation25 + $0x280] sm:$0xff] }
 0xb96   :  { %v2560_v24 = vld [vmem:[#allocation25 + $0x250] sm:$0xff] }
 0xb98   :  { %6157 = vmatpush1.bf16.msra.mxu0 %v6156_v37  ;;  %v2531_v37 = vld [vmem:[#allocation25 + $0x168] sm:$0xff] }
 0xb99   :  { %6191 = vmatprep.subr.bf16.mxu0 %v6190_v13  ;;  %v2827_v13 = vld [vmem:[#allocation27 + $0x70] sm:$0xff]  ;;  %v6106_v47 = vpack.c.bf16 %v2531_v37, %v2525_v36  ;;  %v2578_v36 = vld [vmem:[#allocation25 + $0x2e0] sm:$0xff]  ;;  %v2814_v37 = vld [vmem:[#allocation27 + $0x8] sm:$0xff] }
 0xb9e   :  { %v6603_v18 = vpop.eup %6602 }
 0xb9f   :  { %v2391_v19 = vadd.f32 1.0, %v6603_v18  ;;  %v2858_v18 = vld [vmem:[#allocation27 + $0x168] sm:$0xff] }
 0xba1   :  { %v2393_v53 = vmul.f32 0.5, %v2391_v19 }
 0xba3   :  { %v2395_v31 = vmul.f32 %v2393_v53, %v2377_v44  ;;  %v6104_v44 = vpack.c.bf16 %v2518_v35, %v2512_v34  ;;  %v2572_v35 = vld [vmem:[#allocation25 + $0x2b0] sm:$0xff] }
 0xbf8   :  { %v2373_v50 = vpop.f32.mrb[22].mxu1 }
 0xbf9   :  { %v2378_v51 = vmul.f32 %v7858_v43, %v2373_v50  ;;  %v5578_v23 = vpop.f32.mrb[23].mxu1  ;;  %v2530_v50 = vld [vmem:[#allocation25 + $0x160] sm:$0xff] }
 0xbfa   :  { %v2543_v23 = vld [vmem:[#allocation25 + $0x1c8] sm:$0xff] }
 0xbfb   :  { %v2380_v52 = vmul.f32 %v2378_v51, %v2378_v51 }
 0xbfd   :  { %v2382_v10 = vmul.f32 %v2380_v52, %v2378_v51  ;;  %v6196_v52 = vpack.c.bf16 %v2833_v42, %v2827_v13  ;;  %v2813_v42 = vld [vmem:[#allocation27] sm:$0xff] }
 0xbff   :  { %v2384_v11 = vmul.f32 0.044715, %v2382_v10  ;;  %v2839_v10 = vld [vmem:[#allocation27 + $0xd0] sm:$0xff] }
 0xc01   :  { %v2386_v61 = vadd.f32 %v2384_v11, %v2378_v51  ;;  %v2845_v11 = vld [vmem:[#allocation27 + $0x100] sm:$0xff] }
 0xc03   :  { %v2388_v16 = vmul.f32 0.7978846, %v2386_v61  ;;  %v6108_v61 = vpack.c.bf16 %v2530_v50, %v2524_v49  ;;  %v6162_v49 = vpack.c.bf16 %v2832_v46, %v2826_v45  ;;  %v2825_v50 = vld [vmem:[#allocation27 + $0x60] sm:$0xff]  ;;  %v2904_v45 = vld [vmem:[#allocation27 + $0x2d8] sm:$0xff] }
 0xc05   :  { %6604 = vtanh.f32 %v2388_v16  ;;  %v2852_v16 = vld [vmem:[#allocation27 + $0x138] sm:$0xff] }
 0xc06   :  { %v6202_v53 = vpack.c.bf16 %v2858_v18, %v2852_v16  ;;  %v2850_v16 = vld [vmem:[#allocation27 + $0x128] sm:$0xff]  ;;  %v2856_v18 = vld [vmem:[#allocation27 + $0x158] sm:$0xff] }
 0xc0f   :  { %v6605_v20 = vpop.eup %6604  ;;  %v5180_v54 = vpop.f32.mrb[20].mxu0 }
 0xc10   :  { %v5181_v21 = vpop.f32.mrb[21].mxu0  ;;  %v2392_v22 = vadd.f32 1.0, %v6605_v20  ;;  %v2536_v20 = vld [vmem:[#allocation25 + $0x190] sm:$0xff] }
 0xc11   :  { %v5182_v57 = vadd.f32 %v5181_v21, %v5180_v54  ;;  %v2542_v54 = vld [vmem:[#allocation25 + $0x1c0] sm:$0xff]  ;;  %v2549_v21 = vld [vmem:[#allocation25 + $0x1f8] sm:$0xff] }
 0xc12   :  { %v2394_v2 = vmul.f32 0.5, %v2392_v22  ;;  %v2555_v22 = vld [vmem:[#allocation25 + $0x228] sm:$0xff] }
 0xc13   :  { %v2017_v28 = vadd.f32 %v5182_v57, %v7848_v41  ;;  %v6102_v41 = vpack.c.bf16 %v2519_v12, %v2513_v55  ;;  %v6200_v57 = vpack.c.bf16 %v2845_v11, %v2839_v10  ;;  %v2837_v11 = vld [vmem:[#allocation27 + $0xc0] sm:$0xff] }
 0xc14   :  { %v2396_v29 = vmul.f32 %v2394_v2, %v2378_v51  ;;  %v2537_v51 = vld [vmem:[#allocation25 + $0x198] sm:$0xff]  ;;  %v6112_v2 = vpack.c.bf16 %v2542_v54, %v2536_v20  ;;  %v6170_v20 = vpack.c.bf16 %v2856_v18, %v2850_v16  ;;  %v2849_v54 = vld [vmem:[#allocation27 + $0x120] sm:$0xff] }
 0xc15   :  { %v2032_v15 = vadd.f32 %v2030_v27, %v2017_v28  ;;  %v6110_v19 = vpack.c.bf16 %v2543_v23, %v2537_v51  ;;  %v6114_v27 = vpack.c.bf16 %v2555_v22, %v2549_v21  ;;  %v2548_v28 = vld [vmem:[#allocation25 + $0x1f0] sm:$0xff]  ;;  %v2838_v23 = vld [vmem:[#allocation27 + $0xc8] sm:$0xff]  ;;  %v2824_v16 = vld [vmem:[#allocation27 + $0x58] sm:$0xff] }
 0xc16   :  { %2467 = vmatprep.mubr.f32.mxu1 %v2396_v29  ;;  %v2554_v29 = vld [vmem:[#allocation25 + $0x220] sm:$0xff]  ;;  %v2831_v51 = vld [vmem:[#allocation27 + $0x90] sm:$0xff]  ;;  %v2862_v22 = vld [vmem:[#allocation27 + $0x188] sm:$0xff] }
 0xc17   :  { %v7866_v0 = vmax.f32 %v2032_v15, 0.0  ;;  %2468 = vmatmul.mubr.f32.vlgmr.msra.gmra.mrb[24].mxu1 %v2395_v31  ;;  %v2567_v15 = vld [vmem:[#allocation25 + $0x288] sm:$0xff]  ;;  %v6204_v31 = vpack.c.bf16 %v2857_v62, %v2851_v14  ;;  %v6116_v55 = vpack.c.bf16 %v2554_v29, %v2548_v28  ;;  %v2855_v21 = vld [vmem:[#allocation27 + $0x150] sm:$0xff]  ;;  %v2861_v62 = vld [vmem:[#allocation27 + $0x180] sm:$0xff] }
 0xc18   :  { %6097 = vmatpush1.bf16.msra.mxu1 %v6096_v30  ;;  %2723 = vmatprep.mubr.f32.mxu1 %v7278_v6  ;;  %v2561_v30 = vld [vmem:[#allocation25 + $0x258] sm:$0xff] }
 0xc19   :  { %2653 = vmatmul.mubr.f32.gmra.mrb[24].mxu0 %v7866_v0  ;;  %6099 = vmatprep.subr.bf16.mxu1 %v6098_v32  ;;  %v6206_v32 = vpack.c.bf16 %v2870_v26, %v2864_v25  ;;  %v6118_v12 = vpack.c.bf16 %v2567_v15, %v2561_v30  ;;  %v2874_v25 = vld [vmem:[#allocation27 + $0x1e8] sm:$0xff]  ;;  %v2880_v26 = vld [vmem:[#allocation27 + $0x218] sm:$0xff]  ;;  %v2873_v15 = vld [vmem:[#allocation27 + $0x1e0] sm:$0xff] }
 0xc1a   :  { %2800 = vmatprep.mubr.f32.mxu0 %v7278_v6  ;;  %v6178_v28 = vpack.c.bf16 %v2880_v26, %v2874_v25 }
 0xc1c   :  { %6101 = vmatpush1.bf16.msra.mxu1 %v6100_v33  ;;  %v2573_v33 = vld [vmem:[#allocation25 + $0x2b8] sm:$0xff] }
 0xc1d   :  { %2801 = vmatmul.mubr.f32.vlgmr.msra.gmra.mrb[26].mxu0 %v7853_v48  ;;  %6103 = vmatprep.subr.bf16.mxu1 %v6102_v41  ;;  %v6120_v41 = vpack.c.bf16 %v2566_v1, %v2560_v24  ;;  %v6122_v34 = vpack.c.bf16 %v2579_v4, %v2573_v33  ;;  %v2886_v33 = vld [vmem:[#allocation27 + $0x248] sm:$0xff]  ;;  %v2892_v4 = vld [vmem:[#allocation27 + $0x278] sm:$0xff] }
 0xc1e   :  { %2806 = vmatprep.mubr.f32.mxu0 %v7278_v6  ;;  %6193 = vmatpush1.bf16.msra.mxu0 %v6192_v38  ;;  %v2820_v38 = vld [vmem:[#allocation27 + $0x38] sm:$0xff] }
 0xc1f   :  { %6195 = vmatprep.subr.bf16.mxu0 %v6194_v7  ;;  %v6124_v7 = vpack.c.bf16 %v2578_v36, %v2572_v35  ;;  %v6158_v13 = vpack.c.bf16 %v2820_v38, %v2814_v37  ;;  %v2888_v35 = vld [vmem:[#allocation27 + $0x258] sm:$0xff]  ;;  %v2894_v37 = vld [vmem:[#allocation27 + $0x288] sm:$0xff]  ;;  %v2887_v38 = vld [vmem:[#allocation27 + $0x250] sm:$0xff] }
 0xc20   :  { %6105 = vmatpush1.bf16.msra.mxu1 %v6104_v44  ;;  %v2819_v44 = vld [vmem:[#allocation27 + $0x30] sm:$0xff] }
 0xc21   :  { %2807 = vmatmul.mubr.f32.gmra.mrb[28].mxu0 %v7866_v0  ;;  %6107 = vmatprep.subr.bf16.mxu1 %v6106_v47  ;;  %v6160_v47 = vpack.c.bf16 %v2819_v44, %v2813_v42  ;;  %v2898_v44 = vld [vmem:[#allocation27 + $0x2a8] sm:$0xff] }
 0xc22   :  { %6197 = vmatpush1.bf16.msra.mxu0 %v6196_v52  ;;  %3044 = vmatprep.mubr.f32.mxu0 %v7278_v6  ;;  %v2844_v52 = vld [vmem:[#allocation27 + $0xf8] sm:$0xff]  ;;  %v6186_v46 = vpack.c.bf16 %v2904_v45, %v2898_v44  ;;  %v2853_v45 = vld [vmem:[#allocation27 + $0x140] sm:$0xff] }
 0xc23   :  { %6199 = vmatprep.subr.bf16.mxu0 %v6198_v3  ;;  %v6164_v3 = vpack.c.bf16 %v2831_v51, %v2825_v50  ;;  %v6166_v10 = vpack.c.bf16 %v2844_v52, %v2838_v23  ;;  %v2900_v50 = vld [vmem:[#allocation27 + $0x2b8] sm:$0xff]  ;;  %v2906_v23 = vld [vmem:[#allocation27 + $0x2e8] sm:$0xff]  ;;  %v2899_v52 = vld [vmem:[#allocation27 + $0x2b0] sm:$0xff] }
 0xc24   :  { %6109 = vmatpush1.bf16.msra.mxu1 %v6108_v61  ;;  %v2843_v61 = vld [vmem:[#allocation27 + $0xf0] sm:$0xff] }
 0xc25   :  { %6111 = vmatprep.subr.bf16.mxu1 %v6110_v19  ;;  %v6168_v19 = vpack.c.bf16 %v2843_v61, %v2837_v11  ;;  %v2818_v61 = vld [vmem:[#allocation27 + $0x28] sm:$0xff] }
 0xc26   :  { %6201 = vmatpush1.bf16.msra.mxu0 %v6200_v57  ;;  %v2868_v57 = vld [vmem:[#allocation27 + $0x1b8] sm:$0xff]  ;;  %v6222_v18 = vpack.c.bf16 %v2824_v16, %v2818_v61  ;;  %v2877_v61 = vld [vmem:[#allocation27 + $0x200] sm:$0xff]  ;;  %v2883_v16 = vld [vmem:[#allocation27 + $0x230] sm:$0xff] }
 0xc27   :  { %6203 = vmatprep.subr.bf16.mxu0 %v6202_v53  ;;  %v6172_v53 = vpack.c.bf16 %v2855_v21, %v2849_v54  ;;  %v6174_v14 = vpack.c.bf16 %v2868_v57, %v2862_v22  ;;  %v5047_v54 = vld [vmem:[#allocation24] ss:$0 sm:$0xff] }
 0xc28   :  { %6113 = vmatpush1.bf16.msra.mxu1 %v6112_v2  ;;  %v2867_v2 = vld [vmem:[#allocation27 + $0x1b0] sm:$0xff] }
 0xc29   :  { %6115 = vmatprep.subr.bf16.mxu1 %v6114_v27  ;;  %v6176_v27 = vpack.c.bf16 %v2867_v2, %v2861_v62  ;;  %v5036_v2 = vld [vmem:[%s8113_s28] ss:$0 sm:$0xff] }
 0xc2a   :  { %6205 = vmatpush1.bf16.msra.mxu0 %v6204_v31  ;;  %v2879_v31 = vld [vmem:[#allocation27 + $0x210] sm:$0xff] }
 0xc2b   :  { %6207 = vmatprep.subr.bf16.mxu0 %v6206_v32  ;;  %v2876_v32 = vld [vmem:[#allocation27 + $0x1f8] sm:$0xff]  ;;  %v6180_v60 = vpack.c.bf16 %v2879_v31, %v2873_v15  ;;  %v2830_v31 = vld [vmem:[#allocation27 + $0x88] sm:$0xff] }
 0xc2c   :  { %6117 = vmatpush1.bf16.msra.mxu1 %v6116_v55  ;;  %v2875_v55 = vld [vmem:[#allocation27 + $0x1f0] sm:$0xff]  ;;  %v6210_v24 = vpack.c.bf16 %v2882_v63, %v2876_v32  ;;  %v2836_v32 = vld [vmem:[#allocation27 + $0xb8] sm:$0xff] }
 0xc2d   :  { %6119 = vmatprep.subr.bf16.mxu1 %v6118_v12  ;;  %v2881_v12 = vld [vmem:[#allocation27 + $0x220] sm:$0xff] }
 0xc2e   :  { %6209 = vmatpush1.bf16.msra.mxu0 %v6208_v40  ;;  %v6212_v1 = vpack.c.bf16 %v2881_v12, %v2875_v55  ;;  %v6182_v40 = vpack.c.bf16 %v2892_v4, %v2886_v33  ;;  %v2835_v33 = vld [vmem:[#allocation27 + $0xb0] sm:$0xff] }
 0xc2f   :  { %6211 = vmatprep.subr.bf16.mxu0 %v6210_v24 }
 0xc30   :  { %6121 = vmatpush1.bf16.msra.mxu1 %v6120_v41  ;;  %v2885_v41 = vld [vmem:[#allocation27 + $0x240] sm:$0xff] }
 0xc31   :  { %6123 = vmatprep.subr.bf16.mxu1 %v6122_v34  ;;  %v2891_v34 = vld [vmem:[#allocation27 + $0x270] sm:$0xff] }
 0xc32   :  { %6213 = vmatpush1.bf16.msra.mxu0 %v6212_v1  ;;  %v6184_v36 = vpack.c.bf16 %v2891_v34, %v2885_v41  ;;  %v2829_v1 = vld [vmem:[#allocation27 + $0x80] sm:$0xff]  ;;  %v2842_v41 = vld [vmem:[#allocation27 + $0xe8] sm:$0xff]  ;;  %v2848_v34 = vld [vmem:[#allocation27 + $0x118] sm:$0xff] }
 0xc34   :  { %6125 = vmatpush1.bf16.msra.mxu1 %v6124_v7  ;;  %v2893_v7 = vld [vmem:[#allocation27 + $0x280] sm:$0xff] }
 0xc35   :  { %6159 = vmatprep.subr.bf16.mxu1 %v6158_v13  ;;  %v6214_v13 = vpack.c.bf16 %v2894_v37, %v2888_v35  ;;  %v6216_v42 = vpack.c.bf16 %v2893_v7, %v2887_v38  ;;  %v2841_v37 = vld [vmem:[#allocation27 + $0xe0] sm:$0xff]  ;;  %v2847_v38 = vld [vmem:[#allocation27 + $0x110] sm:$0xff]  ;;  %v2854_v7 = vld [vmem:[#allocation27 + $0x148] sm:$0xff] }
 0xc37   :  { %2724 = vmatmul.mubr.f32.vlgmr.msra.gmra.mrb[26].mxu1 %v7853_v48  ;;  %6215 = vmatprep.subr.bf16.mxu0 %v6214_v13  ;;  %v2860_v13 = vld [vmem:[#allocation27 + $0x178] sm:$0xff] }
 0xc38   :  { %2729 = vmatprep.mubr.f32.mxu1 %v7278_v6  ;;  %6161 = vmatpush1.bf16.msra.mxu1 %v6160_v47  ;;  %v2897_v47 = vld [vmem:[#allocation27 + $0x2a0] sm:$0xff]  ;;  %v6234_v44 = vpack.c.bf16 %v2860_v13, %v2854_v7 }
 0xc39   :  { %6163 = vmatprep.subr.bf16.mxu1 %v6162_v49  ;;  %v2903_v49 = vld [vmem:[#allocation27 + $0x2d0] sm:$0xff]  ;;  %6217 = vmatpush1.bf16.msra.mxu0 %v6216_v42  ;;  %v6232_v42 = vpack.c.bf16 %v2847_v38, %v2841_v37 }
 0xc3a   :  { %v6188_v51 = vpack.c.bf16 %v2903_v49, %v2897_v47  ;;  %v2866_v47 = vld [vmem:[#allocation27 + $0x1a8] sm:$0xff]  ;;  %v2872_v49 = vld [vmem:[#allocation27 + $0x1d8] sm:$0xff] }
 0xc3b   :  { %2730 = vmatmul.mubr.f32.gmra.mrb[28].mxu1 %v7866_v0 }
 0xc3c   :  { %6165 = vmatpush1.bf16.msra.mxu1 %v6164_v3  ;;  %2973 = vmatprep.mubr.f32.mxu1 %v7278_v6  ;;  %v2905_v3 = vld [vmem:[#allocation27 + $0x2e0] sm:$0xff] }
 0xc3d   :  { %6167 = vmatprep.subr.bf16.mxu1 %v6166_v10  ;;  %v6218_v10 = vpack.c.bf16 %v2906_v23, %v2900_v50  ;;  %v6220_v11 = vpack.c.bf16 %v2905_v3, %v2899_v52  ;;  %v2871_v23 = vld [vmem:[#allocation27 + $0x1d0] sm:$0xff]  ;;  %v2878_v52 = vld [vmem:[#allocation27 + $0x208] sm:$0xff]  ;;  %v2884_v3 = vld [vmem:[#allocation27 + $0x238] sm:$0xff] }
 0xc3f   :  { %6219 = vmatprep.subr.bf16.mxu0 %v6218_v10 }
 0xc40   :  { %6169 = vmatpush1.bf16.msra.mxu1 %v6168_v19  ;;  %6221 = vmatpush1.bf16.msra.mxu0 %v6220_v11  ;;  %v6242_v11 = vpack.c.bf16 %v2884_v3, %v2878_v52 }
 0xc41   :  { %6171 = vmatprep.subr.bf16.mxu1 %v6170_v20  ;;  %v2480_v20 = vpop.permute.xlu0 %2479 }
 0xc44   :  { %6173 = vmatpush1.bf16.msra.mxu1 %v6172_v53 }
 0xc45   :  { %6175 = vmatprep.subr.bf16.mxu1 %v6174_v14  ;;  %v2482_v14 = vmul.f32 %v2480_v20, %v7663_v9  ;;  %v6226_v9 = vpack.c.bf16 %v2836_v32, %v2830_v31  ;;  %v6244_v20 = vpack.c.bf16 %v2883_v16, %v2877_v61  ;;  %v2901_v31 = vld [vmem:[#allocation27 + $0x2c0] sm:$0xff]  ;;  %v2907_v32 = vld [vmem:[#allocation27 + $0x2f0] sm:$0xff] }
 0xc48   :  { %6177 = vmatpush1.bf16.msra.mxu1 %v6176_v27  ;;  %v2817_v27 = vld [vmem:[#allocation27 + $0x20] sm:$0xff] }
 0xc49   :  { %6179 = vmatprep.subr.bf16.mxu1 %v6178_v28  ;;  %v2823_v28 = vld [vmem:[#allocation27 + $0x50] sm:$0xff] }
 0xc4a   :  { %v6224_v55 = vpack.c.bf16 %v2823_v28, %v2817_v27 }
 0xc4c   :  { %6181 = vmatpush1.bf16.msra.mxu1 %v6180_v60  ;;  %v673_v60 = vadd.f32 %v5036_v2, %v7659_v56  ;;  %v6228_v56 = vpack.c.bf16 %v2835_v33, %v2829_v1 }
 0xc4d   :  { %6183 = vmatprep.subr.bf16.mxu1 %v6182_v40 }
 0xc4e   :  { %v7879_v29 = vpop.f32.mrb[22].mxu0 }
 0xc4f   :  { %v7881_v30 = vpop.f32.mrb[23].mxu0 }
 0xc50   :  { %6185 = vmatpush1.bf16.msra.mxu1 %v6184_v36  ;;  %v6230_v36 = vpack.c.bf16 %v2848_v34, %v2842_v41 }
 0xc51   :  { %6187 = vmatprep.subr.bf16.mxu1 %v6186_v46  ;;  %v2859_v46 = vld [vmem:[#allocation27 + $0x170] sm:$0xff] }
 0xc52   :  { %v6236_v50 = vpack.c.bf16 %v2859_v46, %v2853_v45 }
 0xc54   :  { %6189 = vmatpush1.bf16.msra.mxu1 %v6188_v51  ;;  %v2865_v51 = vld [vmem:[#allocation27 + $0x1a0] sm:$0xff] }
 0xc55   :  { %6223 = vmatprep.subr.bf16.mxu1 %v6222_v18  ;;  %v6240_v10 = vpack.c.bf16 %v2871_v23, %v2865_v51  ;;  %v2890_v18 = vld [vmem:[#allocation27 + $0x268] sm:$0xff] }
 0xcea   :  { %v5227_v19 = vpop.f32.mrb[24].mxu1 }
 0xceb   :  { %v5228_v21 = vpop.f32.mrb[25].mxu1 }
 0xcec   :  { %v5229_v22 = vadd.f32 %v5228_v21, %v5227_v19  ;;  %v7883_v57 = vpop.f32.mrb[24].mxu0  ;;  %v2896_v19 = vld [vmem:[#allocation27 + $0x298] sm:$0xff]  ;;  %v2889_v21 = vld [vmem:[#allocation27 + $0x260] sm:$0xff] }
 0xced   :  { %v7885_v53 = vpop.f32.mrb[25].mxu0 }
 0xcee   :  { %v2470_v62 = vadd.f32 %v5229_v22, %v5047_v54  ;;  %v6246_v54 = vpack.c.bf16 %v2896_v19, %v2890_v18  ;;  %v2895_v22 = vld [vmem:[#allocation27 + $0x290] sm:$0xff] }
 0xcef   :  { %v6248_v27 = vpack.c.bf16 %v2895_v22, %v2889_v21 }
 0xcf0   :  { %v2483_v25 = vadd.f32 %v2482_v14, %v2470_v62  ;;  %v7889_v26 = vpop.f32.mrb[26].mxu0  ;;  %v2902_v14 = vld [vmem:[#allocation27 + $0x2c8] sm:$0xff]  ;;  %v2908_v62 = vld [vmem:[#allocation27 + $0x2f8] sm:$0xff] }
 0xcf1   :  { %v7891_v15 = vpop.f32.mrb[27].mxu0  ;;  %v6250_v28 = vpack.c.bf16 %v2908_v62, %v2902_v14 }
 0xcf2   :  { %v2484_v63 = vmax.f32 %v2483_v25, 0.0 }
 0xcf4   :  { %v7894_v12 = vmul.f32 %v2484_v63, %v673_v60  ;;  %v7896_v24 = vpop.f32.mrb[28].mxu0 }
 0xcf5   :  { %v6290_v4 = vpack.c.bf16 %v7896_v24, %v7889_v26  ;;  %v7900_v40 = vpop.f32.mrb[29].mxu0 }
 0xcf6   :  { %v6296_v35 = vpack.c.bf16 %v7900_v40, %v7891_v15  ;;  %2974 = vmatmul.mubr.f32.vlgmr.msra.gmra.mrb[30].mxu1 %v7894_v12  ;;  %3045 = vmatmul.mubr.f32.vlgmr.msra.gmra.mrb[30].mxu0 %v7894_v12 }
 0xcf7   :  { %6225 = vmatpush1.bf16.msra.mxu1 %v6224_v55  ;;  %5581 = vmatprep.mubr.f32.mxu0 %v7879_v29  ;;  %v6238_v29 = vpack.c.bf16 %v2872_v49, %v2866_v47 }
 0xcf8   :  { %6227 = vmatprep.subr.bf16.mxu1 %v6226_v9  ;;  %3115 = vmatprep.mubr.f32.mxu1 %v7278_v6  ;;  %v6252_v9 = vpack.c.bf16 %v2907_v32, %v2901_v31 }
 0xcfb   :  { %6229 = vmatpush1.bf16.msra.mxu1 %v6228_v56 }
 0xcfc   :  { %6231 = vmatprep.subr.bf16.mxu1 %v6230_v36 }
 0xcff   :  { %6233 = vmatpush1.bf16.msra.mxu1 %v6232_v42 }
 0xd00   :  { %6235 = vmatprep.subr.bf16.mxu1 %v6234_v44 }
 0xd03   :  { %6237 = vmatpush1.bf16.msra.mxu1 %v6236_v50 }
 0xd04   :  { %6239 = vmatprep.subr.bf16.mxu1 %v6238_v29 }
 0xd07   :  { %6241 = vmatpush1.bf16.msra.mxu1 %v6240_v10 }
 0xd08   :  { %6243 = vmatprep.subr.bf16.mxu1 %v6242_v11 }
 0xd0a   :  { %v2725_v2 = vpop.f32.mrb[26].mxu1 }
 0xd0b   :  { %v7908_v25 = vpop.f32.mrb[27].mxu1  ;;  %6245 = vmatpush1.bf16.msra.mxu1 %v6244_v20 }
 0xd0c   :  { %6247 = vmatprep.subr.bf16.mxu1 %v6246_v54 }
 0xd0e   :  { %v2731_v60 = vpop.f32.mrb[28].mxu1 }
 0xd0f   :  { %v6287_v63 = vpack.c.bf16 %v2731_v60, %v2725_v2  ;;  %v7910_v55 = vpop.f32.mrb[29].mxu1  ;;  %6249 = vmatpush1.bf16.msra.mxu1 %v6248_v27 }
 0xd10   :  { %v6293_v1 = vpack.c.bf16 %v7910_v55, %v7908_v25  ;;  %6251 = vmatprep.subr.bf16.mxu1 %v6250_v28 }
 0xd13   :  { %6253 = vmatpush1.bf16.msra.mxu1 %v6252_v9 }
 0xd14   :  { %6286 = vmatprep.subr.bf16.mxu1 %v7276_v5 }
 0xd16   :  { %3116 = vmatmul.mubr.f32.vlgmr.msra.gmra.mrb[32].mxu1 %v7894_v12 }
 0xd17   :  { %5603 = vmatprep.mubr.msk.f32.mxu1 %vm7277_vm0, %v7278_v6 }
 0xd1c   :  { %6288 = vmatpush3.bf16.xpose.msra.mxu1 %v6287_v63 }
 0xd1d   :  { %6289 = vmatprep.subr.bf16.mxu1 %v7276_v5 }
 0xdc9   :  { %v2975_v33 = vpop.f32.mrb[30].mxu1  ;;  %v3046_v41 = vpop.f32.mrb[30].mxu0 }
 0xdca   :  { %v7919_v34 = vpop.f32.mrb[31].mxu1  ;;  %v3048_v56 = vpop.f32.mrb[31].mxu0  ;;  %5579 = vmatprep.subr.mxu0 %v3046_v41  ;;  %5604 = vmatmul.mubr.f32.vlgmr.msra.gmra.mrb[34].mxu1 %v2975_v33 }
 0xdcb   :  { %6291 = vmatpush3.bf16.msra.mxu1 %v6290_v4  ;;  %5580 = vmatpush3.xpose.msra.mxu0 %v3046_v41 }
 0xdcc   :  { %5610 = vmatprep.mubr.msk.f32.mxu1 %vm7277_vm0, %v7278_v6  ;;  %6292 = vmatprep.subr.bf16.mxu1 %v7276_v5 }
 0xdce   :  { %5582 = vmatmul.mubr.f32.vlgmr.msra.gmra.mrb[32].mxu0 %v7883_v57 }
 0xde9   :  { %v3117_v36 = vpop.f32.mrb[32].mxu1 }
 0xdea   :  { %v3119_v37 = vpop.f32.mrb[33].mxu1  ;;  %5584 = vmatprep.subr.mxu0 %v3117_v36 }
 0xdeb   :  { %5585 = vmatpush3.msra.mxu0 %v3117_v36 }
 0xdec   :  { %5589 = vmatprep.subr.mxu0 %v3048_v56 }
 0xe9d   :  { %v3748_v38 = vpop.f32.mrb[34].mxu1 }
 0xe9e   :  { %v5605_v7 = vpop.f32.mrb[35].mxu1  ;;  %v3749_v44 = vadd.f32 %v3748_v38, %v7762_v58 }
 0xea0   :  { %v3752_v45 = vsel %vm481_vm5, %v3749_v44, -inf }
 0xea1   :  { %v5583_v13 = vpop.f32.mrb[32].mxu0 }
 0xea2   :  { %v3228_v42 = vadd.f32 %v5583_v13, %v7719_v17  ;;  %v3222_v26 = vpop.f32.mrb[33].mxu0 }
 0xea3   :  { %v3223_v24 = vadd.f32 %v3222_v26, %v7716_v8 }
 0xea4   :  { %v3234_v4 = vsel %vm466_vm3, %v3228_v42, -inf }
 0xea5   :  { %3235 = vmax.xlane.f32.xlu0 %v3234_v4  ;;  %v3231_v57 = vsel %vm466_vm3, %v3223_v24, -inf }
 0xea6   :  { %3232 = vmax.xlane.f32.xlu1 %v3231_v57  ;;  %v5058_v57 = vld [vmem:[#allocation5] ss:$0 sm:$0xff] }
 0xeaa   :  { %3753 = vmax.xlane.f32.xlu1 %v3752_v45  ;;  %v3138_v45 = vld [vmem:[#allocation28 + $0x80] sm:$0xff] }
 0xf32   :  { %v3236_v46 = vpop.xlane.xlu0 %3235 }
 0xf33   :  { %v3238_v47 = vsub.f32 %v3228_v42, %v3236_v46  ;;  %v3233_v49 = vpop.xlane.xlu1 %3232  ;;  %v3139_v46 = vld [vmem:[#allocation28 + $0x88] sm:$0xff] }
 0xf34   :  { %v3237_v50 = vsub.f32 %v3223_v24, %v3233_v49 }
 0xf35   :  { %v3241_v29 = vmul.f32 1.442695, %v3238_v47  ;;  %v6254_v47 = vpack.c.bf16 %v3139_v46, %v3138_v45  ;;  %v3136_v46 = vld [vmem:[#allocation28 + $0x70] sm:$0xff] }
 0xf36   :  { %v3239_v51 = vmul.f32 1.442695, %v3237_v50 }
 0xf37   :  { %v3754_v23 = vpop.xlane.xlu1 %3753 }
 0xf38   :  { %6606 = vpow2.f32 %v3239_v51  ;;  %v3755_v52 = vsub.f32 %v3749_v44, %v3754_v23  ;;  %v5054_v44 = vld [vmem:[#allocation4] ss:$0 sm:$0xff] }
 0xf39   :  { %6608 = vpow2.f32 %v3241_v29 }
 0xf3a   :  { %v3756_v3 = vmul.f32 1.442695, %v3755_v52 }
 0xf3c   :  { %6610 = vpow2.f32 %v3756_v3 }
 0xf42   :  { %v6607_v10 = vpop.eup %6606 }
 0xf43   :  { %v3243_v11 = vsel %vm466_vm3, %v6607_v10, 0.0  ;;  %v6609_v61 = vpop.eup %6608 }
 0xf44   :  { %3244 = vadd.xlane.f32.xlu1 %v3243_v11  ;;  %v3246_v16 = vsel %vm466_vm3, %v6609_v61, 0.0 }
 0xf46   :  { %v6611_v18 = vpop.eup %6610 }
 0xf47   :  { %v3758_v19 = vsel %vm481_vm5, %v6611_v18, 0.0 }
 0xf48   :  { %3247 = vadd.xlane.f32.xlu1 %v3246_v16  ;;  %v3123_v16 = vld [vmem:[#allocation28 + $0x8] sm:$0xff] }
 0xf4c   :  { %3759 = vadd.xlane.f32.xlu1 %v3758_v19  ;;  %v3140_v19 = vld [vmem:[#allocation28 + $0x90] sm:$0xff] }
 0xfd1   :  { %v3245_v20 = vpop.xlane.xlu1 %3244 }
 0xfd2   :  { %6612 = vrcp.f32 %v3245_v20  ;;  %v3141_v20 = vld [vmem:[#allocation28 + $0x98] sm:$0xff] }
 0xfd5   :  { %v3248_v54 = vpop.xlane.xlu1 %3247 }
 0xfd6   :  { %6614 = vrcp.f32 %v3248_v54  ;;  %v6258_v54 = vpack.c.bf16 %v3141_v20, %v3140_v19  ;;  %v4106_v19 = vld [vmem:[#allocation34 + $0x40] sm:$0xff] }
 0xfd7   :  { %v4110_v20 = vld [vmem:[#allocation34 + $0x60] sm:$0xff] }
 0xfd9   :  { %v3760_v21 = vpop.xlane.xlu1 %3759 }
 0xfda   :  { %6616 = vrcp.f32 %v3760_v21  ;;  %v3124_v21 = vld [vmem:[#allocation28 + $0x10] sm:$0xff] }
 0xfdc   :  { %v6613_v22 = vpop.eup %6612 }
 0xfdd   :  { %v3251_v14 = vmul.f32 %v6613_v22, %v6607_v10  ;;  %v3125_v22 = vld [vmem:[#allocation28 + $0x18] sm:$0xff] }
 0xfdf   :  { %5586 = vmatprep.mubr.msk.f32.mxu0 %vm466_vm3, %v3251_v14  ;;  %v6260_v14 = vpack.c.bf16 %v3125_v22, %v3124_v21  ;;  %v6336_v21 = vpack.c.bf16 %v4110_v20, %v4106_v19  ;;  %v4115_v22 = vld [vmem:[#allocation34 + $0x88] sm:$0xff] }
 0xfe0   :  { %v6615_v62 = vpop.eup %6614 }
 0xfe1   :  { %v3252_v2 = vmul.f32 %v6615_v62, %v6609_v61  ;;  %v3122_v61 = vld [vmem:[#allocation28] sm:$0xff] }
 0xfe2   :  { %v3142_v62 = vld [vmem:[#allocation28 + $0xa0] sm:$0xff] }
 0xfe3   :  { %5587 = vmatmul.mubr.msk.f32.vlgmr.msra.gmra.mrb[34].mxu0 %vm466_vm3, %v3252_v2  ;;  %v3143_v2 = vld [vmem:[#allocation28 + $0xa8] sm:$0xff] }
 0xfe4   :  { %v6617_v27 = vpop.eup %6616  ;;  %5590 = vmatpush3.xpose.msra.mxu0 %v3048_v56  ;;  %5591 = vmatprep.mubr.f32.mxu0 %v7881_v30 }
 0xfe5   :  { %v3762_v28 = vmul.f32 %v6617_v27, %v6611_v18  ;;  %5594 = vmatprep.subr.mxu0 %v3119_v37  ;;  %v6256_v18 = vpack.c.bf16 %v3123_v16, %v3122_v61  ;;  %v6262_v27 = vpack.c.bf16 %v3143_v2, %v3142_v62  ;;  %v4107_v16 = vld [vmem:[#allocation34 + $0x48] sm:$0xff]  ;;  %v4114_v2 = vld [vmem:[#allocation34 + $0x80] sm:$0xff] }
 0xfe7   :  { %5592 = vmatmul.mubr.f32.vlgmr.msra.gmra.mrb[36].mxu0 %v7885_v53  ;;  %5611 = vmatmul.mubr.msk.f32.vlgmr.msra.gmra.mrb[36].mxu1 %vm481_vm5, %v3762_v28  ;;  %v3126_v28 = vld [vmem:[#allocation28 + $0x20] sm:$0xff] }
 0xfe8   :  { %5595 = vmatpush3.msra.mxu0 %v3119_v37  ;;  %6294 = vmatpush3.bf16.xpose.msra.mxu1 %v6293_v1 }
 0xfe9   :  { %5617 = vmatprep.mubr.msk.f32.mxu1 %vm7277_vm0, %v7278_v6  ;;  %6295 = vmatprep.subr.bf16.mxu1 %v7276_v5 }
 0xfea   :  { %6255 = vmatprep.subr.bf16.mxu0 %v6254_v47  ;;  %v3137_v47 = vld [vmem:[#allocation28 + $0x78] sm:$0xff] }
 0xfef   :  { %5618 = vmatmul.mubr.f32.vlgmr.msra.gmra.mrb[38].mxu1 %v7919_v34 }
 0xff0   :  { %6297 = vmatpush3.bf16.msra.mxu1 %v6296_v35  ;;  %5624 = vmatprep.mubr.msk.f32.mxu1 %vm7277_vm0, %v7278_v6 }
0x10b6   :  { %v7954_v30 = vpop.f32.mrb[34].mxu0 }
0x10b7   :  { %v7956_v53 = vpop.f32.mrb[35].mxu0 }
0x10ba   :  { %v5593_v25 = vpop.f32.mrb[36].mxu0  ;;  %v7958_v31 = vpop.f32.mrb[36].mxu1 }
0x10bb   :  { %v3400_v32 = vpop.f32.mrb[37].mxu0  ;;  %v5612_v60 = vpop.f32.mrb[37].mxu1  ;;  %v3406_v55 = vadd.f32 %v5593_v25, %v7719_v17  ;;  %v3127_v25 = vld [vmem:[#allocation28 + $0x28] sm:$0xff] }
0x10bc   :  { %v3401_v63 = vadd.f32 %v3400_v32, %v7716_v8  ;;  %v6264_v32 = vpack.c.bf16 %v3127_v25, %v3126_v28  ;;  %v3144_v60 = vld [vmem:[#allocation28 + $0xb0] sm:$0xff] }
0x10bd   :  { %v3412_v40 = vsel %vm466_vm3, %v3406_v55, -inf  ;;  %v4123_v25 = vld [vmem:[#allocation34 + $0xc8] sm:$0xff] }
0x10be   :  { %v3409_v9 = vsel %vm466_vm3, %v3401_v63, -inf }
0x10bf   :  { %3410 = vmax.xlane.f32.xlu1 %v3409_v9  ;;  %v3128_v9 = vld [vmem:[#allocation28 + $0x30] sm:$0xff] }
0x10c2   :  { %v3902_v15 = vpop.f32.mrb[38].mxu1 }
0x10c3   :  { %v3903_v35 = vadd.f32 %v3902_v15, %v7762_v58  ;;  %v5619_v1 = vpop.f32.mrb[39].mxu1  ;;  %3413 = vmax.xlane.f32.xlu1 %v3412_v40  ;;  %v3129_v15 = vld [vmem:[#allocation28 + $0x38] sm:$0xff] }
0x10c4   :  { %v6268_v40 = vpack.c.bf16 %v3129_v15, %v3128_v9  ;;  %v3147_v1 = vld [vmem:[#allocation28 + $0xc8] sm:$0xff] }
0x10c5   :  { %v3906_v33 = vsel %vm481_vm5, %v3903_v35, -inf  ;;  %v4131_v15 = vld [vmem:[#allocation34 + $0x108] sm:$0xff] }
0x10c7   :  { %3907 = vmax.xlane.f32.xlu1 %v3906_v33 }
0x114c   :  { %v3411_v41 = vpop.xlane.xlu1 %3410 }
0x114d   :  { %v3415_v34 = vsub.f32 %v3401_v63, %v3411_v41  ;;  %v3145_v63 = vld [vmem:[#allocation28 + $0xb8] sm:$0xff]  ;;  %v3130_v41 = vld [vmem:[#allocation28 + $0x40] sm:$0xff] }
0x114f   :  { %v3417_v56 = vmul.f32 1.442695, %v3415_v34  ;;  %v3131_v34 = vld [vmem:[#allocation28 + $0x48] sm:$0xff] }
0x1150   :  { %v3414_v36 = vpop.xlane.xlu1 %3413 }
0x1151   :  { %6618 = vpow2.f32 %v3417_v56  ;;  %v3416_v8 = vsub.f32 %v3406_v55, %v3414_v36  ;;  %v6266_v55 = vpack.c.bf16 %v3145_v63, %v3144_v60  ;;  %v6272_v56 = vpack.c.bf16 %v3131_v34, %v3130_v41  ;;  %v3148_v36 = vld [vmem:[#allocation28 + $0xd0] sm:$0xff]  ;;  %v4122_v60 = vld [vmem:[#allocation34 + $0xc0] sm:$0xff] }
0x1152   :  { %v4139_v34 = vld [vmem:[#allocation34 + $0x148] sm:$0xff] }
0x1153   :  { %v3419_v17 = vmul.f32 1.442695, %v3416_v8  ;;  %v3149_v8 = vld [vmem:[#allocation28 + $0xd8] sm:$0xff] }
0x1154   :  { %v3908_v37 = vpop.xlane.xlu1 %3907 }
0x1155   :  { %6620 = vpow2.f32 %v3419_v17  ;;  %v3909_v38 = vsub.f32 %v3903_v35, %v3908_v37  ;;  %v3146_v35 = vld [vmem:[#allocation28 + $0xc0] sm:$0xff]  ;;  %v3132_v17 = vld [vmem:[#allocation28 + $0x50] sm:$0xff]  ;;  %v6274_v37 = vpack.c.bf16 %v3149_v8, %v3148_v36 }
0x1156   :  { %v6270_v33 = vpack.c.bf16 %v3147_v1, %v3146_v35  ;;  %v4130_v35 = vld [vmem:[#allocation34 + $0x100] sm:$0xff] }
0x1157   :  { %v3910_v7 = vmul.f32 1.442695, %v3909_v38  ;;  %v3133_v38 = vld [vmem:[#allocation28 + $0x58] sm:$0xff]  ;;  %v4138_v36 = vld [vmem:[#allocation34 + $0x140] sm:$0xff] }
0x1159   :  { %6622 = vpow2.f32 %v3910_v7  ;;  %v3150_v7 = vld [vmem:[#allocation28 + $0xe0] sm:$0xff] }
0x115b   :  { %v6619_v13 = vpop.eup %6618 }
0x115c   :  { %v3421_v58 = vsel %vm466_vm3, %v6619_v13, 0.0 }
0x115d   :  { %3422 = vadd.xlane.f32.xlu0 %v3421_v58  ;;  %v6276_v58 = vpack.c.bf16 %v3133_v38, %v3132_v17  ;;  %v4142_v17 = vld [vmem:[#allocation34 + $0x160] sm:$0xff]  ;;  %v3512_v38 = vmul.f32 %v7824_v39, %v7956_v53 }
0x115f   :  { %v6621_v42 = vpop.eup %6620 }
0x1160   :  { %v3424_v26 = vsel %vm466_vm3, %v6621_v42, 0.0 }
0x1161   :  { %3425 = vadd.xlane.f32.xlu1 %v3424_v26  ;;  %v3134_v26 = vld [vmem:[#allocation28 + $0x60] sm:$0xff] }
0x1163   :  { %v6623_v24 = vpop.eup %6622 }
0x1164   :  { %v3912_v4 = vsel %vm481_vm5, %v6623_v24, 0.0 }
0x1165   :  { %3913 = vadd.xlane.f32.xlu0 %v3912_v4  ;;  %v3152_v4 = vld [vmem:[#allocation28 + $0xf0] sm:$0xff] }
0x1172   :  { %3639 = vperm.xlu1 %6568, %v5054_v44   ;;  %v3153_v44 = vld [vmem:[#allocation28 + $0xf8] sm:$0xff] }
0x1173   :  { %v6282_v45 = vpack.c.bf16 %v3153_v44, %v3152_v4 }
0x117b   :  { %4092 = vperm.xlu0 %6569, %v5058_v57  }
0x11ea   :  { %v3423_v49 = vpop.xlane.xlu0 %3422 }
0x11eb   :  { %6624 = vrcp.f32 %v3423_v49  ;;  %v6284_v49 = vpack.c.bf16 %v3137_v47, %v3136_v46 }
0x11ee   :  { %v3426_v50 = vpop.xlane.xlu1 %3425 }
0x11ef   :  { %6626 = vrcp.f32 %v3426_v50  ;;  %v3664_v50 = vld [vmem:[#allocation31 + $0x80] sm:$0xff] }
0x11f2   :  { %v3914_v29 = vpop.xlane.xlu0 %3913 }
0x11f3   :  { %6628 = vrcp.f32 %v3914_v29  ;;  %v3665_v29 = vld [vmem:[#allocation31 + $0x88] sm:$0xff] }
0x11f5   :  { %v6625_v51 = vpop.eup %6624 }
0x11f6   :  { %v3429_v23 = vmul.f32 %v6625_v51, %v6619_v13  ;;  %v3151_v13 = vld [vmem:[#allocation28 + $0xe8] sm:$0xff]  ;;  %v6298_v51 = vpack.c.bf16 %v3665_v29, %v3664_v50 }
0x11f8   :  { %5596 = vmatprep.mubr.msk.f32.mxu0 %vm466_vm3, %v3429_v23  ;;  %v4099_v23 = vld [vmem:[#allocation34 + $0x8] sm:$0xff] }
0x11f9   :  { %v6627_v52 = vpop.eup %6626 }
0x11fa   :  { %v3430_v3 = vmul.f32 %v6627_v52, %v6621_v42  ;;  %v6278_v42 = vpack.c.bf16 %v3151_v13, %v3150_v7  ;;  %v4103_v52 = vld [vmem:[#allocation34 + $0x28] sm:$0xff]  ;;  %v7977_v7 = vmul.f32 %v7954_v30, %v7837_v59  ;;  %v3516_v13 = vmul.f32 %v3512_v38, %v3512_v38 }
0x11fc   :  { %5597 = vmatmul.mubr.msk.f32.vlgmr.msra.gmra.mrb[38].mxu0 %vm466_vm3, %v3430_v3  ;;  %v4098_v3 = vld [vmem:[#allocation34] sm:$0xff] }
0x11fd   :  { %v6629_v10 = vpop.eup %6628  ;;  %6257 = vmatpush3.bf16.msra.mxu0 %v6256_v18  ;;  %v4111_v18 = vld [vmem:[#allocation34 + $0x68] sm:$0xff] }
0x11fe   :  { %v3916_v11 = vmul.f32 %v6629_v10, %v6623_v24  ;;  %6259 = vmatprep.subr.bf16.mxu0 %v6258_v54  ;;  %v3135_v24 = vld [vmem:[#allocation28 + $0x68] sm:$0xff]  ;;  %v6330_v10 = vpack.c.bf16 %v4103_v52, %v4099_v23  ;;  %v6334_v54 = vpack.c.bf16 %v4111_v18, %v4107_v16 }
0x11ff   :  { %v6280_v57 = vpack.c.bf16 %v3135_v24, %v3134_v26 }
0x1200   :  { %5625 = vmatmul.mubr.msk.f32.vlgmr.msra.gmra.mrb[40].mxu1 %vm481_vm5, %v3916_v11  ;;  %v4102_v11 = vld [vmem:[#allocation34 + $0x20] sm:$0xff]  ;;  %6331 = vmatprep.subr.bf16.mxu1 %v6330_v10 }
0x1201   :  { %4226 = vmatprep.mubr.f32.mxu1 %v7278_v6  ;;  %6261 = vmatpush3.bf16.msra.mxu0 %v6260_v14  ;;  %v6332_v61 = vpack.c.bf16 %v4102_v11, %v4098_v3  ;;  %v4119_v14 = vld [vmem:[#allocation34 + $0xa8] sm:$0xff] }
0x1202   :  { %6263 = vmatprep.subr.bf16.mxu0 %v6262_v27  ;;  %v6338_v62 = vpack.c.bf16 %v4119_v14, %v4115_v22  ;;  %v4118_v27 = vld [vmem:[#allocation34 + $0xa0] sm:$0xff]  ;;  %v7994_v14 = vmul.f32 %v7858_v43, %v7958_v31 }
0x1203   :  { %6333 = vmatpush1.bf16.msra.mxu1 %v6332_v61  ;;  %v6340_v28 = vpack.c.bf16 %v4118_v27, %v4114_v2 }
0x1204   :  { %6335 = vmatprep.subr.bf16.mxu1 %v6334_v54  ;;  %v3992_v2 = vmul.f32 %v7994_v14, %v7994_v14 }
0x1205   :  { %6265 = vmatpush3.bf16.msra.mxu0 %v6264_v32  ;;  %v4127_v32 = vld [vmem:[#allocation34 + $0xe8] sm:$0xff] }
0x1206   :  { %6267 = vmatprep.subr.bf16.mxu0 %v6266_v55  ;;  %v6342_v63 = vpack.c.bf16 %v4127_v32, %v4123_v25  ;;  %v4126_v55 = vld [vmem:[#allocation34 + $0xe0] sm:$0xff] }
0x1207   :  { %6337 = vmatpush1.bf16.msra.mxu1 %v6336_v21  ;;  %v6344_v9 = vpack.c.bf16 %v4126_v55, %v4122_v60 }
0x1208   :  { %6339 = vmatprep.subr.bf16.mxu1 %v6338_v62 }
0x1209   :  { %6269 = vmatpush3.bf16.msra.mxu0 %v6268_v40  ;;  %v4135_v40 = vld [vmem:[#allocation34 + $0x128] sm:$0xff] }
0x120a   :  { %6271 = vmatprep.subr.bf16.mxu0 %v6270_v33  ;;  %v6346_v1 = vpack.c.bf16 %v4135_v40, %v4131_v15  ;;  %v4134_v33 = vld [vmem:[#allocation34 + $0x120] sm:$0xff] }
0x120b   :  { %6341 = vmatpush1.bf16.msra.mxu1 %v6340_v28  ;;  %v6348_v41 = vpack.c.bf16 %v4134_v33, %v4130_v35  ;;  %v3648_v15 = vld [vmem:[#allocation31] sm:$0xff]  ;;  %v3649_v40 = vld [vmem:[#allocation31 + $0x8] sm:$0xff]  ;;  %v3666_v33 = vld [vmem:[#allocation31 + $0x90] sm:$0xff] }
0x120c   :  { %6343 = vmatprep.subr.bf16.mxu1 %v6342_v63  ;;  %v3994_v63 = vmul.f32 %v3992_v2, %v7994_v14 }
0x120d   :  { %6273 = vmatpush3.bf16.msra.mxu0 %v6272_v56  ;;  %v4143_v56 = vld [vmem:[#allocation34 + $0x168] sm:$0xff] }
0x120e   :  { %6275 = vmatprep.subr.bf16.mxu0 %v6274_v37  ;;  %v6350_v8 = vpack.c.bf16 %v4143_v56, %v4139_v34  ;;  %v6352_v37 = vpack.c.bf16 %v4142_v17, %v4138_v36  ;;  %v3996_v56 = vmul.f32 0.044715, %v3994_v63  ;;  %v3679_v63 = vld [vmem:[#allocation31 + $0xf8] sm:$0xff] }
0x120f   :  { %6345 = vmatpush1.bf16.msra.mxu1 %v6344_v9 }
0x1210   :  { %6347 = vmatprep.subr.bf16.mxu1 %v6346_v1 }
0x1211   :  { %6277 = vmatpush3.bf16.msra.mxu0 %v6276_v58  ;;  %v3518_v58 = vmul.f32 %v7977_v7, %v7977_v7 }
0x1212   :  { %6279 = vmatprep.subr.bf16.mxu0 %v6278_v42  ;;  %v3520_v42 = vmul.f32 %v3516_v13, %v3512_v38 }
0x1213   :  { %6349 = vmatpush1.bf16.msra.mxu1 %v6348_v41  ;;  %v3522_v26 = vmul.f32 %v3518_v58, %v7977_v7  ;;  %v3667_v41 = vld [vmem:[#allocation31 + $0x98] sm:$0xff]  ;;  %v3650_v58 = vld [vmem:[#allocation31 + $0x10] sm:$0xff] }
0x1214   :  { %6351 = vmatprep.subr.bf16.mxu1 %v6350_v8  ;;  %v3524_v24 = vmul.f32 0.044715, %v3520_v42  ;;  %v6300_v8 = vpack.c.bf16 %v3649_v40, %v3648_v15  ;;  %v3651_v42 = vld [vmem:[#allocation31 + $0x18] sm:$0xff]  ;;  %v3662_v40 = vld [vmem:[#allocation31 + $0x70] sm:$0xff] }
0x1215   :  { %6281 = vmatpush3.bf16.msra.mxu0 %v6280_v57  ;;  %v3526_v4 = vmul.f32 0.044715, %v3522_v26 }
0x1216   :  { %6283 = vmatprep.subr.bf16.mxu0 %v6282_v45  ;;  %v3528_v57 = vadd.f32 %v3524_v24, %v3512_v38 }
0x1217   :  { %6353 = vmatpush1.bf16.msra.mxu1 %v6352_v37  ;;  %v3530_v30 = vadd.f32 %v3526_v4, %v7977_v7  ;;  %v6302_v37 = vpack.c.bf16 %v3667_v41, %v3666_v33  ;;  %v3668_v4 = vld [vmem:[#allocation31 + $0xa0] sm:$0xff] }
0x1218   :  { %v3532_v29 = vmul.f32 0.7978846, %v3528_v57  ;;  %v3998_v57 = vadd.f32 %v3996_v56, %v7994_v14  ;;  %v4104_v56 = vld [vmem:[#allocation34 + $0x30] sm:$0xff] }
0x1219   :  { %6285 = vmatpush3.bf16.msra.mxu0 %v6284_v49 }
0x121a   :  { %6299 = vmatprep.subr.bf16.mxu0 %v6298_v51  ;;  %6630 = vtanh.f32 %v3532_v29  ;;  %v3671_v29 = vld [vmem:[#allocation31 + $0xb8] sm:$0xff] }
0x1224   :  { %v6631_v62 = vpop.eup %6630 }
0x1225   :  { %v3540_v28 = vadd.f32 1.0, %v6631_v62  ;;  %v3677_v62 = vld [vmem:[#allocation31 + $0xe8] sm:$0xff] }
0x1227   :  { %v3544_v9 = vmul.f32 0.5, %v3540_v28  ;;  %v3660_v28 = vld [vmem:[#allocation31 + $0x60] sm:$0xff] }
0x1229   :  { %v3548_v17 = vmul.f32 %v3544_v9, %v3512_v38  ;;  %v3652_v38 = vld [vmem:[#allocation31 + $0x20] sm:$0xff] }
0x12cf   :  { %v5598_v44 = vpop.f32.mrb[38].mxu0 }
0x12d0   :  { %v3515_v45 = vmul.f32 %v5598_v44, %v7837_v59  ;;  %v3503_v46 = vpop.f32.mrb[39].mxu0  ;;  %v3534_v59 = vmul.f32 0.7978846, %v3530_v30  ;;  %v3669_v44 = vld [vmem:[#allocation31 + $0xa8] sm:$0xff] }
0x12d1   :  { %v3513_v53 = vmul.f32 %v7824_v39, %v3503_v46  ;;  %v6304_v46 = vpack.c.bf16 %v3651_v42, %v3650_v58  ;;  %v3653_v30 = vld [vmem:[#allocation31 + $0x28] sm:$0xff]  ;;  %v4108_v58 = vld [vmem:[#allocation34 + $0x50] sm:$0xff] }
0x12d2   :  { %v3519_v47 = vmul.f32 %v3515_v45, %v3515_v45  ;;  %6632 = vtanh.f32 %v3534_v59  ;;  %v3673_v59 = vld [vmem:[#allocation31 + $0xc8] sm:$0xff]  ;;  %v4112_v42 = vld [vmem:[#allocation34 + $0x70] sm:$0xff] }
0x12d3   :  { %v3517_v49 = vmul.f32 %v3513_v53, %v3513_v53  ;;  %v3986_v50 = vpop.f32.mrb[40].mxu1 }
0x12d4   :  { %v3523_v51 = vmul.f32 %v3519_v47, %v3515_v45  ;;  %v7986_v23 = vmul.f32 %v7858_v43, %v3986_v50  ;;  %v5626_v52 = vpop.f32.mrb[41].mxu1  ;;  %v6306_v47 = vpack.c.bf16 %v3669_v44, %v3668_v4  ;;  %v3670_v50 = vld [vmem:[#allocation31 + $0xb0] sm:$0xff]  ;;  %v6368_v4 = vpack.c.bf16 %v4112_v42, %v4108_v58 }
0x12d5   :  { %v3521_v3 = vmul.f32 %v3517_v49, %v3513_v53  ;;  %v6310_v52 = vpack.c.bf16 %v3671_v29, %v3670_v50  ;;  %v4133_v50 = vld [vmem:[#allocation34 + $0x118] sm:$0xff] }
0x12d6   :  { %v3527_v10 = vmul.f32 0.044715, %v3523_v51  ;;  %v3993_v11 = vmul.f32 %v7986_v23, %v7986_v23  ;;  %v6308_v51 = vpack.c.bf16 %v3653_v30, %v3652_v38  ;;  %v4124_v30 = vld [vmem:[#allocation34 + $0xd0] sm:$0xff]  ;;  %v4137_v29 = vld [vmem:[#allocation34 + $0x138] sm:$0xff] }
0x12d7   :  { %v3525_v61 = vmul.f32 0.044715, %v3521_v3  ;;  %v3654_v3 = vld [vmem:[#allocation31 + $0x30] sm:$0xff] }
0x12d8   :  { %v3531_v39 = vadd.f32 %v3527_v10, %v3515_v45  ;;  %v3995_v16 = vmul.f32 %v3993_v11, %v7986_v23  ;;  %v3655_v10 = vld [vmem:[#allocation31 + $0x38] sm:$0xff]  ;;  %v3672_v11 = vld [vmem:[#allocation31 + $0xc0] sm:$0xff] }
0x12d9   :  { %v3529_v18 = vadd.f32 %v3525_v61, %v3513_v53  ;;  %v6314_v61 = vpack.c.bf16 %v3673_v59, %v3672_v11  ;;  %v4145_v11 = vld [vmem:[#allocation34 + $0x178] sm:$0xff] }
0x12da   :  { %v3535_v19 = vmul.f32 0.7978846, %v3531_v39  ;;  %v3997_v20 = vmul.f32 0.044715, %v3995_v16  ;;  %v3656_v39 = vld [vmem:[#allocation31 + $0x40] sm:$0xff]  ;;  %v3674_v16 = vld [vmem:[#allocation31 + $0xd0] sm:$0xff] }
0x12db   :  { %v3533_v54 = vmul.f32 0.7978846, %v3529_v18  ;;  %v3675_v18 = vld [vmem:[#allocation31 + $0xd8] sm:$0xff] }
0x12dc   :  { %v3999_v21 = vadd.f32 %v3997_v20, %v7986_v23  ;;  %6634 = vtanh.f32 %v3535_v19  ;;  %v6633_v27 = vpop.eup %6632  ;;  %v6318_v20 = vpack.c.bf16 %v3675_v18, %v3674_v16  ;;  %v4147_v16 = vld [vmem:[#allocation34 + $0x188] sm:$0xff] }
0x12dd   :  { %6636 = vtanh.f32 %v3533_v54  ;;  %v3542_v35 = vadd.f32 1.0, %v6633_v27  ;;  %v3658_v54 = vld [vmem:[#allocation31 + $0x50] sm:$0xff] }
0x12de   :  { %v4001_v22 = vmul.f32 0.7978846, %v3999_v21  ;;  %v3659_v21 = vld [vmem:[#allocation31 + $0x58] sm:$0xff]  ;;  %v4151_v18 = vld [vmem:[#allocation34 + $0x1a8] sm:$0xff] }
0x12df   :  { %v3546_v13 = vmul.f32 0.5, %v3542_v35  ;;  %v6320_v2 = vpack.c.bf16 %v3659_v21, %v3658_v54  ;;  %v3663_v35 = vld [vmem:[#allocation31 + $0x78] sm:$0xff]  ;;  %v4150_v54 = vld [vmem:[#allocation34 + $0x1a0] sm:$0xff] }
0x12e0   :  { %6638 = vtanh.f32 %v4001_v22  ;;  %v3676_v22 = vld [vmem:[#allocation31 + $0xe0] sm:$0xff] }
0x12e1   :  { %v6322_v27 = vpack.c.bf16 %v3677_v62, %v3676_v22  ;;  %v4149_v22 = vld [vmem:[#allocation34 + $0x198] sm:$0xff] }
0x12e2   :  { %v4153_v62 = vld [vmem:[#allocation34 + $0x1b8] sm:$0xff] }
0x12e6   :  { %v6635_v25 = vpop.eup %6634 }
0x12e7   :  { %v6637_v32 = vpop.eup %6636  ;;  %v3543_v60 = vadd.f32 1.0, %v6635_v25  ;;  %v3661_v25 = vld [vmem:[#allocation31 + $0x68] sm:$0xff] }
0x12e8   :  { %v3541_v55 = vadd.f32 1.0, %v6637_v32 }
0x12e9   :  { %v3547_v31 = vmul.f32 0.5, %v3543_v60  ;;  %v3678_v60 = vld [vmem:[#allocation31 + $0xf0] sm:$0xff] }
0x12ea   :  { %v6639_v1 = vpop.eup %6638  ;;  %v3545_v43 = vmul.f32 0.5, %v3541_v55  ;;  %v6324_v55 = vpack.c.bf16 %v3661_v25, %v3660_v28  ;;  %v6326_v15 = vpack.c.bf16 %v3679_v63, %v3678_v60  ;;  %v4152_v28 = vld [vmem:[#allocation34 + $0x1b0] sm:$0xff]  ;;  %v4159_v60 = vld [vmem:[#allocation34 + $0x1e8] sm:$0xff] }
0x12eb   :  { %v4005_v34 = vadd.f32 1.0, %v6639_v1  ;;  %v3551_v26 = vmul.f32 %v3547_v31, %v3515_v45  ;;  %v4000_v45 = vmul.f32 0.7978846, %v3998_v57  ;;  %v4101_v1 = vld [vmem:[#allocation34 + $0x18] sm:$0xff]  ;;  %v6328_v31 = vpack.c.bf16 %v3663_v35, %v3662_v40  ;;  %v4116_v57 = vld [vmem:[#allocation34 + $0x90] sm:$0xff] }
0x12ec   :  { %v3549_v36 = vmul.f32 %v3545_v43, %v3513_v53  ;;  %v3550_v53 = vmul.f32 %v3546_v13, %v7977_v7  ;;  %v6312_v7 = vpack.c.bf16 %v3655_v10, %v3654_v3  ;;  %v4105_v43 = vld [vmem:[#allocation34 + $0x38] sm:$0xff]  ;;  %v4136_v3 = vld [vmem:[#allocation34 + $0x130] sm:$0xff] }
0x12ed   :  { %v4007_v24 = vmul.f32 0.5, %v4005_v34  ;;  %6640 = vtanh.f32 %v4000_v45  ;;  %v6362_v41 = vpack.c.bf16 %v4105_v43, %v4101_v1  ;;  %v4100_v34 = vld [vmem:[#allocation34 + $0x10] sm:$0xff]  ;;  %v4141_v10 = vld [vmem:[#allocation34 + $0x158] sm:$0xff] }
0x12ee   :  { %3622 = vmatprep.mubr.f32.mxu0 %v3549_v36  ;;  %v4109_v36 = vld [vmem:[#allocation34 + $0x58] sm:$0xff]  ;;  %v4156_v1 = vld [vmem:[#allocation34 + $0x1d0] sm:$0xff] }
0x12ef   :  { %3623 = vmatmul.mubr.f32.vlgmr.msra.gmra.mrb[40].mxu0 %v3548_v17  ;;  %v4009_v49 = vmul.f32 %v4007_v24, %v7986_v23  ;;  %v3657_v23 = vld [vmem:[#allocation31 + $0x48] sm:$0xff]  ;;  %v6364_v17 = vpack.c.bf16 %v4104_v56, %v4100_v34  ;;  %v4121_v24 = vld [vmem:[#allocation34 + $0xb8] sm:$0xff]  ;;  %v4160_v43 = vld [vmem:[#allocation34 + $0x1f0] sm:$0xff] }
0x12f0   :  { %6301 = vmatpush3.bf16.msra.mxu0 %v6300_v8  ;;  %3627 = vmatprep.mubr.f32.mxu0 %v3551_v26  ;;  %v6316_v19 = vpack.c.bf16 %v3657_v23, %v3656_v39  ;;  %v4113_v8 = vld [vmem:[#allocation34 + $0x78] sm:$0xff]  ;;  %v4144_v39 = vld [vmem:[#allocation34 + $0x170] sm:$0xff] }
0x12f1   :  { %6303 = vmatprep.subr.bf16.mxu0 %v6302_v37  ;;  %v6366_v13 = vpack.c.bf16 %v4113_v8, %v4109_v36  ;;  %v4117_v26 = vld [vmem:[#allocation34 + $0x98] sm:$0xff]  ;;  %v3640_v8 = vpop.permute.xlu1 %3639 }
0x12f2   :  { %v6370_v44 = vpack.c.bf16 %v4121_v24, %v4117_v26  ;;  %v4161_v35 = vld [vmem:[#allocation34 + $0x1f8] sm:$0xff]  ;;  %v3642_v58 = vmul.f32 %v3640_v8, %v7853_v48  ;;  %v4316_v24 = vld [vmem:[#allocation36] sm:$0xff] }
0x12f3   :  { %3628 = vmatmul.mubr.f32.gmra.mrb[42].mxu0 %v3550_v53  ;;  %v4125_v53 = vld [vmem:[#allocation34 + $0xd8] sm:$0xff] }
0x12f4   :  { %6305 = vmatpush3.bf16.msra.mxu0 %v6304_v46  ;;  %4080 = vmatprep.mubr.f32.mxu0 %v4009_v49  ;;  %v4120_v46 = vld [vmem:[#allocation34 + $0xb0] sm:$0xff]  ;;  %v4319_v34 = vld [vmem:[#allocation36 + $0x18] sm:$0xff] }
0x12f5   :  { %6307 = vmatprep.subr.bf16.mxu0 %v6306_v47  ;;  %v4129_v47 = vld [vmem:[#allocation34 + $0xf8] sm:$0xff]  ;;  %v6372_v38 = vpack.c.bf16 %v4120_v46, %v4116_v57  ;;  %v4128_v49 = vld [vmem:[#allocation34 + $0xf0] sm:$0xff]  ;;  %v4321_v57 = vld [vmem:[#allocation36 + $0x28] sm:$0xff] }
0x12f6   :  { %v6376_v45 = vpack.c.bf16 %v4128_v49, %v4124_v30  ;;  %v4323_v46 = vld [vmem:[#allocation36 + $0x38] sm:$0xff] }
0x12f7   :  { %v6641_v32 = vpop.eup %6640 }
0x12f8   :  { %6309 = vmatpush3.bf16.msra.mxu0 %v6308_v51  ;;  %v4004_v9 = vadd.f32 1.0, %v6641_v32  ;;  %v6378_v51 = vpack.c.bf16 %v4137_v29, %v4133_v50  ;;  %v4155_v32 = vld [vmem:[#allocation34 + $0x1c8] sm:$0xff]  ;;  %v6398_v50 = vpack.c.bf16 %v4323_v46, %v4321_v57  ;;  %v4320_v29 = vld [vmem:[#allocation36 + $0x20] sm:$0xff] }
0x12f9   :  { %6311 = vmatprep.subr.bf16.mxu0 %v6310_v52  ;;  %v4132_v52 = vld [vmem:[#allocation34 + $0x110] sm:$0xff]  ;;  %v6358_v63 = vpack.c.bf16 %v4159_v60, %v4155_v32  ;;  %v4336_v32 = vld [vmem:[#allocation36 + $0xa0] sm:$0xff] }
0x12fa   :  { %v4006_v33 = vmul.f32 0.5, %v4004_v9  ;;  %v6380_v59 = vpack.c.bf16 %v4136_v3, %v4132_v52  ;;  %v4158_v9 = vld [vmem:[#allocation34 + $0x1e0] sm:$0xff]  ;;  %v4327_v52 = vld [vmem:[#allocation36 + $0x58] sm:$0xff]  ;;  %v4338_v60 = vld [vmem:[#allocation36 + $0xb0] sm:$0xff] }
0x12fc   :  { %6313 = vmatpush3.bf16.msra.mxu0 %v6312_v7  ;;  %v4008_v37 = vmul.f32 %v4006_v33, %v7994_v14  ;;  %v6374_v14 = vpack.c.bf16 %v4129_v47, %v4125_v53  ;;  %v6382_v7 = vpack.c.bf16 %v4145_v11, %v4141_v10  ;;  %v6392_v33 = vpack.c.bf16 %v4160_v43, %v4156_v1  ;;  %v4324_v11 = vld [vmem:[#allocation36 + $0x40] sm:$0xff]  ;;  %v4345_v1 = vld [vmem:[#allocation36 + $0xe8] sm:$0xff]  ;;  %v4347_v43 = vld [vmem:[#allocation36 + $0xf8] sm:$0xff] }
0x12fd   :  { %6315 = vmatprep.subr.bf16.mxu0 %v6314_v61  ;;  %v4140_v61 = vld [vmem:[#allocation34 + $0x150] sm:$0xff] }
0x12fe   :  { %v6384_v23 = vpack.c.bf16 %v4144_v39, %v4140_v61  ;;  %v4331_v61 = vld [vmem:[#allocation36 + $0x78] sm:$0xff] }
0x1300   :  { %6317 = vmatpush3.bf16.msra.mxu0 %v6316_v19  ;;  %v6354_v19 = vpack.c.bf16 %v4151_v18, %v4147_v16  ;;  %v4328_v16 = vld [vmem:[#allocation36 + $0x60] sm:$0xff]  ;;  %v4330_v18 = vld [vmem:[#allocation36 + $0x70] sm:$0xff] }
0x1301   :  { %6319 = vmatprep.subr.bf16.mxu0 %v6318_v20  ;;  %v4146_v20 = vld [vmem:[#allocation34 + $0x180] sm:$0xff] }
0x1302   :  { %v6356_v21 = vpack.c.bf16 %v4150_v54, %v4146_v20  ;;  %6355 = vmatprep.subr.bf16.mxu1 %v6354_v19  ;;  %v4333_v19 = vld [vmem:[#allocation36 + $0x88] sm:$0xff]  ;;  %v4335_v20 = vld [vmem:[#allocation36 + $0x98] sm:$0xff]  ;;  %v6408_v54 = vpack.c.bf16 %v4330_v18, %v4328_v16 }
0x1304   :  { %6321 = vmatpush3.bf16.msra.mxu0 %v6320_v2  ;;  %v4148_v2 = vld [vmem:[#allocation34 + $0x190] sm:$0xff]  ;;  %6357 = vmatpush1.bf16.msra.mxu1 %v6356_v21  ;;  %v6410_v21 = vpack.c.bf16 %v4335_v20, %v4333_v19 }
0x1305   :  { %6323 = vmatprep.subr.bf16.mxu0 %v6322_v27  ;;  %v6386_v27 = vpack.c.bf16 %v4153_v62, %v4149_v22  ;;  %v6388_v25 = vpack.c.bf16 %v4152_v28, %v4148_v2  ;;  %6359 = vmatprep.subr.bf16.mxu1 %v6358_v63  ;;  %v4332_v22 = vld [vmem:[#allocation36 + $0x80] sm:$0xff]  ;;  %v4334_v62 = vld [vmem:[#allocation36 + $0x90] sm:$0xff]  ;;  %v4337_v2 = vld [vmem:[#allocation36 + $0xa8] sm:$0xff] }
0x1306   :  { %v6412_v28 = vpack.c.bf16 %v4334_v62, %v4332_v22  ;;  %v4341_v63 = vld [vmem:[#allocation36 + $0xc8] sm:$0xff] }
0x1308   :  { %6325 = vmatpush3.bf16.msra.mxu0 %v6324_v55  ;;  %v4154_v55 = vld [vmem:[#allocation34 + $0x1c0] sm:$0xff] }
0x1309   :  { %6327 = vmatprep.subr.bf16.mxu0 %v6326_v15  ;;  %v4157_v15 = vld [vmem:[#allocation34 + $0x1d8] sm:$0xff]  ;;  %v6360_v40 = vpack.c.bf16 %v4158_v9, %v4154_v55  ;;  %v6416_v9 = vpack.c.bf16 %v4338_v60, %v4336_v32  ;;  %v4419_v60 = vld [vmem:[#allocation37] sm:$0xff] }
0x130a   :  { %v4343_v55 = vld [vmem:[#allocation36 + $0xd8] sm:$0xff] }
0x130b   :  { %6361 = vmatpush1.bf16.msra.mxu1 %v6360_v40  ;;  %v4340_v40 = vld [vmem:[#allocation36 + $0xc0] sm:$0xff] }
0x130c   :  { %6329 = vmatpush3.bf16.msra.mxu0 %v6328_v31  ;;  %v6390_v31 = vpack.c.bf16 %v4161_v35, %v4157_v15  ;;  %v6418_v15 = vpack.c.bf16 %v4343_v55, %v4341_v63  ;;  %v4342_v35 = vld [vmem:[#allocation36 + $0xd0] sm:$0xff]  ;;  %v4420_v63 = vld [vmem:[#allocation37 + $0x8] sm:$0xff] }
0x130d   :  { %6363 = vmatprep.subr.bf16.mxu0 %v6362_v41  ;;  %v4317_v41 = vld [vmem:[#allocation36 + $0x8] sm:$0xff] }
0x130e   :  { %v6394_v56 = vpack.c.bf16 %v4319_v34, %v4317_v41  ;;  %v6422_v41 = vpack.c.bf16 %v4347_v43, %v4345_v1  ;;  %v4344_v34 = vld [vmem:[#allocation36 + $0xe0] sm:$0xff]  ;;  %v4421_v43 = vld [vmem:[#allocation37 + $0x10] sm:$0xff] }
0x130f   :  { %4081 = vmatmul.mubr.f32.vlgmr.msra.gmra.mrb[44].mxu0 %v4008_v37 }
0x1310   :  { %6365 = vmatpush1.bf16.msra.mxu0 %v6364_v17  ;;  %4303 = vmatprep.mubr.f32.mxu0 %v7278_v6  ;;  %v5053_v17 = vld [vmem:[#allocation30] ss:$0 sm:$0xff] }
0x1311   :  { %6367 = vmatprep.subr.bf16.mxu0 %v6366_v13  ;;  %6395 = vmatprep.subr.bf16.mxu1 %v6394_v56  ;;  %v4346_v56 = vld [vmem:[#allocation36 + $0xf0] sm:$0xff] }
0x1314   :  { %6369 = vmatpush1.bf16.msra.mxu0 %v6368_v4  ;;  %v4318_v4 = vld [vmem:[#allocation36 + $0x10] sm:$0xff] }
0x1315   :  { %6371 = vmatprep.subr.bf16.mxu0 %v6370_v44 }
0x1318   :  { %6373 = vmatpush1.bf16.msra.mxu0 %v6372_v38  ;;  %v6396_v38 = vpack.c.bf16 %v4318_v4, %v4316_v24 }
0x1319   :  { %6375 = vmatprep.subr.bf16.mxu0 %v6374_v14  ;;  %v3643_v14 = vmul.f32 %v3640_v8, %v7866_v0  ;;  %v5057_v8 = vld [vmem:[#allocation33] ss:$0 sm:$0xff] }
0x131c   :  { %6377 = vmatpush1.bf16.msra.mxu0 %v6376_v45  ;;  %v4322_v45 = vld [vmem:[#allocation36 + $0x30] sm:$0xff] }
0x131d   :  { %6379 = vmatprep.subr.bf16.mxu0 %v6378_v51  ;;  %v4325_v51 = vld [vmem:[#allocation36 + $0x48] sm:$0xff]  ;;  %v6400_v3 = vpack.c.bf16 %v4322_v45, %v4320_v29 }
0x131e   :  { %v6402_v0 = vpack.c.bf16 %v4327_v52, %v4325_v51 }
0x1320   :  { %6381 = vmatpush1.bf16.msra.mxu0 %v6380_v59  ;;  %v4326_v59 = vld [vmem:[#allocation36 + $0x50] sm:$0xff] }
0x1321   :  { %6383 = vmatprep.subr.bf16.mxu0 %v6382_v7  ;;  %v4329_v7 = vld [vmem:[#allocation36 + $0x68] sm:$0xff]  ;;  %v6404_v39 = vpack.c.bf16 %v4326_v59, %v4324_v11 }
0x1324   :  { %6385 = vmatpush1.bf16.msra.mxu0 %v6384_v23  ;;  %v6406_v23 = vpack.c.bf16 %v4331_v61, %v4329_v7 }
0x1325   :  { %6387 = vmatprep.subr.bf16.mxu0 %v6386_v27  ;;  %v4339_v27 = vld [vmem:[#allocation36 + $0xb8] sm:$0xff] }
0x1328   :  { %6389 = vmatpush1.bf16.msra.mxu0 %v6388_v25  ;;  %v6414_v25 = vpack.c.bf16 %v4339_v27, %v4337_v2 }
0x1329   :  { %6391 = vmatprep.subr.bf16.mxu0 %v6390_v31  ;;  %v6420_v31 = vpack.c.bf16 %v4342_v35, %v4340_v40  ;;  %v4437_v40 = vld [vmem:[#allocation37 + $0x90] sm:$0xff]  ;;  %v4438_v35 = vld [vmem:[#allocation37 + $0x98] sm:$0xff] }
0x132a   :  { %v6442_v1 = vpack.c.bf16 %v4438_v35, %v4437_v40 }
0x132c   :  { %6393 = vmatpush1.bf16.msra.mxu0 %v6392_v33 }
0x132d   :  { %6426 = vmatprep.subr.bf16.mxu0 %v7276_v5 }
0x13c2   :  { %v5274_v36 = vpop.f32.mrb[40].mxu0 }
0x13c3   :  { %v5275_v37 = vpop.f32.mrb[41].mxu0 }
0x13c4   :  { %v5276_v13 = vadd.f32 %v5275_v37, %v5274_v36  ;;  %v4093_v36 = vpop.permute.xlu0 %4092 }
0x13c6   :  { %v3625_v42 = vadd.f32 %v5276_v13, %v5053_v17  ;;  %v5277_v26 = vpop.f32.mrb[42].mxu0  ;;  %v6424_v13 = vpack.c.bf16 %v4346_v56, %v4344_v34  ;;  %v4440_v34 = vld [vmem:[#allocation37 + $0xa8] sm:$0xff] }
0x13c7   :  { %v5278_v44 = vpop.f32.mrb[43].mxu0 }
0x13c8   :  { %v3644_v53 = vadd.f32 %v3642_v58, %v3625_v42  ;;  %v5279_v47 = vadd.f32 %v5278_v44, %v5277_v26  ;;  %v4095_v58 = vmul.f32 %v4093_v36, %v7894_v12  ;;  %v4423_v36 = vld [vmem:[#allocation37 + $0x20] sm:$0xff] }
0x13ca   :  { %v3646_v30 = vmax.f32 %v3644_v53, 0.0  ;;  %v3630_v49 = vadd.f32 %v5279_v47, %v5053_v17 }
0x13cc   :  { %4961 = vst [vmem:[#allocation43] sm:$0xff] %v3646_v30  ;;  %4227 = vmatmul.mubr.f32.vlgmr.msra.gmra.mrb[42].mxu1 %v3646_v30  ;;  %4304 = vmatmul.mubr.f32.vlgmr.msra.gmra.mrb[46].mxu0 %v3646_v30  ;;  %v3645_v48 = vadd.f32 %v3643_v14, %v3630_v49 }
0x13cd   :  { %6397 = vmatpush1.bf16.msra.mxu1 %v6396_v38  ;;  %4232 = vmatprep.mubr.f32.mxu1 %v7278_v6 }
0x13ce   :  { %4309 = vmatprep.mubr.f32.mxu0 %v7278_v6  ;;  %6399 = vmatprep.subr.bf16.mxu1 %v6398_v50  ;;  %v3647_v10 = vmax.f32 %v3645_v48, 0.0 }
0x13d0   :  { %4233 = vmatmul.mubr.f32.gmra.mrb[44].mxu1 %v3647_v10  ;;  %4962 = vst [vmem:[#allocation43 + $0x8] sm:$0xff] %v3647_v10  ;;  %4310 = vmatmul.mubr.f32.gmra.mrb[48].mxu0 %v3647_v10 }
0x13d1   :  { %6401 = vmatpush1.bf16.msra.mxu1 %v6400_v3  ;;  %4412 = vmatprep.mubr.f32.mxu1 %v7278_v6 }
0x13d2   :  { %6403 = vmatprep.subr.bf16.mxu1 %v6402_v0  ;;  %5631 = vmatprep.mubr.msk.f32.mxu0 %vm7277_vm0, %v7278_v6 }
0x13d5   :  { %6405 = vmatpush1.bf16.msra.mxu1 %v6404_v39 }
0x13d6   :  { %6407 = vmatprep.subr.bf16.mxu1 %v6406_v23 }
0x13d9   :  { %6409 = vmatpush1.bf16.msra.mxu1 %v6408_v54  ;;  %v5062_v54 = vld [vmem:[#allocation6] ss:$0 sm:$0xff] }
0x13da   :  { %6411 = vmatprep.subr.bf16.mxu1 %v6410_v21 }
0x13dd   :  { %6413 = vmatpush1.bf16.msra.mxu1 %v6412_v28  ;;  %v4435_v28 = vld [vmem:[#allocation37 + $0x80] sm:$0xff] }
0x13de   :  { %6415 = vmatprep.subr.bf16.mxu1 %v6414_v25 }
0x13e1   :  { %6417 = vmatpush1.bf16.msra.mxu1 %v6416_v9  ;;  %v6440_v9 = vpack.c.bf16 %v4420_v63, %v4419_v60  ;;  %v4876_v60 = vld [vmem:[#allocation40 + $0x48] sm:$0xff] }
0x13e2   :  { %v5324_v33 = vpop.f32.mrb[44].mxu0  ;;  %6419 = vmatprep.subr.bf16.mxu1 %v6418_v15 }
0x13e3   :  { %v5325_v17 = vpop.f32.mrb[45].mxu0 }
0x13e4   :  { %v5326_v37 = vadd.f32 %v5325_v17, %v5324_v33 }
0x13e5   :  { %6421 = vmatpush1.bf16.msra.mxu1 %v6420_v31  ;;  %v4422_v31 = vld [vmem:[#allocation37 + $0x18] sm:$0xff] }
0x13e6   :  { %v4083_v42 = vadd.f32 %v5326_v37, %v5057_v8  ;;  %6423 = vmatprep.subr.bf16.mxu1 %v6422_v41  ;;  %v6444_v33 = vpack.c.bf16 %v4422_v31, %v4421_v43  ;;  %v4439_v41 = vld [vmem:[#allocation37 + $0xa0] sm:$0xff]  ;;  %v4424_v8 = vld [vmem:[#allocation37 + $0x28] sm:$0xff]  ;;  %v4441_v37 = vld [vmem:[#allocation37 + $0xb0] sm:$0xff] }
0x13e7   :  { %v6446_v56 = vpack.c.bf16 %v4440_v34, %v4439_v41  ;;  %v6448_v17 = vpack.c.bf16 %v4424_v8, %v4423_v36 }
0x13e8   :  { %v8013_v26 = vadd.f32 %v4095_v58, %v4083_v42  ;;  %v4425_v42 = vld [vmem:[#allocation37 + $0x30] sm:$0xff] }
0x13e9   :  { %6425 = vmatpush1.bf16.msra.mxu1 %v6424_v13  ;;  %v4442_v13 = vld [vmem:[#allocation37 + $0xb8] sm:$0xff] }
0x13ea   :  { %v4097_v24 = vmax.f32 %v8013_v26, 0.0  ;;  %6429 = vmatprep.subr.bf16.mxu1 %v7276_v5  ;;  %v6450_v58 = vpack.c.bf16 %v4442_v13, %v4441_v37 }
0x13ec   :  { %4413 = vmatmul.mubr.f32.vlgmr.msra.gmra.mrb[46].mxu1 %v4097_v24 }
0x13ed   :  { %5638 = vmatprep.mubr.msk.f32.mxu1 %vm7277_vm0, %v7278_v6 }
0x149f   :  { %v4228_v4 = vpop.f32.mrb[42].mxu1  ;;  %v4305_v44 = vpop.f32.mrb[46].mxu0 }
0x14a0   :  { %v4230_v57 = vpop.f32.mrb[43].mxu1  ;;  %v4307_v46 = vpop.f32.mrb[47].mxu0 }
0x14a3   :  { %v4234_v12 = vpop.f32.mrb[44].mxu1  ;;  %v4311_v53 = vpop.f32.mrb[48].mxu0 }
0x14a4   :  { %v6427_v47 = vpack.c.bf16 %v4234_v12, %v4228_v4  ;;  %v6430_v38 = vpack.c.bf16 %v4311_v53, %v4305_v44  ;;  %v4236_v14 = vpop.f32.mrb[45].mxu1  ;;  %v4313_v30 = vpop.f32.mrb[49].mxu0  ;;  %v4426_v4 = vld [vmem:[#allocation37 + $0x38] sm:$0xff]  ;;  %v4427_v53 = vld [vmem:[#allocation37 + $0x40] sm:$0xff] }
0x14a5   :  { %v6433_v49 = vpack.c.bf16 %v4236_v14, %v4230_v57  ;;  %v6436_v50 = vpack.c.bf16 %v4313_v30, %v4307_v46  ;;  %v6452_v44 = vpack.c.bf16 %v4426_v4, %v4425_v42  ;;  %v4443_v57 = vld [vmem:[#allocation37 + $0xc0] sm:$0xff]  ;;  %v4444_v46 = vld [vmem:[#allocation37 + $0xc8] sm:$0xff]  ;;  %v4446_v30 = vld [vmem:[#allocation37 + $0xd8] sm:$0xff] }
0x14a6   :  { %6428 = vmatpush3.bf16.xpose.msra.mxu0 %v6427_v47  ;;  %6431 = vmatpush3.bf16.msra.mxu1 %v6430_v38  ;;  %v6454_v12 = vpack.c.bf16 %v4444_v46, %v4443_v57  ;;  %v4428_v47 = vld [vmem:[#allocation37 + $0x48] sm:$0xff]  ;;  %v4445_v38 = vld [vmem:[#allocation37 + $0xd0] sm:$0xff] }
0x14a7   :  { %6435 = vmatprep.subr.bf16.mxu0 %v7276_v5  ;;  %6432 = vmatprep.subr.bf16.mxu1 %v7276_v5  ;;  %v6456_v14 = vpack.c.bf16 %v4428_v47, %v4427_v53  ;;  %v4880_v53 = vld [vmem:[#allocation40 + $0x68] sm:$0xff] }
0x14bf   :  { %v4414_v29 = vpop.f32.mrb[46].mxu1 }
0x14c0   :  { %v4416_v45 = vpop.f32.mrb[47].mxu1  ;;  %5632 = vmatmul.mubr.f32.vlgmr.msra.gmra.mrb[50].mxu0 %v4414_v29  ;;  %v6458_v29 = vpack.c.bf16 %v4446_v30, %v4445_v38  ;;  %v4881_v38 = vld [vmem:[#allocation40 + $0x70] sm:$0xff] }
0x14c1   :  { %6437 = vmatpush3.bf16.msra.mxu0 %v6436_v50  ;;  %5652 = vmatprep.mubr.msk.f32.mxu0 %vm7277_vm0, %v7278_v6  ;;  %v4430_v50 = vld [vmem:[#allocation37 + $0x58] sm:$0xff] }
0x1593   :  { %v4519_v51 = vpop.f32.mrb[50].mxu0 }
0x1594   :  { %v5633_v52 = vpop.f32.mrb[51].mxu0  ;;  %v4523_v48 = vsel %vm481_vm5, %v4519_v51, -inf }
0x1595   :  { %4524 = vmax.xlane.f32.xlu1 %v4523_v48 }
0x1622   :  { %v4525_v3 = vpop.xlane.xlu1 %4524 }
0x1623   :  { %v4526_v10 = vsub.f32 %v4519_v51, %v4525_v3  ;;  %v4448_v51 = vld [vmem:[#allocation37 + $0xe8] sm:$0xff]  ;;  %v4431_v3 = vld [vmem:[#allocation37 + $0x60] sm:$0xff] }
0x1625   :  { %v4527_v0 = vmul.f32 1.442695, %v4526_v10  ;;  %v4432_v10 = vld [vmem:[#allocation37 + $0x68] sm:$0xff] }
0x1627   :  { %6642 = vpow2.f32 %v4527_v0  ;;  %v4449_v0 = vld [vmem:[#allocation37 + $0xf0] sm:$0xff] }
0x1631   :  { %v6643_v11 = vpop.eup %6642 }
0x1632   :  { %v4529_v59 = vsel %vm481_vm5, %v6643_v11, 0.0 }
0x1633   :  { %4530 = vadd.xlane.f32.xlu0 %v4529_v59  ;;  %v6464_v59 = vpack.c.bf16 %v4432_v10, %v4431_v3 }
0x16c0   :  { %v4531_v7 = vpop.xlane.xlu0 %4530 }
0x16c1   :  { %6644 = vrcp.f32 %v4531_v7 }
0x16cb   :  { %v6645_v61 = vpop.eup %6644 }
0x16cc   :  { %v4533_v39 = vmul.f32 %v6645_v61, %v6643_v11  ;;  %v4450_v11 = vld [vmem:[#allocation37 + $0xf8] sm:$0xff]  ;;  %v4433_v61 = vld [vmem:[#allocation37 + $0x70] sm:$0xff] }
0x16cd   :  { %v6466_v7 = vpack.c.bf16 %v4450_v11, %v4449_v0 }
0x16ce   :  { %5639 = vmatmul.mubr.msk.f32.vlgmr.msra.gmra.mrb[48].mxu1 %vm481_vm5, %v4533_v39  ;;  %v4434_v39 = vld [vmem:[#allocation37 + $0x78] sm:$0xff] }
0x16cf   :  { %6434 = vmatpush3.bf16.xpose.msra.mxu1 %v6433_v49  ;;  %5645 = vmatprep.mubr.msk.f32.mxu1 %vm7277_vm0, %v7278_v6  ;;  %v4429_v49 = vld [vmem:[#allocation37 + $0x50] sm:$0xff] }
0x16d0   :  { %6470 = vmatprep.subr.bf16.mxu1 %v7276_v5  ;;  %v6460_v52 = vpack.c.bf16 %v4430_v50, %v4429_v49 }
0x16d6   :  { %5646 = vmatmul.mubr.f32.vlgmr.msra.gmra.mrb[50].mxu1 %v4416_v45  ;;  %v4447_v45 = vld [vmem:[#allocation37 + $0xe0] sm:$0xff] }
0x16d7   :  { %5687 = vmatprep.mubr.msk.f32.mxu1 %vm7277_vm0, %v7278_v6  ;;  %v4436_v6 = vld [vmem:[#allocation37 + $0x88] sm:$0xff]  ;;  %v6462_v48 = vpack.c.bf16 %v4448_v51, %v4447_v45 }
0x16d8   :  { %v6438_v25 = vpack.c.bf16 %v4436_v6, %v4435_v28  ;;  %v4873_v28 = vld [vmem:[#allocation40 + $0x30] sm:$0xff]  ;;  %v4874_v6 = vld [vmem:[#allocation40 + $0x38] sm:$0xff] }
0x16da   :  { %6439 = vmatprep.subr.bf16.mxu0 %v6438_v25  ;;  %v6480_v25 = vpack.c.bf16 %v4874_v6, %v4873_v28 }
0x17a1   :  { %v8033_v23 = vpop.f32.mrb[48].mxu1 }
0x17a2   :  { %v5640_v16 = vpop.f32.mrb[49].mxu1  ;;  %v4761_v40 = vmul.f32 %v8033_v23, %v8033_v23 }
0x17a3   :  { %v6468_v16 = vpack.c.bf16 %v4434_v39, %v4433_v61 }
0x17a4   :  { %v4763_v35 = vmul.f32 %v4761_v40, %v8033_v23 }
0x17a9   :  { %v4673_v18 = vpop.f32.mrb[50].mxu1 }
0x17aa   :  { %v5647_v19 = vpop.f32.mrb[51].mxu1  ;;  %v4677_v20 = vsel %vm481_vm5, %v4673_v18, -inf }
0x17ab   :  { %4678 = vmax.xlane.f32.xlu1 %v4677_v20  ;;  %v4868_v19 = vld [vmem:[#allocation40 + $0x8] sm:$0xff]  ;;  %v4869_v20 = vld [vmem:[#allocation40 + $0x10] sm:$0xff] }
0x17bc   :  { %4861 = vperm.xlu1 %6568, %v5062_v54  }
0x1838   :  { %v4679_v21 = vpop.xlane.xlu1 %4678 }
0x1839   :  { %v4680_v22 = vsub.f32 %v4673_v18, %v4679_v21  ;;  %v4867_v18 = vld [vmem:[#allocation40] sm:$0xff]  ;;  %v4870_v21 = vld [vmem:[#allocation40 + $0x18] sm:$0xff] }
0x183a   :  { %v6471_v54 = vpack.c.bf16 %v4868_v19, %v4867_v18 }
0x183b   :  { %v4681_v62 = vmul.f32 1.442695, %v4680_v22  ;;  %v6474_v22 = vpack.c.bf16 %v4870_v21, %v4869_v20 }
0x183c   :  { %6472 = vmatpush3.bf16.msra.mxu1 %v6471_v54  ;;  %v4862_v50 = vpop.permute.xlu1 %4861 }
0x183d   :  { %6646 = vpow2.f32 %v4681_v62  ;;  %6473 = vmatprep.subr.bf16.mxu1 %v7276_v5  ;;  %v4871_v62 = vld [vmem:[#allocation40 + $0x20] sm:$0xff] }
0x1840   :  { %6475 = vmatpush3.bf16.msra.mxu1 %v6474_v22 }
0x1841   :  { %6476 = vmatprep.subr.bf16.mxu1 %v7276_v5 }
0x1847   :  { %v6647_v2 = vpop.eup %6646 }
0x1848   :  { %v4683_v27 = vsel %vm481_vm5, %v6647_v2, 0.0 }
0x1849   :  { %4684 = vadd.xlane.f32.xlu0 %v4683_v27 }
0x18d6   :  { %v4685_v32 = vpop.xlane.xlu0 %4684 }
0x18d7   :  { %6648 = vrcp.f32 %v4685_v32  ;;  %v4875_v32 = vld [vmem:[#allocation40 + $0x40] sm:$0xff] }
0x18d8   :  { %v6483_v63 = vpack.c.bf16 %v4876_v60, %v4875_v32 }
0x18e1   :  { %v6649_v55 = vpop.eup %6648 }
0x18e2   :  { %v4687_v15 = vmul.f32 %v6649_v55, %v6647_v2  ;;  %v4872_v2 = vld [vmem:[#allocation40 + $0x28] sm:$0xff]  ;;  %v4877_v55 = vld [vmem:[#allocation40 + $0x50] sm:$0xff] }
0x18e3   :  { %v6477_v27 = vpack.c.bf16 %v4872_v2, %v4871_v62 }
0x18e4   :  { %5653 = vmatmul.mubr.msk.f32.vlgmr.msra.gmra.mrb[52].mxu0 %vm481_vm5, %v4687_v15 }
0x18e5   :  { %6441 = vmatpush3.bf16.msra.mxu0 %v6440_v9  ;;  %6478 = vmatpush3.bf16.msra.mxu1 %v6477_v27  ;;  %v4878_v9 = vld [vmem:[#allocation40 + $0x58] sm:$0xff] }
0x18e6   :  { %6443 = vmatprep.subr.bf16.mxu0 %v6442_v1  ;;  %6479 = vmatprep.subr.bf16.mxu1 %v7276_v5  ;;  %v6486_v15 = vpack.c.bf16 %v4878_v9, %v4877_v55  ;;  %v4765_v1 = vmul.f32 0.044715, %v4763_v35 }
0x18e8   :  { %v4767_v43 = vadd.f32 %v4765_v1, %v8033_v23 }
0x18e9   :  { %6445 = vmatpush3.bf16.msra.mxu0 %v6444_v33  ;;  %6481 = vmatpush3.bf16.msra.mxu1 %v6480_v25 }
0x18ea   :  { %6447 = vmatprep.subr.bf16.mxu0 %v6446_v56  ;;  %6482 = vmatprep.subr.bf16.mxu1 %v7276_v5  ;;  %v4769_v34 = vmul.f32 0.7978846, %v4767_v43 }
0x18ec   :  { %6650 = vtanh.f32 %v4769_v34 }
0x18ed   :  { %6449 = vmatpush3.bf16.msra.mxu0 %v6448_v17  ;;  %6484 = vmatpush3.bf16.msra.mxu1 %v6483_v63 }
0x18ee   :  { %6451 = vmatprep.subr.bf16.mxu0 %v6450_v58  ;;  %6485 = vmatprep.subr.bf16.mxu1 %v7276_v5 }
0x18f1   :  { %6453 = vmatpush3.bf16.msra.mxu0 %v6452_v44  ;;  %6487 = vmatpush3.bf16.msra.mxu1 %v6486_v15 }
0x18f2   :  { %6455 = vmatprep.subr.bf16.mxu0 %v6454_v12  ;;  %6488 = vmatprep.subr.bf16.mxu1 %v7276_v5  ;;  %v4879_v12 = vld [vmem:[#allocation40 + $0x60] sm:$0xff] }
0x18f3   :  { %v6489_v47 = vpack.c.bf16 %v4880_v53, %v4879_v12 }
0x18f5   :  { %6457 = vmatpush3.bf16.msra.mxu0 %v6456_v14  ;;  %6490 = vmatpush3.bf16.msra.mxu1 %v6489_v47  ;;  %v4882_v14 = vld [vmem:[#allocation40 + $0x78] sm:$0xff] }
0x18f6   :  { %6459 = vmatprep.subr.bf16.mxu0 %v6458_v29  ;;  %v6651_v37 = vpop.eup %6650  ;;  %6491 = vmatprep.subr.bf16.mxu1 %v7276_v5  ;;  %v6492_v30 = vpack.c.bf16 %v4882_v14, %v4881_v38  ;;  %v5061_v29 = vld [vmem:[#allocation39] ss:$0 sm:$0xff] }
0x18f7   :  { %v4773_v13 = vadd.f32 1.0, %v6651_v37 }
0x18f9   :  { %6461 = vmatpush3.bf16.msra.mxu0 %v6460_v52  ;;  %v4775_v4 = vmul.f32 0.5, %v4773_v13  ;;  %6493 = vmatpush3.bf16.msra.mxu1 %v6492_v30 }
0x18fa   :  { %6463 = vmatprep.subr.bf16.mxu0 %v6462_v48 }
0x18fb   :  { %v4777_v46 = vmul.f32 %v4775_v4, %v8033_v23  ;;  %v4864_v23 = vmul.f32 %v4862_v50, %v4097_v24 }
0x18fd   :  { %6465 = vmatpush3.bf16.msra.mxu0 %v6464_v59 }
0x18fe   :  { %6467 = vmatprep.subr.bf16.mxu0 %v6466_v7 }
0x1901   :  { %6469 = vmatpush3.bf16.msra.mxu0 %v6468_v16 }
0x19b7   :  { %v4757_v31 = vpop.f32.mrb[52].mxu0 }
0x19b8   :  { %v4762_v33 = vmul.f32 %v4757_v31, %v4757_v31  ;;  %v5654_v41 = vpop.f32.mrb[53].mxu0 }
0x19ba   :  { %v4764_v56 = vmul.f32 %v4762_v33, %v4757_v31 }
0x19bc   :  { %v4766_v36 = vmul.f32 0.044715, %v4764_v56 }
0x19be   :  { %v4768_v8 = vadd.f32 %v4766_v36, %v4757_v31 }
0x19c0   :  { %v4770_v17 = vmul.f32 0.7978846, %v4768_v8 }
0x19c2   :  { %6652 = vtanh.f32 %v4770_v17 }
0x19cc   :  { %v6653_v58 = vpop.eup %6652 }
0x19cd   :  { %v4774_v42 = vadd.f32 1.0, %v6653_v58 }
0x19cf   :  { %v4776_v44 = vmul.f32 0.5, %v4774_v42 }
0x19d1   :  { %v4778_v57 = vmul.f32 %v4776_v44, %v4757_v31 }
0x19d3   :  { %4849 = vmatprep.mubr.f32.mxu0 %v4778_v57 }
0x19d4   :  { %4850 = vmatmul.mubr.f32.vlgmr.msra.gmra.mrb[54].mxu0 %v4777_v46 }
0x1aa7   :  { %v5371_v49 = vpop.f32.mrb[54].mxu0 }
0x1aa8   :  { %v5372_v45 = vpop.f32.mrb[55].mxu0 }
0x1aa9   :  { %v5373_v51 = vadd.f32 %v5372_v45, %v5371_v49 }
0x1aab   :  { %v4852_v52 = vadd.f32 %v5373_v51, %v5061_v29 }
0x1aad   :  { %v4865_v48 = vadd.f32 %v4864_v23, %v4852_v52 }
0x1aaf   :  { %v4866_v3 = vmax.f32 %v4865_v48, 0.0 }
0x1ab1   :  { %5688 = vmatmul.mubr.f32.vlgmr.msra.gmra.mrb[52].mxu1 %v4866_v3 }
0x1ab2   :  { %7171 = shalt.err (!%p7168_p6)
}
0x1ab3   :  { %s7172_s12 = scalar_lea.hbm %s7453_s10, 256 }
0x1ab4   :  { %p7173_p7 = scmp.ne.s32.totalorder %s7453_s10, %s7172_s12  ;;  %p7176_p8 = scmp.lt.u32.totalorder %s7172_s12, %s7453_s10 }
0x1ab6   :  { %p7178_p9 = pnand %p7176_p8, %p7173_p7 }
0x1ab8   :  { %7181 = shalt.err (!%p7178_p9)
}
0x1ab9   :  { %s8114_s22 = sld [smem:[#allocation76_spill]]  ;;  %v5063_v5 = vld [vmem:[#allocation42] ss:$0 sm:$0xff] }
0x1aba   :  { %4976 = dma.vmem_to_hbm [thread:$0]  %s4971_s6, 256, %s7453_s10, [#allocation9], %s7247_s2, %s7247_s2, %s7248_s13  }
0x1b84   :  { %v4956_v26 = vpop.f32.mrb[52].mxu1 }
0x1b85   :  { %v4957_v24 = vadd.f32 %v5063_v5, %v4956_v26  ;;  %v5689_v10 = vpop.f32.mrb[53].mxu1 }
0x1b87   :  { %4960 = vst [vmem:[%s8114_s22] sm:$0xff] %v4957_v24 }
0x1b88   :  { %7206 = dma.done.wait [#allocation9], 256  }
0x1b89   :  { %7207 = vsyncadd [#allocation9], 4294967040 }
0x1b8a   :  { %4982 = vsyncpa [#allocation8], 1 }
0x1b8b   :  { %4983 = vsyncpa [#allocation11], 1 }
0x1b8c   :  { %4984 = vsyncpa [#allocation14], 1 }
0x1b8d   :  { %4985 = vsyncpa [#allocation17], 1 }
0x1b8e   :  { %4986 = vsyncpa [#allocation20], 1 }
0x1b8f   :  { %4987 = vsyncpa [#allocation23], 1 }
0x1b90   :  { %4988 = vsyncpa [#allocation26], 1 }
0x1b91   :  { %4989 = vsyncpa [#allocation29], 1 }
0x1b92   :  { %4990 = vsyncpa [#allocation32], 1 }
0x1b93   :  { %4991 = vsyncpa [#allocation35], 1 }
0x1b94   :  { %4992 = vsyncpa [#allocation38], 1 }
0x1b95   :  { %4993 = vsyncpa [#allocation41], 1 }
0x1b96   :  { %4994 = vsyncpa [#allocation9], 1 }

</bundles_post_ra>
